<compile_context>
chip_gen: v7x
topology: tpu7x:2x2x1
jax: 0.10.0
libtpu: 0.0.40
codegen_flags: <defaults>
</compile_context>

<pallas_src>
import functools

import jax
import jax.numpy as jnp
from jax.experimental import pallas as pl
from jax.experimental.pallas import tpu as pltpu

MM_DTYPE = jnp.bfloat16               # matmul operand dtype (f32 accumulate)
VMEM_LIMIT = 32 * 1024 * 1024         # explicit scoped-VMEM cap (> v5e default)


def _round_up(x, m):
    return ((x + m - 1) // m) * m


# ----------------------------- Pallas kernels ------------------------------

def _encoder_kernel(x_ref, *refs):
    """Chain of relu(x @ W + b) layers; operands cast to bf16 in-kernel."""
    o_ref = refs[-1]
    wb = refs[:-1]
    n_layers = len(wb) // 2
    y = x_ref[...].astype(MM_DTYPE)
    z = None
    for li in range(n_layers):
        w = wb[2 * li][...]
        b = wb[2 * li + 1][...]
        z = jnp.maximum(
            jnp.dot(y, w, preferred_element_type=jnp.float32) + b, 0.0)
        y = z.astype(MM_DTYPE)
    o_ref[...] = z


def _lstm_kernel(x_ref, wih_ref, whh_ref, b_ref, h_out_ref, h_scr, c_scr, *, Hp):
    t = pl.program_id(1)

    @pl.when(t == 0)
    def _():
        h_scr[...] = jnp.zeros_like(h_scr)
        c_scr[...] = jnp.zeros_like(c_scr)

    # Fused input projection + recurrence; bf16 matmul operands, f32 gates.
    xb = x_ref[0].astype(MM_DTYPE)
    hb = h_scr[...].astype(MM_DTYPE)
    gates = (jnp.dot(xb, wih_ref[...], preferred_element_type=jnp.float32)
             + b_ref[...]
             + jnp.dot(hb, whh_ref[...], preferred_element_type=jnp.float32))
    i = jax.nn.sigmoid(gates[:, 0 * Hp:1 * Hp])
    f = jax.nn.sigmoid(gates[:, 1 * Hp:2 * Hp])
    g = jnp.tanh(gates[:, 2 * Hp:3 * Hp])
    o = jax.nn.sigmoid(gates[:, 3 * Hp:4 * Hp])
    c = f * c_scr[...] + i * g
    h = o * jnp.tanh(c)
    c_scr[...] = c
    h_scr[...] = h

    @pl.when(t == pl.num_programs(1) - 1)
    def _():
        h_out_ref[...] = h


def _decoder_norm_kernel(x_ref, *refs, M, d3):
    """Decoder MLP (tanh hidden, linear out) fused with matter_normalize:
    per matter, subtract the mean over all S cell rows and d^3 voxels."""
    o_ref = refs[-1]
    wb = refs[:-1]
    n_layers = len(wb) // 2
    y = x_ref[...].astype(MM_DTYPE)
    z = None
    for li in range(n_layers):
        w = wb[2 * li][...]
        b = wb[2 * li + 1][...]
        z = jnp.dot(y, w, preferred_element_type=jnp.float32) + b
        if li < n_layers - 1:
            y = jnp.tanh(z).astype(MM_DTYPE)
    # Final layer is laid out as M blocks of 128 lanes, first d3 lanes valid.
    for m in range(M):
        blk = z[:, m * 128:(m + 1) * 128]
        mean = jnp.mean(blk[:, :d3])
        o_ref[:, m * 128:(m + 1) * 128] = blk - mean


# ------------------------------ call wrappers -------------------------------

def encoder_forward(x, ops, row_tile=256):
    """x: (R, F0p) f32; ops: [(W (Fin_p, Fout_p) bf16, b (1, Fout_p) f32), ...]."""
    R, F0p = x.shape
    Fout = ops[-1][0].shape[1]
    row_tile = min(row_tile, _round_up(R, 8))
    Rp = _round_up(R, row_tile)
    if Rp != R:
        x = jnp.pad(x, ((0, Rp - R), (0, 0)))
    flat = []
    in_specs = [pl.BlockSpec((row_tile, F0p), lambda i: (i, 0))]
    for (w, b) in ops:
        flat += [w, b]
        in_specs += [pl.BlockSpec(w.shape, lambda i: (0, 0)),
                     pl.BlockSpec(b.shape, lambda i: (0, 0))]
    out = pl.pallas_call(
        _encoder_kernel,
        out_shape=jax.ShapeDtypeStruct((Rp, Fout), jnp.float32),
        grid_spec=pltpu.PrefetchScalarGridSpec(
            num_scalar_prefetch=0,
            grid=(Rp // row_tile,),
            in_specs=in_specs,
            out_specs=pl.BlockSpec((row_tile, Fout), lambda i: (i, 0)),
        ),
        compiler_params=pltpu.CompilerParams(
            dimension_semantics=("parallel",),
            vmem_limit_bytes=VMEM_LIMIT),
    )(x, *flat)
    return out[:R]


def lstm_last_hidden(lstm_in, wih_p, whh_p, b_p, H):
    """Single-layer LSTM, returns the final hidden state (N, H).

    lstm_in: (T, N, Din) f32.  Gate blocks are padded to Hp (128-multiple) so
    per-step gate slices are lane-aligned; padded hidden units stay zero."""
    T, N, Din = lstm_in.shape
    Hp = whh_p.shape[0]
    # >= 2 steps on the 'parallel' cell axis keeps v7x's 2nd TensorCore busy;
    # on 1-TC chips the extra step costs only ~0.35 us per timestep sweep.
    if N >= 16:
        n_tile = _round_up(pl.cdiv(N, 2), 8)
    else:
        n_tile = _round_up(N, 8)
    Np = _round_up(N, n_tile)
    if Np != N:
        lstm_in = jnp.pad(lstm_in, ((0, 0), (0, Np - N), (0, 0)))

    hT = pl.pallas_call(
        functools.partial(_lstm_kernel, Hp=Hp),
        out_shape=jax.ShapeDtypeStruct((Np, Hp), jnp.float32),
        grid_spec=pltpu.PrefetchScalarGridSpec(
            num_scalar_prefetch=0,
            grid=(Np // n_tile, T),
            in_specs=[
                pl.BlockSpec((1, n_tile, Din), lambda n, t: (t, n, 0)),
                pl.BlockSpec((Din, 4 * Hp), lambda n, t: (0, 0)),
                pl.BlockSpec((Hp, 4 * Hp), lambda n, t: (0, 0)),
                pl.BlockSpec((1, 4 * Hp), lambda n, t: (0, 0)),
            ],
            out_specs=pl.BlockSpec((n_tile, Hp), lambda n, t: (n, 0)),
            scratch_shapes=[
                pltpu.VMEM((n_tile, Hp), jnp.float32),
                pltpu.VMEM((n_tile, Hp), jnp.float32),
            ],
        ),
        compiler_params=pltpu.CompilerParams(
            dimension_semantics=("parallel", "arbitrary"),
            vmem_limit_bytes=VMEM_LIMIT),
    )(lstm_in, wih_p, whh_p, b_p)
    return hT[:N, :H]


def decoder_norm_forward(lstm_out, layers, M, d3, S):
    """Fused decoder MLP + matter_normalize.  lstm_out: (B*S, enc_flat).
    Returns (B*S, M*128) f32 (first d3 lanes of each matter block valid)."""
    R, K = lstm_out.shape
    assert R % S == 0
    B = R // S
    assert S % 8 == 0, "TODO(synk): ragged S needs row masking in the fused mean"
    Fp = layers[-1][0].shape[1]
    flat = []
    in_specs = [pl.BlockSpec((S, K), lambda i: (i, 0))]
    for (w, b) in layers:
        flat += [w, b]
        in_specs += [pl.BlockSpec(w.shape, lambda i: (0, 0)),
                     pl.BlockSpec(b.shape, lambda i: (0, 0))]
    out = pl.pallas_call(
        functools.partial(_decoder_norm_kernel, M=M, d3=d3),
        out_shape=jax.ShapeDtypeStruct((R, Fp), jnp.float32),
        grid_spec=pltpu.PrefetchScalarGridSpec(
            num_scalar_prefetch=0,
            grid=(B,),
            in_specs=in_specs,
            out_specs=pl.BlockSpec((S, Fp), lambda i: (i, 0)),
        ),
        compiler_params=pltpu.CompilerParams(
            dimension_semantics=("parallel",),
            vmem_limit_bytes=VMEM_LIMIT),
    )(lstm_out, *flat)
    return out


# -------------------- prep: conv layers as dense operators -------------------

def _conv3d_nobias(x, w, stride):
    """Valid 3-D conv (prep-time only).  x: (N, Cin, D, D, D); w: (Co, Cin, k^3)."""
    N, Cin, D = x.shape[0], x.shape[1], x.shape[2]
    k = w.shape[2]
    O = (D - k) // stride + 1
    y = jnp.zeros((N, w.shape[0], O, O, O), jnp.float32)
    for kx in range(k):
        for ky in range(k):
            for kz in range(k):
                xs = x[:, :, kx:kx + stride * O:stride,
                       ky:ky + stride * O:stride,
                       kz:kz + stride * O:stride]
                y = y + jnp.einsum('ncijk,oc->noijk', xs, w[:, :, kx, ky, kz])
    return y


def build_encoder_operators(conv_params, M, d, system_dim, ksizes, strides):
    """Materialise the periodic-neighborhood conv encoder as dense operators."""
    sx, sy, sz = system_dim
    S = sx * sy * sz
    D0 = 3 * d
    F0 = S * M * d ** 3

    # Layer 1 (cross-cell, periodic): apply the linear map to an identity
    # basis over the per-(l, b) lattice feature vector.
    k1, s1 = ksizes[0], strides[0]
    w1, b1 = conv_params[0]
    E = jnp.eye(F0, dtype=jnp.float32).reshape(F0, sx, sy, sz, M, d, d, d)
    fine = jnp.transpose(E, (0, 4, 1, 5, 2, 6, 3, 7)).reshape(
        F0, M, sx * d, sy * d, sz * d)
    fpad = jnp.pad(fine, ((0, 0), (0, 0), (d, d), (d, d), (d, d)), mode="wrap")
    wins = []
    for ci in range(sx):
        for cj in range(sy):
            for ck in range(sz):
                wins.append(fpad[:, :, ci * d:ci * d + D0,
                                 cj * d:cj * d + D0, ck * d:ck * d + D0])
    wins = jnp.stack(wins, axis=1).reshape(F0 * S, M, D0, D0, D0)
    y = _conv3d_nobias(wins, w1, s1)
    D1 = (D0 - k1) // s1 + 1
    ops = [(y.reshape(F0, S * M * D1 ** 3), jnp.tile(jnp.repeat(b1, D1 ** 3), S))]
    D_prev = D1

    # Layers >= 2 are per-cell: per-cell dense operator, block-diag over cells.
    for (w, b), k_sz, st in zip(conv_params[1:], ksizes[1:], strides[1:]):
        Fin = M * D_prev ** 3
        Ecell = jnp.eye(Fin, dtype=jnp.float32).reshape(Fin, M, D_prev, D_prev, D_prev)
        yc = _conv3d_nobias(Ecell, w, st)
        D_next = (D_prev - k_sz) // st + 1
        W_cell = yc.reshape(Fin, M * D_next ** 3)
        W_big = jnp.kron(jnp.eye(S, dtype=jnp.float32), W_cell)
        b_big = jnp.tile(jnp.repeat(b, D_next ** 3), S)
        ops.append((W_big, b_big))
        D_prev = D_next

    return ops, D_prev


def pad_operator_chain(ops, in_dim):
    """Zero-pad lane (output) dims to 128-multiples, rows to the previous
    layer's padded width; cast weights to bf16 (bias stays f32)."""
    padded = []
    prev, prev_p = in_dim, _round_up(in_dim, 128)
    for (w, b) in ops:
        fin, fout = w.shape
        assert fin == prev
        fout_p = _round_up(fout, 128)
        wp = jnp.zeros((prev_p, fout_p), jnp.float32).at[:fin, :fout].set(w)
        bp = jnp.zeros((1, fout_p), jnp.float32).at[0, :fout].set(b.reshape(-1))
        padded.append((wp.astype(MM_DTYPE), bp))
        prev, prev_p = fout, fout_p
    return padded


def pad_decoder_layers(mlp_params, M, d3):
    """Lane-pad decoder MLP; final layer uses per-matter 128-lane blocks."""
    padded = []
    n = len(mlp_params)
    prev_p = mlp_params[0][0].shape[0]
    for li, (w, b) in enumerate(mlp_params):
        fin, fout = w.shape
        bf = b.reshape(-1)
        if li < n - 1:
            fout_p = _round_up(fout, 128)
            wp = jnp.zeros((prev_p, fout_p), jnp.float32).at[:fin, :fout].set(w)
            bp = jnp.zeros((1, fout_p), jnp.float32).at[0, :fout].set(bf)
        else:
            fout_p = M * 128
            wp = jnp.zeros((prev_p, fout_p), jnp.float32)
            bp = jnp.zeros((1, fout_p), jnp.float32)
            for m in range(M):
                wp = wp.at[:fin, m * 128:m * 128 + d3].set(w[:, m * d3:(m + 1) * d3])
                bp = bp.at[0, m * 128:m * 128 + d3].set(bf[m * d3:(m + 1) * d3])
        padded.append((wp.astype(MM_DTYPE), bp))
        prev_p = fout_p
    return padded


def prepare_lstm(lstm_params, H):
    Hp = _round_up(H, 128)
    w_ih_t = lstm_params["w_ih_t"]   # (Din, 4H)
    w_hh_t = lstm_params["w_hh_t"]   # (H, 4H)
    b = lstm_params["b"]             # (1, 4H)

    def pad_gate_cols(w):   # per-gate zero padding to Hp columns
        parts = [jnp.pad(w[:, g * H:(g + 1) * H], ((0, 0), (0, Hp - H)))
                 for g in range(4)]
        return jnp.concatenate(parts, axis=1)

    wih_p = pad_gate_cols(w_ih_t).astype(MM_DTYPE)                      # (Din, 4Hp)
    whh_p = jnp.pad(pad_gate_cols(w_hh_t), ((0, Hp - H), (0, 0))).astype(MM_DTYPE)
    b_p = pad_gate_cols(b).astype(jnp.float32)                          # (1, 4Hp)
    return wih_p, whh_p, b_p


def prepare_exec_params(params, M, d, system_dim, ksizes, strides):
    sx, sy, sz = system_dim
    S = sx * sy * sz
    F0 = S * M * d ** 3
    enc_ops_raw, _ = build_encoder_operators(
        params["conv_enc"], M, d, system_dim, ksizes, strides)
    enc_ops = pad_operator_chain(enc_ops_raw, F0)
    decoder = pad_decoder_layers(params["decoder_mlp"], M, d ** 3)
    H = params["lstm"]["w_hh_t"].shape[0]
    wih_p, whh_p, b_p = prepare_lstm(params["lstm"], H)
    return {
        "encoder_ops": enc_ops,
        "decoder": decoder,
        "lstm_wih": wih_p,
        "lstm_whh": whh_p,
        "lstm_b": b_p,
    }


# ------------------------------ parameters ----------------------------------

def init_params(key, M, d, ksizes, strides):
    params = {}
    # TODO(synk): ConvAutoencoder internals are not provided; assume one
    # Conv3d(M -> M, kernel_size=k, stride=s, padding=0) + ReLU per layer,
    # consistent with the encoded-dim bookkeeping in LatticeMD.__init__.
    conv = []
    D = 3 * d
    for k_sz, s in zip(ksizes, strides):
        key, k1, k2 = jax.random.split(key, 3)
        fan_in = M * k_sz ** 3
        w = jax.random.normal(k1, (M, M, k_sz, k_sz, k_sz), jnp.float32) / jnp.sqrt(fan_in)
        b = 0.01 * jax.random.normal(k2, (M,), jnp.float32)
        conv.append((w, b))
        D = (D - k_sz) // s + 1
    params["conv_enc"] = conv
    enc_flat = M * D ** 3

    # TODO(synk): MLPLayer internals not provided; assume Linear+tanh hidden
    # layers [40, 60, 80, 100] with a linear output layer.
    dims = [enc_flat, 40, 60, 80, 100, d ** 3]
    mlp = []
    for i in range(len(dims) - 1):
        key, k1, k2 = jax.random.split(key, 3)
        w = jax.random.normal(k1, (dims[i], dims[i + 1]), jnp.float32) / jnp.sqrt(dims[i])
        b = 0.01 * jax.random.normal(k2, (1, dims[i + 1]), jnp.float32)
        mlp.append((w, b))
    params["decoder_mlp"] = mlp

    # nn.LSTM(enc_flat, enc_flat, num_layers=1) -- nonmatter_encoded_dim == 0
    H = enc_flat
    key, k1, k2, k3, k4 = jax.random.split(key, 5)
    scale = 1.0 / jnp.sqrt(H)
    w_ih = scale * jax.random.normal(k1, (4 * H, enc_flat), jnp.float32)
    w_hh = scale * jax.random.normal(k2, (4 * H, H), jnp.float32)
    b_ih = scale * jax.random.normal(k3, (4 * H,), jnp.float32)
    b_hh = scale * jax.random.normal(k4, (4 * H,), jnp.float32)
    params["lstm"] = {
        "w_ih_t": w_ih.T,                          # (enc_flat, 4H)
        "w_hh_t": w_hh.T,                          # (H, 4H)
        "b": (b_ih + b_hh).reshape(1, 4 * H),
    }
    return params


# ------------------------------ forward pass ---------------------------------

def lattice_md_forward(exec_params, matter_sequence, *, M, d, system_dim):
    L, B = matter_sequence.shape[0], matter_sequence.shape[1]
    sx, sy, sz = system_dim
    S = sx * sy * sz
    d3 = d ** 3
    enc_ops = exec_params["encoder_ops"]
    enc_flat = exec_params["decoder"][0][0].shape[0]

    # encode(): neighbor expansion + all conv layers fused into one kernel.
    F0 = S * M * d3
    F0p = enc_ops[0][0].shape[0]
    x = matter_sequence.reshape(L * B, F0)
    if F0p != F0:
        x = jnp.pad(x, ((0, 0), (0, F0p - F0)))
    enc = encoder_forward(x, enc_ops)                         # (L*B, Fenc_pad)
    enc = enc[:, :S * enc_flat].reshape(L, B * S, enc_flat)

    # lstm_in = encode(...).diff(dim=0)
    lstm_in = jnp.diff(enc, axis=0)                           # (L-1, B*S, enc_flat)

    # advance(): fused single-layer LSTM; hn.sum(dim=0) == final hidden state.
    hT = lstm_last_hidden(lstm_in, exec_params["lstm_wih"],
                          exec_params["lstm_whh"], exec_params["lstm_b"],
                          enc_flat)                           # (B*S, enc_flat)

    # decode() + matter_normalize(): fused decoder MLP + per-(batch, matter) mean.
    out = decoder_norm_forward(hT, exec_params["decoder"], M, d3, S)  # (B*S, M*128)
    pm = out.reshape(B * S, M, 128)[:, :, :d3].reshape(B * S, M, d, d, d)
    return pm, None   # predicted_nonmatter is None (number_of_nonmatter_features = 0)


# ---------------------------------- main -------------------------------------

if __name__ == "__main__":
    M = 1                   # number_of_matters
    d = 4                   # matter_dim
    system_dim = (2, 2, 2)  # lattice cells
    B = 2                   # batch
    L = 4                   # sequence length
    ksizes = (3, 3)         # matter_encoder_conv_ae_kernal_size
    strides = (2, 1)        # matter_encoder_conv_ae_stride  -> encoded dim 3

    key = jax.random.PRNGKey(0)
    key, k_in = jax.random.split(key)
    S = system_dim[0] * system_dim[1] * system_dim[2]
    matter_sequence = jax.random.normal(k_in, (L, B, S * M * d ** 3), jnp.float32)

    params = init_params(key, M, d, ksizes, strides)
    exec_params = prepare_exec_params(params, M, d, system_dim, ksizes, strides)

    fwd = jax.jit(functools.partial(
        lattice_md_forward, M=M, d=d, system_dim=system_dim))
    predicted_matter, predicted_nonmatter = fwd(exec_params, matter_sequence)
    jax.block_until_ready(predicted_matter)

    assert predicted_matter.shape == (B * S, M, d, d, d)
    assert predicted_nonmatter is None
    print("KERNEL_OK")
</pallas_src>

<mosaic_0001>
module attributes {stable_mosaic.version = 11 : i64} {
  func.func @_lstm_kernel(%arg0: i32, %arg1: i32, %arg2: memref<1x8x27xf32, #tpu.memory_space<vmem>>, %arg3: memref<27x512xbf16, #tpu.memory_space<vmem>>, %arg4: memref<128x512xbf16, #tpu.memory_space<vmem>>, %arg5: memref<1x512xf32, #tpu.memory_space<vmem>>, %arg6: memref<8x128xf32, #tpu.memory_space<vmem>>, %arg7: memref<8x128xf32, #tpu.memory_space<vmem>>, %arg8: memref<8x128xf32, #tpu.memory_space<vmem>>) attributes {dimension_semantics = [#tpu.dimension_semantics<parallel>, #tpu.dimension_semantics<arbitrary>], iteration_bounds = array<i64: 2, 3>, scalar_prefetch = 0 : i64, scratch_operands = 2 : i64, tpu.core_type = #tpu.core_type<tc>, window_params = [{transform_indices = @transform_0, window_bounds = array<i64: 1, 8, 27>}, {pipeline_mode = #tpu.pipeline_mode<synchronous>, transform_indices = @transform_1, window_bounds = array<i64: 27, 512>}, {pipeline_mode = #tpu.pipeline_mode<synchronous>, transform_indices = @transform_2, window_bounds = array<i64: 128, 512>}, {pipeline_mode = #tpu.pipeline_mode<synchronous>, transform_indices = @transform_3, window_bounds = array<i64: 1, 512>}, {transform_indices = @transform_4, window_bounds = array<i64: 8, 128>}]} {
    %c0_i32 = arith.constant 0 : i32
    %0 = arith.cmpi eq, %arg1, %c0_i32 : i32
    %1 = arith.extui %0 : i1 to i32
    %c0_i32_0 = arith.constant 0 : i32
    %2 = arith.cmpi ne, %1, %c0_i32_0 : i32
    scf.if %2 {
      %cst_22 = arith.constant 0.000000e+00 : f32
      %47 = vector.broadcast %cst_22 : f32 to vector<8x128xf32>
      %c0_23 = arith.constant 0 : index
      %c0_24 = arith.constant 0 : index
      %48 = vector.load %arg7[%c0_23, %c0_24] : memref<8x128xf32, #tpu.memory_space<vmem>>, vector<8x128xf32>
      tpu.vector_store %arg7[%c0_23, %c0_24], %47 {strides = array<i32>} : memref<8x128xf32, #tpu.memory_space<vmem>>, vector<8x128xf32>,
      %cst_25 = arith.constant 0.000000e+00 : f32
      %49 = vector.broadcast %cst_25 : f32 to vector<8x128xf32>
      %c0_26 = arith.constant 0 : index
      %c0_27 = arith.constant 0 : index
      %50 = vector.load %arg8[%c0_26, %c0_27] : memref<8x128xf32, #tpu.memory_space<vmem>>, vector<8x128xf32>
      tpu.vector_store %arg8[%c0_26, %c0_27], %49 {strides = array<i32>} : memref<8x128xf32, #tpu.memory_space<vmem>>, vector<8x128xf32>,
    } else {
    }
    %c0 = arith.constant 0 : index
    %c0_1 = arith.constant 0 : index
    %c0_2 = arith.constant 0 : index
    %3 = vector.load %arg2[%c0, %c0_1, %c0_2] : memref<1x8x27xf32, #tpu.memory_space<vmem>>, vector<1x8x27xf32>
    %4 = vector.shape_cast %3 : vector<1x8x27xf32> to vector<8x27xf32>
    %5 = arith.truncf %4 : vector<8x27xf32> to vector<8x27xbf16>
    %c0_3 = arith.constant 0 : index
    %c0_4 = arith.constant 0 : index
    %6 = vector.load %arg7[%c0_3, %c0_4] : memref<8x128xf32, #tpu.memory_space<vmem>>, vector<8x128xf32>
    %7 = arith.truncf %6 : vector<8x128xf32> to vector<8x128xbf16>
    %c0_5 = arith.constant 0 : index
    %c0_6 = arith.constant 0 : index
    %8 = vector.load %arg3[%c0_5, %c0_6] : memref<27x512xbf16, #tpu.memory_space<vmem>>, vector<27x512xbf16>
    %cst = arith.constant dense<0.000000e+00> : vector<8x512xf32>
    %9 = tpu.matmul %5, %8, %cst {dimension_numbers = #tpu.dot_dimension_numbers<[1], [0], [0], [1], [0, 0, 1, 1], [], []>} : vector<8x27xbf16>, vector<27x512xbf16>, vector<8x512xf32> -> vector<8x512xf32>
    %c0_7 = arith.constant 0 : index
    %c0_8 = arith.constant 0 : index
    %10 = vector.load %arg5[%c0_7, %c0_8] : memref<1x512xf32, #tpu.memory_space<vmem>>, vector<1x512xf32>
    %11 = vector.broadcast %10 : vector<1x512xf32> to vector<8x512xf32>
    %12 = arith.addf %9, %11 : vector<8x512xf32>
    %c0_9 = arith.constant 0 : index
    %c0_10 = arith.constant 0 : index
    %13 = vector.load %arg4[%c0_9, %c0_10] : memref<128x512xbf16, #tpu.memory_space<vmem>>, vector<128x512xbf16>
    %cst_11 = arith.constant dense<0.000000e+00> : vector<8x512xf32>
    %14 = tpu.matmul %7, %13, %cst_11 {dimension_numbers = #tpu.dot_dimension_numbers<[1], [0], [0], [1], [0, 0, 1, 1], [], []>} : vector<8x128xbf16>, vector<128x512xbf16>, vector<8x512xf32> -> vector<8x512xf32>
    %15 = arith.addf %12, %14 : vector<8x512xf32>
    %16 = vector.extract_strided_slice %15 {offsets = [0, 0], sizes = [8, 128], strides = [1, 1]} : vector<8x512xf32> to vector<8x128xf32>
    %17 = arith.negf %16 : vector<8x128xf32>
    %18 = math.exp %17 : vector<8x128xf32>
    %cst_12 = arith.constant 1.000000e+00 : f32
    %19 = vector.broadcast %cst_12 : f32 to vector<8x128xf32>
    %20 = arith.addf %19, %18 : vector<8x128xf32>
    %21 = arith.divf %19, %20 : vector<8x128xf32>
    %22 = vector.extract_strided_slice %15 {offsets = [0, 128], sizes = [8, 128], strides = [1, 1]} : vector<8x512xf32> to vector<8x128xf32>
    %23 = arith.negf %22 : vector<8x128xf32>
    %24 = math.exp %23 : vector<8x128xf32>
    %cst_13 = arith.constant 1.000000e+00 : f32
    %25 = vector.broadcast %cst_13 : f32 to vector<8x128xf32>
    %26 = arith.addf %25, %24 : vector<8x128xf32>
    %27 = arith.divf %25, %26 : vector<8x128xf32>
    %28 = vector.extract_strided_slice %15 {offsets = [0, 256], sizes = [8, 128], strides = [1, 1]} : vector<8x512xf32> to vector<8x128xf32>
    %29 = math.tanh %28 : vector<8x128xf32>
    %30 = vector.extract_strided_slice %15 {offsets = [0, 384], sizes = [8, 128], strides = [1, 1]} : vector<8x512xf32> to vector<8x128xf32>
    %31 = arith.negf %30 : vector<8x128xf32>
    %32 = math.exp %31 : vector<8x128xf32>
    %cst_14 = arith.constant 1.000000e+00 : f32
    %33 = vector.broadcast %cst_14 : f32 to vector<8x128xf32>
    %34 = arith.addf %33, %32 : vector<8x128xf32>
    %35 = arith.divf %33, %34 : vector<8x128xf32>
    %c0_15 = arith.constant 0 : index
    %c0_16 = arith.constant 0 : index
    %36 = vector.load %arg8[%c0_15, %c0_16] : memref<8x128xf32, #tpu.memory_space<vmem>>, vector<8x128xf32>
    %37 = arith.mulf %27, %36 : vector<8x128xf32>
    %38 = arith.mulf %21, %29 : vector<8x128xf32>
    %39 = arith.addf %37, %38 : vector<8x128xf32>
    %40 = math.tanh %39 : vector<8x128xf32>
    %41 = arith.mulf %35, %40 : vector<8x128xf32>
    %c0_17 = arith.constant 0 : index
    %c0_18 = arith.constant 0 : index
    %42 = vector.load %arg8[%c0_17, %c0_18] : memref<8x128xf32, #tpu.memory_space<vmem>>, vector<8x128xf32>
    tpu.vector_store %arg8[%c0_17, %c0_18], %39 {strides = array<i32>} : memref<8x128xf32, #tpu.memory_space<vmem>>, vector<8x128xf32>,
    %c0_19 = arith.constant 0 : index
    %c0_20 = arith.constant 0 : index
    %43 = vector.load %arg7[%c0_19, %c0_20] : memref<8x128xf32, #tpu.memory_space<vmem>>, vector<8x128xf32>
    tpu.vector_store %arg7[%c0_19, %c0_20], %41 {strides = array<i32>} : memref<8x128xf32, #tpu.memory_space<vmem>>, vector<8x128xf32>,
    %c2_i32 = arith.constant 2 : i32
    %44 = arith.cmpi eq, %arg1, %c2_i32 : i32
    %45 = arith.extui %44 : i1 to i32
    %c0_i32_21 = arith.constant 0 : i32
    %46 = arith.cmpi ne, %45, %c0_i32_21 : i32
    scf.if %46 {
      %c0_22 = arith.constant 0 : index
      %c0_23 = arith.constant 0 : index
      %47 = vector.load %arg6[%c0_22, %c0_23] : memref<8x128xf32, #tpu.memory_space<vmem>>, vector<8x128xf32>
      tpu.vector_store %arg6[%c0_22, %c0_23], %41 {strides = array<i32>} : memref<8x128xf32, #tpu.memory_space<vmem>>, vector<8x128xf32>,
    } else {
    }
    return
  }
  func.func @transform_0(%arg0: i32, %arg1: i32) -> (i32, i32, i32) {
    %c0_i32 = arith.constant 0 : i32
    %c0_i32_0 = arith.constant 0 : i32
    return %arg1, %arg0, %c0_i32 : i32, i32, i32
  }
  func.func @transform_1(%arg0: i32, %arg1: i32) -> (i32, i32) {
    %c0_i32 = arith.constant 0 : i32
    %c0_i32_0 = arith.constant 0 : i32
    %c0_i32_1 = arith.constant 0 : i32
    return %c0_i32, %c0_i32_0 : i32, i32
  }
  func.func @transform_2(%arg0: i32, %arg1: i32) -> (i32, i32) {
    %c0_i32 = arith.constant 0 : i32
    %c0_i32_0 = arith.constant 0 : i32
    %c0_i32_1 = arith.constant 0 : i32
    return %c0_i32, %c0_i32_0 : i32, i32
  }
  func.func @transform_3(%arg0: i32, %arg1: i32) -> (i32, i32) {
    %c0_i32 = arith.constant 0 : i32
    %c0_i32_0 = arith.constant 0 : i32
    %c0_i32_1 = arith.constant 0 : i32
    return %c0_i32, %c0_i32_0 : i32, i32
  }
  func.func @transform_4(%arg0: i32, %arg1: i32) -> (i32, i32) {
    %c0_i32 = arith.constant 0 : i32
    %c0_i32_0 = arith.constant 0 : i32
    return %arg0, %c0_i32 : i32, i32
  }
}

module attributes {stable_mosaic.version = 11 : i64} {
  func.func @_encoder_kernel(%arg0: i32, %arg1: memref<8x512xf32, #tpu.memory_space<vmem>>, %arg2: memref<512x1024xbf16, #tpu.memory_space<vmem>>, %arg3: memref<1x1024xf32, #tpu.memory_space<vmem>>, %arg4: memref<1024x256xbf16, #tpu.memory_space<vmem>>, %arg5: memref<1x256xf32, #tpu.memory_space<vmem>>, %arg6: memref<8x256xf32, #tpu.memory_space<vmem>>) attributes {dimension_semantics = [#tpu.dimension_semantics<parallel>], iteration_bounds = array<i64: 1>, scalar_prefetch = 0 : i64, scratch_operands = 0 : i64, tpu.core_type = #tpu.core_type<tc>, window_params = [{transform_indices = @transform_0, window_bounds = array<i64: 8, 512>}, {pipeline_mode = #tpu.pipeline_mode<synchronous>, transform_indices = @transform_1, window_bounds = array<i64: 512, 1024>}, {pipeline_mode = #tpu.pipeline_mode<synchronous>, transform_indices = @transform_2, window_bounds = array<i64: 1, 1024>}, {pipeline_mode = #tpu.pipeline_mode<synchronous>, transform_indices = @transform_3, window_bounds = array<i64: 1024, 256>}, {pipeline_mode = #tpu.pipeline_mode<synchronous>, transform_indices = @transform_4, window_bounds = array<i64: 1, 256>}, {transform_indices = @transform_5, window_bounds = array<i64: 8, 256>}]} {
    %c0 = arith.constant 0 : index
    %c0_0 = arith.constant 0 : index
    %0 = vector.load %arg1[%c0, %c0_0] : memref<8x512xf32, #tpu.memory_space<vmem>>, vector<8x512xf32>
    %1 = arith.truncf %0 : vector<8x512xf32> to vector<8x512xbf16>
    %c0_1 = arith.constant 0 : index
    %c0_2 = arith.constant 0 : index
    %2 = vector.load %arg2[%c0_1, %c0_2] : memref<512x1024xbf16, #tpu.memory_space<vmem>>, vector<512x1024xbf16>
    %c0_3 = arith.constant 0 : index
    %c0_4 = arith.constant 0 : index
    %3 = vector.load %arg3[%c0_3, %c0_4] : memref<1x1024xf32, #tpu.memory_space<vmem>>, vector<1x1024xf32>
    %cst = arith.constant dense<0.000000e+00> : vector<8x1024xf32>
    %4 = tpu.matmul %1, %2, %cst {dimension_numbers = #tpu.dot_dimension_numbers<[1], [0], [0], [1], [0, 0, 1, 1], [], []>} : vector<8x512xbf16>, vector<512x1024xbf16>, vector<8x1024xf32> -> vector<8x1024xf32>
    %5 = vector.broadcast %3 : vector<1x1024xf32> to vector<8x1024xf32>
    %6 = arith.addf %4, %5 : vector<8x1024xf32>
    %cst_5 = arith.constant 0.000000e+00 : f32
    %7 = vector.broadcast %cst_5 : f32 to vector<8x1024xf32>
    %8 = arith.maximumf %6, %7 : vector<8x1024xf32>
    %9 = arith.truncf %8 : vector<8x1024xf32> to vector<8x1024xbf16>
    %c0_6 = arith.constant 0 : index
    %c0_7 = arith.constant 0 : index
    %10 = vector.load %arg4[%c0_6, %c0_7] : memref<1024x256xbf16, #tpu.memory_space<vmem>>, vector<1024x256xbf16>
    %c0_8 = arith.constant 0 : index
    %c0_9 = arith.constant 0 : index
    %11 = vector.load %arg5[%c0_8, %c0_9] : memref<1x256xf32, #tpu.memory_space<vmem>>, vector<1x256xf32>
    %cst_10 = arith.constant dense<0.000000e+00> : vector<8x256xf32>
    %12 = tpu.matmul %9, %10, %cst_10 {dimension_numbers = #tpu.dot_dimension_numbers<[1], [0], [0], [1], [0, 0, 1, 1], [], []>} : vector<8x1024xbf16>, vector<1024x256xbf16>, vector<8x256xf32> -> vector<8x256xf32>
    %13 = vector.broadcast %11 : vector<1x256xf32> to vector<8x256xf32>
    %14 = arith.addf %12, %13 : vector<8x256xf32>
    %cst_11 = arith.constant 0.000000e+00 : f32
    %15 = vector.broadcast %cst_11 : f32 to vector<8x256xf32>
    %16 = arith.maximumf %14, %15 : vector<8x256xf32>
    %c0_12 = arith.constant 0 : index
    %c0_13 = arith.constant 0 : index
    %17 = vector.load %arg6[%c0_12, %c0_13] : memref<8x256xf32, #tpu.memory_space<vmem>>, vector<8x256xf32>
    tpu.vector_store %arg6[%c0_12, %c0_13], %16 {strides = array<i32>} : memref<8x256xf32, #tpu.memory_space<vmem>>, vector<8x256xf32>,
    return
  }
  func.func @transform_0(%arg0: i32) -> (i32, i32) {
    %c0_i32 = arith.constant 0 : i32
    %c0_i32_0 = arith.constant 0 : i32
    return %arg0, %c0_i32 : i32, i32
  }
  func.func @transform_1(%arg0: i32) -> (i32, i32) {
    %c0_i32 = arith.constant 0 : i32
    %c0_i32_0 = arith.constant 0 : i32
    %c0_i32_1 = arith.constant 0 : i32
    return %c0_i32, %c0_i32_0 : i32, i32
  }
  func.func @transform_2(%arg0: i32) -> (i32, i32) {
    %c0_i32 = arith.constant 0 : i32
    %c0_i32_0 = arith.constant 0 : i32
    %c0_i32_1 = arith.constant 0 : i32
    return %c0_i32, %c0_i32_0 : i32, i32
  }
  func.func @transform_3(%arg0: i32) -> (i32, i32) {
    %c0_i32 = arith.constant 0 : i32
    %c0_i32_0 = arith.constant 0 : i32
    %c0_i32_1 = arith.constant 0 : i32
    return %c0_i32, %c0_i32_0 : i32, i32
  }
  func.func @transform_4(%arg0: i32) -> (i32, i32) {
    %c0_i32 = arith.constant 0 : i32
    %c0_i32_0 = arith.constant 0 : i32
    %c0_i32_1 = arith.constant 0 : i32
    return %c0_i32, %c0_i32_0 : i32, i32
  }
  func.func @transform_5(%arg0: i32) -> (i32, i32) {
    %c0_i32 = arith.constant 0 : i32
    %c0_i32_0 = arith.constant 0 : i32
    return %arg0, %c0_i32 : i32, i32
  }
}

module attributes {stable_mosaic.version = 11 : i64} {
  func.func @_decoder_norm_kernel(%arg0: i32, %arg1: memref<8x27xf32, #tpu.memory_space<vmem>>, %arg2: memref<27x128xbf16, #tpu.memory_space<vmem>>, %arg3: memref<1x128xf32, #tpu.memory_space<vmem>>, %arg4: memref<128x128xbf16, #tpu.memory_space<vmem>>, %arg5: memref<1x128xf32, #tpu.memory_space<vmem>>, %arg6: memref<128x128xbf16, #tpu.memory_space<vmem>>, %arg7: memref<1x128xf32, #tpu.memory_space<vmem>>, %arg8: memref<128x128xbf16, #tpu.memory_space<vmem>>, %arg9: memref<1x128xf32, #tpu.memory_space<vmem>>, %arg10: memref<128x128xbf16, #tpu.memory_space<vmem>>, %arg11: memref<1x128xf32, #tpu.memory_space<vmem>>, %arg12: memref<8x128xf32, #tpu.memory_space<vmem>>) attributes {dimension_semantics = [#tpu.dimension_semantics<parallel>], iteration_bounds = array<i64: 2>, scalar_prefetch = 0 : i64, scratch_operands = 0 : i64, tpu.core_type = #tpu.core_type<tc>, window_params = [{transform_indices = @transform_0, window_bounds = array<i64: 8, 27>}, {pipeline_mode = #tpu.pipeline_mode<synchronous>, transform_indices = @transform_1, window_bounds = array<i64: 27, 128>}, {pipeline_mode = #tpu.pipeline_mode<synchronous>, transform_indices = @transform_2, window_bounds = array<i64: 1, 128>}, {pipeline_mode = #tpu.pipeline_mode<synchronous>, transform_indices = @transform_3, window_bounds = array<i64: 128, 128>}, {pipeline_mode = #tpu.pipeline_mode<synchronous>, transform_indices = @transform_4, window_bounds = array<i64: 1, 128>}, {pipeline_mode = #tpu.pipeline_mode<synchronous>, transform_indices = @transform_5, window_bounds = array<i64: 128, 128>}, {pipeline_mode = #tpu.pipeline_mode<synchronous>, transform_indices = @transform_6, window_bounds = array<i64: 1, 128>}, {pipeline_mode = #tpu.pipeline_mode<synchronous>, transform_indices = @transform_7, window_bounds = array<i64: 128, 128>}, {pipeline_mode = #tpu.pipeline_mode<synchronous>, transform_indices = @transform_8, window_bounds = array<i64: 1, 128>}, {pipeline_mode = #tpu.pipeline_mode<synchronous>, transform_indices = @transform_9, window_bounds = array<i64: 128, 128>}, {pipeline_mode = #tpu.pipeline_mode<synchronous>, transform_indices = @transform_10, window_bounds = array<i64: 1, 128>}, {transform_indices = @transform_11, window_bounds = array<i64: 8, 128>}]} {
    %c0 = arith.constant 0 : index
    %c0_0 = arith.constant 0 : index
    %0 = vector.load %arg1[%c0, %c0_0] : memref<8x27xf32, #tpu.memory_space<vmem>>, vector<8x27xf32>
    %1 = arith.truncf %0 : vector<8x27xf32> to vector<8x27xbf16>
    %c0_1 = arith.constant 0 : index
    %c0_2 = arith.constant 0 : index
    %2 = vector.load %arg2[%c0_1, %c0_2] : memref<27x128xbf16, #tpu.memory_space<vmem>>, vector<27x128xbf16>
    %c0_3 = arith.constant 0 : index
    %c0_4 = arith.constant 0 : index
    %3 = vector.load %arg3[%c0_3, %c0_4] : memref<1x128xf32, #tpu.memory_space<vmem>>, vector<1x128xf32>
    %cst = arith.constant dense<0.000000e+00> : vector<8x128xf32>
    %4 = tpu.matmul %1, %2, %cst {dimension_numbers = #tpu.dot_dimension_numbers<[1], [0], [0], [1], [0, 0, 1, 1], [], []>} : vector<8x27xbf16>, vector<27x128xbf16>, vector<8x128xf32> -> vector<8x128xf32>
    %5 = vector.broadcast %3 : vector<1x128xf32> to vector<8x128xf32>
    %6 = arith.addf %4, %5 : vector<8x128xf32>
    %7 = math.tanh %6 : vector<8x128xf32>
    %8 = arith.truncf %7 : vector<8x128xf32> to vector<8x128xbf16>
    %c0_5 = arith.constant 0 : index
    %c0_6 = arith.constant 0 : index
    %9 = vector.load %arg4[%c0_5, %c0_6] : memref<128x128xbf16, #tpu.memory_space<vmem>>, vector<128x128xbf16>
    %c0_7 = arith.constant 0 : index
    %c0_8 = arith.constant 0 : index
    %10 = vector.load %arg5[%c0_7, %c0_8] : memref<1x128xf32, #tpu.memory_space<vmem>>, vector<1x128xf32>
    %cst_9 = arith.constant dense<0.000000e+00> : vector<8x128xf32>
    %11 = tpu.matmul %8, %9, %cst_9 {dimension_numbers = #tpu.dot_dimension_numbers<[1], [0], [0], [1], [0, 0, 1, 1], [], []>} : vector<8x128xbf16>, vector<128x128xbf16>, vector<8x128xf32> -> vector<8x128xf32>
    %12 = vector.broadcast %10 : vector<1x128xf32> to vector<8x128xf32>
    %13 = arith.addf %11, %12 : vector<8x128xf32>
    %14 = math.tanh %13 : vector<8x128xf32>
    %15 = arith.truncf %14 : vector<8x128xf32> to vector<8x128xbf16>
    %c0_10 = arith.constant 0 : index
    %c0_11 = arith.constant 0 : index
    %16 = vector.load %arg6[%c0_10, %c0_11] : memref<128x128xbf16, #tpu.memory_space<vmem>>, vector<128x128xbf16>
    %c0_12 = arith.constant 0 : index
    %c0_13 = arith.constant 0 : index
    %17 = vector.load %arg7[%c0_12, %c0_13] : memref<1x128xf32, #tpu.memory_space<vmem>>, vector<1x128xf32>
    %cst_14 = arith.constant dense<0.000000e+00> : vector<8x128xf32>
    %18 = tpu.matmul %15, %16, %cst_14 {dimension_numbers = #tpu.dot_dimension_numbers<[1], [0], [0], [1], [0, 0, 1, 1], [], []>} : vector<8x128xbf16>, vector<128x128xbf16>, vector<8x128xf32> -> vector<8x128xf32>
    %19 = vector.broadcast %17 : vector<1x128xf32> to vector<8x128xf32>
    %20 = arith.addf %18, %19 : vector<8x128xf32>
    %21 = math.tanh %20 : vector<8x128xf32>
    %22 = arith.truncf %21 : vector<8x128xf32> to vector<8x128xbf16>
    %c0_15 = arith.constant 0 : index
    %c0_16 = arith.constant 0 : index
    %23 = vector.load %arg8[%c0_15, %c0_16] : memref<128x128xbf16, #tpu.memory_space<vmem>>, vector<128x128xbf16>
    %c0_17 = arith.constant 0 : index
    %c0_18 = arith.constant 0 : index
    %24 = vector.load %arg9[%c0_17, %c0_18] : memref<1x128xf32, #tpu.memory_space<vmem>>, vector<1x128xf32>
    %cst_19 = arith.constant dense<0.000000e+00> : vector<8x128xf32>
    %25 = tpu.matmul %22, %23, %cst_19 {dimension_numbers = #tpu.dot_dimension_numbers<[1], [0], [0], [1], [0, 0, 1, 1], [], []>} : vector<8x128xbf16>, vector<128x128xbf16>, vector<8x128xf32> -> vector<8x128xf32>
    %26 = vector.broadcast %24 : vector<1x128xf32> to vector<8x128xf32>
    %27 = arith.addf %25, %26 : vector<8x128xf32>
    %28 = math.tanh %27 : vector<8x128xf32>
    %29 = arith.truncf %28 : vector<8x128xf32> to vector<8x128xbf16>
    %c0_20 = arith.constant 0 : index
    %c0_21 = arith.constant 0 : index
    %30 = vector.load %arg10[%c0_20, %c0_21] : memref<128x128xbf16, #tpu.memory_space<vmem>>, vector<128x128xbf16>
    %c0_22 = arith.constant 0 : index
    %c0_23 = arith.constant 0 : index
    %31 = vector.load %arg11[%c0_22, %c0_23] : memref<1x128xf32, #tpu.memory_space<vmem>>, vector<1x128xf32>
    %cst_24 = arith.constant dense<0.000000e+00> : vector<8x128xf32>
    %32 = tpu.matmul %29, %30, %cst_24 {dimension_numbers = #tpu.dot_dimension_numbers<[1], [0], [0], [1], [0, 0, 1, 1], [], []>} : vector<8x128xbf16>, vector<128x128xbf16>, vector<8x128xf32> -> vector<8x128xf32>
    %33 = vector.broadcast %31 : vector<1x128xf32> to vector<8x128xf32>
    %34 = arith.addf %32, %33 : vector<8x128xf32>
    %35 = vector.extract_strided_slice %34 {offsets = [0, 0], sizes = [8, 64], strides = [1, 1]} : vector<8x128xf32> to vector<8x64xf32>
    %36 = vector.shape_cast %35 : vector<8x64xf32> to vector<1x8x64xf32>
    %cst_25 = arith.constant dense<0.000000e+00> : vector<1xf32>
    %37 = vector.multi_reduction <add>, %36, %cst_25 [1, 2] : vector<1x8x64xf32> to vector<1xf32>
    %38 = vector.shape_cast %37 : vector<1xf32> to vector<1x1x1xf32>
    %39 = vector.extract %38[0, 0, 0] : f32 from vector<1x1x1xf32>
    %cst_26 = arith.constant 5.120000e+02 : f32
    %40 = arith.divf %39, %cst_26 : f32
    %41 = vector.broadcast %40 : f32 to vector<8x128xf32>
    %42 = arith.subf %34, %41 : vector<8x128xf32>
    %c0_27 = arith.constant 0 : index
    %c0_28 = arith.constant 0 : index
    %43 = vector.load %arg12[%c0_27, %c0_28] : memref<8x128xf32, #tpu.memory_space<vmem>>, vector<8x128xf32>
    tpu.vector_store %arg12[%c0_27, %c0_28], %42 {strides = array<i32>} : memref<8x128xf32, #tpu.memory_space<vmem>>, vector<8x128xf32>,
    return
  }
  func.func @transform_0(%arg0: i32) -> (i32, i32) {
    %c0_i32 = arith.constant 0 : i32
    %c0_i32_0 = arith.constant 0 : i32
    return %arg0, %c0_i32 : i32, i32
  }
  func.func @transform_1(%arg0: i32) -> (i32, i32) {
    %c0_i32 = arith.constant 0 : i32
    %c0_i32_0 = arith.constant 0 : i32
    %c0_i32_1 = arith.constant 0 : i32
    return %c0_i32, %c0_i32_0 : i32, i32
  }
  func.func @transform_2(%arg0: i32) -> (i32, i32) {
    %c0_i32 = arith.constant 0 : i32
    %c0_i32_0 = arith.constant 0 : i32
    %c0_i32_1 = arith.constant 0 : i32
    return %c0_i32, %c0_i32_0 : i32, i32
  }
  func.func @transform_3(%arg0: i32) -> (i32, i32) {
    %c0_i32 = arith.constant 0 : i32
    %c0_i32_0 = arith.constant 0 : i32
    %c0_i32_1 = arith.constant 0 : i32
    return %c0_i32, %c0_i32_0 : i32, i32
  }
  func.func @transform_4(%arg0: i32) -> (i32, i32) {
    %c0_i32 = arith.constant 0 : i32
    %c0_i32_0 = arith.constant 0 : i32
    %c0_i32_1 = arith.constant 0 : i32
    return %c0_i32, %c0_i32_0 : i32, i32
  }
  func.func @transform_5(%arg0: i32) -> (i32, i32) {
    %c0_i32 = arith.constant 0 : i32
    %c0_i32_0 = arith.constant 0 : i32
    %c0_i32_1 = arith.constant 0 : i32
    return %c0_i32, %c0_i32_0 : i32, i32
  }
  func.func @transform_6(%arg0: i32) -> (i32, i32) {
    %c0_i32 = arith.constant 0 : i32
    %c0_i32_0 = arith.constant 0 : i32
    %c0_i32_1 = arith.constant 0 : i32
    return %c0_i32, %c0_i32_0 : i32, i32
  }
  func.func @transform_7(%arg0: i32) -> (i32, i32) {
    %c0_i32 = arith.constant 0 : i32
    %c0_i32_0 = arith.constant 0 : i32
    %c0_i32_1 = arith.constant 0 : i32
    return %c0_i32, %c0_i32_0 : i32, i32
  }
  func.func @transform_8(%arg0: i32) -> (i32, i32) {
    %c0_i32 = arith.constant 0 : i32
    %c0_i32_0 = arith.constant 0 : i32
    %c0_i32_1 = arith.constant 0 : i32
    return %c0_i32, %c0_i32_0 : i32, i32
  }
  func.func @transform_9(%arg0: i32) -> (i32, i32) {
    %c0_i32 = arith.constant 0 : i32
    %c0_i32_0 = arith.constant 0 : i32
    %c0_i32_1 = arith.constant 0 : i32
    return %c0_i32, %c0_i32_0 : i32, i32
  }
  func.func @transform_10(%arg0: i32) -> (i32, i32) {
    %c0_i32 = arith.constant 0 : i32
    %c0_i32_0 = arith.constant 0 : i32
    %c0_i32_1 = arith.constant 0 : i32
    return %c0_i32, %c0_i32_0 : i32, i32
  }
  func.func @transform_11(%arg0: i32) -> (i32, i32) {
    %c0_i32 = arith.constant 0 : i32
    %c0_i32_0 = arith.constant 0 : i32
    return %arg0, %c0_i32 : i32, i32
  }
}

</mosaic_0001>

<bundles_post_ra>
// kernel: lattice_md_forward.4
= control target key start
LH: loop header
LB: loop body
LE: loop exit
PB: predicated region body
PF: predicated region fallthrough
CT: control target
= control target key end

     0   :  { %s1034_s15 = smov 0   ;;  %s1036_s16 = smov 0   ;;  %s1220_s0 = inlined_call_operand.vmem [shape: f32[3,16,27], index: 0, kind: input, shape index: {}]   ;;  %s1221_s1 = inlined_call_operand.vmem [shape: bf16[27,512], index: 1, kind: input, shape index: {}]   ;;  %s1222_s2 = inlined_call_operand.vmem [shape: bf16[128,512], index: 2, kind: input, shape index: {}]   ;;  %s1223_s3 = inlined_call_operand.vmem [shape: f32[1,512], index: 3, kind: input, shape index: {}]   ;;  %s1224_s4 = inlined_call_operand.vmem [shape: f32[16,128], index: 4, kind: output, shape index: {}]  }
   0x1   :  { %s1038_s17 = smov 0   ;;  %s1040_s18 = smov 0  }
   0x2   :  { %s1042_s19 = smov 0  }
   0x3 LB: > { %s23_s20 = sadd.s32 1, %s996_s17  ;;  %s26_s21 = sadd.s32 1, %s1000_s18  ;;  %s1004_s19 = sphi %s1042_s19, %s14_s19   ;;  %s1000_s18 = sphi %s1040_s18, %s1228_s18   ;;  %s996_s17 = sphi %s1038_s17, %s1227_s17   ;;  %s992_s16 = sphi %s1036_s16, %s1226_s16   ;;  %s988_s15 = sphi %s1034_s15, %s1225_s15  }
   0x4   : > { %p24_p0 = scmp.ge.s32.totalorder %s23_s20, 3  ;;  %p782_p1 = scmp.ge.s32.totalorder %s1004_s19, 1 }
   0x5   : > { %p179_p2 = scmp.lt.s32.totalorder %s1004_s19, 7 }
   0x6   : > { %s1230_s20 = smov (%p24_p0, %s23_s20), 0  ;;  %s1232_s21 = smov (!%p24_p0, %s26_s21), %s1000_s18 }
   0x7   : > { %p180_p3 = pnand %p782_p1, %p179_p2  ;;  %p28_p4 = scmp.ge.s32.totalorder %s1232_s21, 2 }
   0x8   : > { %p207_p5 = scmp.lt.s32.totalorder (!%p180_p3), %s988_s15, 2  ;;  %p209_p6 = scmp.lt.s32.totalorder (!%p180_p3), %s992_s16, 1 }
   0x9   : > { %s1234_s21 = smov (%p28_p4, %s1232_s21), 0  ;;  %183 = sbr.rel (%p180_p3) target bundleno = 325 (0x145), region = 36 }
   0xa   : > { %p786_p7 = scmp.ne.s32.totalorder (!%p180_p3), %s988_s15, 0 }
  0x10   : > { %s208_s22 = scalar_select %p207_p5, %s988_s15, 2 }
  0x11   : > { %s1236_s16 = smov (!%p209_p6, %s992_s16), 1  ;;  %223 = sbr.rel (%p786_p7) target bundleno = 24 (0x18), region = 40 }
  0x12   : > { %s783_s23 = sshll.u32 %s208_s22, 1  ;;  %s785_s25 = sshll.u32 %s1236_s16, 3  ;;  %v1006_v0 = vmov (!%p786_p7), 0.0  }
  0x13   : > { %s212_s24 = sadd.s32 %s783_s23, %s1236_s16  ;;  %s1071_s29 = scalar_lea.vmem %s1224_s4, %s785_s25  ;;  %224 = vst [vmem:[#allocation2] sm:$0xff] (!%p786_p7), %v1006_v0  ;;  %225 = vst [vmem:[#allocation3] sm:$0xff] (!%p786_p7), %v1006_v0 }
  0x14   : > { %s784_s26 = sshll.u32 %s212_s24, 3 }
  0x15   : > { %s1076_s6 = scalar_lea.vmem %s1220_s0, %s784_s26 }
  0x18 PF: > { %v890_v1 = vld [vmem:[%s1221_s1 + $0x4] ss:$16 sps:$4 sm:$0xff]   ;;  %vm300_vm0 = vcmask 1044480   ;;  %vm301_vm1 = vcmask 1045504   ;;  %v892_v2 = vld [vmem:[%s1221_s1 + $0xc] ss:$16 sps:$4 sm:$0xff]   ;;  %v240_v53 = vlaneseq }
  0x19   : > { %316 = vmatprep.subr.bf16.mxu0 %v890_v1  ;;  %v894_v3 = vld [vmem:[%s1221_s1] ss:$16 sps:$4 sm:$0xff]   ;;  %v895_v4 = vld [vmem:[%s1221_s1 + $0x8] ss:$16 sps:$4 sm:$0xff]   ;;  %v1007_v5 = vmov 65535   ;;  %v1008_v7 = vmov 0   ;;  %357 = vmatprep.subr.bf16.mxu1 %v892_v2 }
  0x1a   : > { %v302_v6 = vsel %vm300_vm0, 4294967295, %v1007_v5  ;;  %348 = vmatprep.mubr.bf16.mxu0 %v1008_v7  ;;  %v896_v8 = vld [vmem:[%s1221_s1 + $0x24] ss:$16 sps:$4 sm:$0x3f]   ;;  %389 = vmatprep.mubr.bf16.mxu1 %v1008_v7  ;;  %v902_v18 = vld [vmem:[%s1222_s2] ss:$16 sps:$4 sm:$0xff]  }
  0x1b   : > { %v303_v9 = vsel %vm301_vm1, %v302_v6, 0  ;;  %317 = vmatpush1.bf16.msra.mxu0 %v894_v3  ;;  %358 = vmatpush1.bf16.msra.mxu1 %v895_v4  ;;  %v898_v10 = vld [vmem:[%s1221_s1 + $0x2c] ss:$16 sps:$4 sm:$0x3f]   ;;  %v904_v17 = vld [vmem:[%s1222_s2 + $0x4] ss:$16 sps:$4 sm:$0xff]  }
  0x1c   : > { %v308_v11 = vand.u32 %v896_v8, %v303_v9  ;;  %v900_v12 = vld [vmem:[%s1221_s1 + $0x20] ss:$16 sps:$4 sm:$0x3f]   ;;  %v901_v13 = vld [vmem:[%s1221_s1 + $0x28] ss:$16 sps:$4 sm:$0x3f]   ;;  %v314_v14 = vand.u32 %v898_v10, %v303_v9 }
  0x1d   : > { %v305_v15 = vand.u32 %v900_v12, %v303_v9  ;;  %v311_v16 = vand.u32 %v901_v13, %v303_v9  ;;  %v907_v19 = vld [vmem:[%s1222_s2 + $0xc] ss:$16 sps:$4 sm:$0xff]   ;;  %v226_v20 = vld [vmem:[%s1076_s6] sm:$0xff]  ;;  %v905_v21 = vld [vmem:[%s1222_s2 + $0x8] ss:$16 sps:$4 sm:$0xff]   ;;  %vm296_vm2 = vcmask 220160  }
  0x1e   : > { %318 = vmatprep.subr.bf16.mxu0 %v308_v11  ;;  %359 = vmatprep.subr.bf16.mxu1 %v314_v14  ;;  %v227_v22 = vpack.c.bf16 %v226_v20, %v226_v20  ;;  %v910_v23 = vld [vmem:[%s1222_s2 + $0x24] ss:$16 sps:$4 sm:$0xff]   ;;  %v913_v24 = vld [vmem:[%s1222_s2 + $0x2c] ss:$16 sps:$4 sm:$0xff]   ;;  %v908_v25 = vld [vmem:[%s1222_s2 + $0x20] ss:$16 sps:$4 sm:$0xff]  }
  0x1f   : > { %319 = vmatpush1.bf16.msra.mxu0 %v305_v15  ;;  %360 = vmatpush1.bf16.msra.mxu1 %v311_v16  ;;  %v911_v26 = vld [vmem:[%s1222_s2 + $0x28] ss:$16 sps:$4 sm:$0xff]   ;;  %v916_v27 = vld [vmem:[%s1222_s2 + $0x44] ss:$16 sps:$4 sm:$0xff]   ;;  %v919_v28 = vld [vmem:[%s1222_s2 + $0x4c] ss:$16 sps:$4 sm:$0xff]  }
  0x20   : > { %590 = vmatprep.subr.bf16.mxu0 %v904_v17  ;;  %631 = vmatprep.subr.bf16.mxu1 %v907_v19  ;;  %v914_v29 = vld [vmem:[%s1222_s2 + $0x40] ss:$16 sps:$4 sm:$0xff]   ;;  %v917_v30 = vld [vmem:[%s1222_s2 + $0x48] ss:$16 sps:$4 sm:$0xff]   ;;  %v922_v31 = vld [vmem:[%s1222_s2 + $0x64] ss:$16 sps:$4 sm:$0xff]  }
  0x21   : > { %v925_v32 = vld [vmem:[%s1222_s2 + $0x6c] ss:$16 sps:$4 sm:$0xff]   ;;  %v920_v33 = vld [vmem:[%s1222_s2 + $0x60] ss:$16 sps:$4 sm:$0xff]   ;;  %v923_v34 = vld [vmem:[%s1222_s2 + $0x68] ss:$16 sps:$4 sm:$0xff]  }
  0x22   : > { %795 = vmatmul.mubr.msk.bf16.vlgmr.msra.gmra.mrb[0].mxu0 %vm296_vm2, %v227_v22  ;;  %796 = vmatmul.mubr.msk.bf16.vlgmr.msra.gmra.mrb[0].mxu1 %vm296_vm2, %v227_v22  ;;  %v928_v35 = vld [vmem:[%s1222_s2 + $0x84] ss:$16 sps:$4 sm:$0xff]   ;;  %v931_v36 = vld [vmem:[%s1222_s2 + $0x8c] ss:$16 sps:$4 sm:$0xff]   ;;  %v926_v37 = vld [vmem:[%s1222_s2 + $0x80] ss:$16 sps:$4 sm:$0xff]  }
  0x23   : > { %591 = vmatpush1.bf16.msra.mxu0 %v902_v18  ;;  %632 = vmatpush1.bf16.msra.mxu1 %v905_v21  ;;  %v929_v38 = vld [vmem:[%s1222_s2 + $0x88] ss:$16 sps:$4 sm:$0xff]   ;;  %v934_v39 = vld [vmem:[%s1222_s2 + $0xa4] ss:$16 sps:$4 sm:$0xff]   ;;  %v937_v40 = vld [vmem:[%s1222_s2 + $0xac] ss:$16 sps:$4 sm:$0xff]  }
  0x24   : > { %592 = vmatprep.subr.bf16.mxu0 %v910_v23  ;;  %633 = vmatprep.subr.bf16.mxu1 %v913_v24  ;;  %v932_v41 = vld [vmem:[%s1222_s2 + $0xa0] ss:$16 sps:$4 sm:$0xff]   ;;  %v935_v42 = vld [vmem:[%s1222_s2 + $0xa8] ss:$16 sps:$4 sm:$0xff]   ;;  %v940_v43 = vld [vmem:[%s1222_s2 + $0xc4] ss:$16 sps:$4 sm:$0xff]  }
  0x25   : > { %622 = vmatprep.mubr.bf16.mxu0 %v1008_v7  ;;  %663 = vmatprep.mubr.bf16.mxu1 %v1008_v7  ;;  %v943_v44 = vld [vmem:[%s1222_s2 + $0xcc] ss:$16 sps:$4 sm:$0xff]   ;;  %v938_v45 = vld [vmem:[%s1222_s2 + $0xc0] ss:$16 sps:$4 sm:$0xff]   ;;  %v941_v46 = vld [vmem:[%s1222_s2 + $0xc8] ss:$16 sps:$4 sm:$0xff]  }
  0x26   : > { %v946_v47 = vld [vmem:[%s1222_s2 + $0xe4] ss:$16 sps:$4 sm:$0xff]   ;;  %v949_v48 = vld [vmem:[%s1222_s2 + $0xec] ss:$16 sps:$4 sm:$0xff]   ;;  %v944_v49 = vld [vmem:[%s1222_s2 + $0xe0] ss:$16 sps:$4 sm:$0xff]  }
  0x27   : > { %593 = vmatpush1.bf16.msra.mxu0 %v908_v25  ;;  %634 = vmatpush1.bf16.msra.mxu1 %v911_v26  ;;  %v947_v50 = vld [vmem:[%s1222_s2 + $0xe8] ss:$16 sps:$4 sm:$0xff]   ;;  %v228_v51 = vld [vmem:[#allocation2] sm:$0xff]  ;;  %v241_v54 = vshrl.u32 %v240_v53, 7  ;;  %p832_p8 = scmp.ne.s32.totalorder %s988_s15, 2 }
  0x28   : > { %594 = vmatprep.subr.bf16.mxu0 %v916_v27  ;;  %635 = vmatprep.subr.bf16.mxu1 %v919_v28  ;;  %v229_v52 = vpack.c.bf16 %v228_v51, %v228_v51  ;;  %v238_v56 = vld [vmem:[%s1223_s3] sm:$0xf]  ;;  %v695_v21 = vld [vmem:[#allocation3] sm:$0xff] }
  0x29   : > { %v242_v55 = vsub.s32 0, %v241_v54  ;;  %v246_v57 = vsub.s32 1, %v241_v54  ;;  %v254_v62 = vsub.s32 3, %v241_v54  ;;  %v250_v10 = vsub.s32 2, %v241_v54 }
  0x2b   : > { %595 = vmatpush1.bf16.msra.mxu0 %v914_v29  ;;  %636 = vmatpush1.bf16.msra.mxu1 %v917_v30  ;;  %v243_v58 = vrot.slane %v238_v56, %v242_v55  ;;  %v247_v59 = vrot.slane %v238_v56, %v246_v57  ;;  %v255_v9 = vrot.slane %v238_v56, %v254_v62 }
  0x2c   : > { %596 = vmatprep.subr.bf16.mxu0 %v922_v31  ;;  %637 = vmatprep.subr.bf16.mxu1 %v925_v32  ;;  %v251_v12 = vrot.slane %v238_v56, %v250_v10 }
  0x2f   : > { %597 = vmatpush1.bf16.msra.mxu0 %v920_v33  ;;  %638 = vmatpush1.bf16.msra.mxu1 %v923_v34 }
  0x30   : > { %598 = vmatprep.subr.bf16.mxu0 %v928_v35  ;;  %639 = vmatprep.subr.bf16.mxu1 %v931_v36 }
  0x33   : > { %599 = vmatpush1.bf16.msra.mxu0 %v926_v37  ;;  %640 = vmatpush1.bf16.msra.mxu1 %v929_v38 }
  0x34   : > { %600 = vmatprep.subr.bf16.mxu0 %v934_v39  ;;  %641 = vmatprep.subr.bf16.mxu1 %v937_v40 }
  0x37   : > { %601 = vmatpush1.bf16.msra.mxu0 %v932_v41  ;;  %642 = vmatpush1.bf16.msra.mxu1 %v935_v42 }
  0x38   : > { %602 = vmatprep.subr.bf16.mxu0 %v940_v43  ;;  %643 = vmatprep.subr.bf16.mxu1 %v943_v44 }
  0x3b   : > { %603 = vmatpush1.bf16.msra.mxu0 %v938_v45  ;;  %644 = vmatpush1.bf16.msra.mxu1 %v941_v46 }
  0x3c   : > { %604 = vmatprep.subr.bf16.mxu0 %v946_v47  ;;  %645 = vmatprep.subr.bf16.mxu1 %v949_v48 }
  0x3f   : > { %605 = vmatpush1.bf16.msra.mxu0 %v944_v49  ;;  %646 = vmatpush1.bf16.msra.mxu1 %v947_v50 }
  0x42   : > { %623 = vmatmul.mubr.bf16.vlgmr.msra.gmra.mrb[0].mxu0 %v229_v52  ;;  %664 = vmatmul.mubr.bf16.vlgmr.msra.gmra.mrb[0].mxu1 %v229_v52 }
 0x115   : > { %v624_v60 = vpop.f32.mrb[0].mxu0  ;;  %v665_v61 = vpop.f32.mrb[0].mxu1 }
 0x116   : > { %v835_v63 = vadd.f32 %v624_v60, %v243_v58  ;;  %v626_v0 = vpop.f32.mrb[1].mxu0  ;;  %v667_v1 = vpop.f32.mrb[1].mxu1  ;;  %v837_v14 = vadd.f32 %v665_v61, %v251_v12 }
 0x117   : > { %v836_v2 = vadd.f32 %v626_v0, %v247_v59  ;;  %v628_v3 = vpop.f32.mrb[2].mxu0  ;;  %v669_v4 = vpop.f32.mrb[2].mxu1  ;;  %v838_v11 = vadd.f32 %v667_v1, %v255_v9 }
 0x118   : > { %v829_v5 = vmul.f32 -1.442695, %v835_v63  ;;  %v629_v6 = vpop.f32.mrb[3].mxu0  ;;  %v670_v7 = vpop.f32.mrb[3].mxu1 }
 0x119   : > { %v830_v8 = vmul.f32 -1.442695, %v836_v2  ;;  %v831_v13 = vmul.f32 -1.442695, %v838_v11 }
 0x11a   : > { %950 = vpow2.f32 %v829_v5 }
 0x11b   : > { %952 = vpow2.f32 %v830_v8 }
 0x11c   : > { %954 = vpow2.f32 %v831_v13 }
 0x11d   : > { %956 = vtanh.f32 %v837_v14 }
 0x124   : > { %v951_v15 = vpop.eup %950 }
 0x125   : > { %v953_v16 = vpop.eup %952  ;;  %v679_v17 = vadd.f32 1.0, %v951_v15 }
 0x126   : > { %v685_v18 = vadd.f32 1.0, %v953_v16  ;;  %v955_v19 = vpop.eup %954 }
 0x127   : > { %958 = vrcp.f32 %v679_v17  ;;  %v957_v20 = vpop.eup %956  ;;  %v692_v25 = vadd.f32 1.0, %v955_v19 }
 0x128   : > { %960 = vrcp.f32 %v685_v18 }
 0x129   : > { %962 = vrcp.f32 %v692_v25 }
 0x131   : > { %v959_v22 = vpop.eup %958 }
 0x132   : > { %v961_v23 = vpop.eup %960  ;;  %v697_v24 = vmul.f32 %v959_v22, %v957_v20 }
 0x133   : > { %v696_v26 = vmul.f32 %v961_v23, %v695_v21  ;;  %v963_v28 = vpop.eup %962 }
 0x135   : > { %v698_v27 = vadd.f32 %v697_v24, %v696_v26 }
 0x137   : > { %964 = vtanh.f32 %v698_v27  ;;  %701 = vst [vmem:[#allocation3] sm:$0xff] %v698_v27 }
 0x13e   : > { %706 = sbr.rel (%p832_p8) target bundleno = 325 (0x145), region = 44 }
 0x141   : > { %v965_v29 = vpop.eup %964 }
 0x142   : > { %v700_v30 = vmul.f32 %v965_v29, %v963_v28 }
 0x144   : > { %702 = vst [vmem:[#allocation2] sm:$0xff] %v700_v30  ;;  %707 = vst [vmem:[%s1071_s29] sm:$0xff] (!%p832_p8), %v700_v30 }
 0x145 PF: > { %s14_s19 = sadd.s32 1, %s1004_s19   ;;  %s1225_s15 = smov %s996_s17 }
 0x146   : > { %p11_p9 = scmp.ge.s32.totalorder %s14_s19, 8   ;;  %s1226_s16 = smov %s1000_s18 }
 0x147   : > { %s1227_s17 = smov %s1230_s20  ;;  %s1228_s18 = smov %s1234_s21 }
 0x148   :  { %13 = sbr.rel (!%p11_p9) target bundleno = 3 (0x3), region = 74 }

// kernel: lattice_md_forward.5
= control target key start
LH: loop header
LB: loop body
LE: loop exit
PB: predicated region body
PF: predicated region fallthrough
CT: control target
= control target key end

     0   :  { %s1282_s17 = smov 0   ;;  %s1467_s0 = inlined_call_operand.vmem [shape: f32[16,27], index: 0, kind: input, shape index: {}]   ;;  %s1468_s1 = inlined_call_operand.vmem [shape: bf16[27,128], index: 1, kind: input, shape index: {}]   ;;  %s1469_s2 = inlined_call_operand.vmem [shape: f32[1,128], index: 2, kind: input, shape index: {}]   ;;  %s1470_s3 = inlined_call_operand.vmem [shape: bf16[128,128], index: 3, kind: input, shape index: {}]   ;;  %s1471_s4 = inlined_call_operand.vmem [shape: f32[1,128], index: 4, kind: input, shape index: {}]   ;;  %s1472_s5 = inlined_call_operand.vmem [shape: bf16[128,128], index: 5, kind: input, shape index: {}]   ;;  %s1473_s6 = inlined_call_operand.vmem [shape: f32[1,128], index: 6, kind: input, shape index: {}]   ;;  %s1474_s7 = inlined_call_operand.vmem [shape: bf16[128,128], index: 7, kind: input, shape index: {}]   ;;  %s1475_s8 = inlined_call_operand.vmem [shape: f32[1,128], index: 8, kind: input, shape index: {}]   ;;  %s1476_s9 = inlined_call_operand.vmem [shape: bf16[128,128], index: 9, kind: input, shape index: {}]   ;;  %s1477_s10 = inlined_call_operand.vmem [shape: f32[1,128], index: 10, kind: input, shape index: {}]   ;;  %s1478_s11 = inlined_call_operand.vmem [shape: f32[16,128], index: 11, kind: output, shape index: {}]  }
   0x1 LB: > { %s980_s18 = sadd.s32 4294967295, %s1217_s17   ;;  %p984_p0 = scmp.ge.s32.totalorder %s1217_s17, 1  ;;  %s1217_s17 = sphi %s1282_s17, %s21_s17  }
   0x2   : > { %p336_p1 = scmp.lt.s32.totalorder %s1217_s17, 3 }
   0x4   : > { %p337_p2 = pnand %p984_p0, %p336_p1 }
   0x5   : > { %v1169_v0 = vld [vmem:[%s1468_s1] sm:$0xff] (!%p337_p2)   ;;  %v1219_v1 = vmov (!%p337_p2), 0.0   ;;  %v1170_v2 = vld [vmem:[%s1468_s1 + $0x8] sm:$0x3f] (!%p337_p2)   ;;  %vm411_vm0 = vcmask (!%p337_p2), 1044480   ;;  %vm412_vm1 = vcmask (!%p337_p2), 1045504  }
   0x6   : > { %340 = sbr.rel (%p337_p2) target bundleno = 1352 (0x548), region = 64  ;;  %1068 = vmatprep.subr.bf16.mxu0 (!%p337_p2), %v1219_v1  ;;  %1076 = vmatprep.subr.bf16.mxu1 (!%p337_p2), %v1219_v1  ;;  %p374_p3 = scmp.lt.s32.totalorder (!%p337_p2), %s980_s18, 1  ;;  %v1171_v3 = vld [vmem:[%s1470_s3] sm:$0xff] (!%p337_p2)   ;;  %v1220_v4 = vmov (!%p337_p2), 65535   ;;  %vm1221_vm2 = vmmov (!%p337_p2), 0   ;;  %v1172_v8 = vld [vmem:[%s1470_s3 + $0x8] sm:$0xff] (!%p337_p2)  }
   0x7   : > { %1069 = vmatpush3.bf16.msra.mxu0 (!%p337_p2), %v1169_v0  ;;  %v413_v5 = vsel (!%p337_p2), %vm411_vm0, 4294967295, %v1220_v4  ;;  %1072 = vmatprep.mubr.msk.bf16.mxu0 (!%p337_p2), %vm1221_vm2, %v1219_v1  ;;  %v1173_v9 = vld [vmem:[%s1470_s3 + $0x10] sm:$0xff] (!%p337_p2)   ;;  %vm407_vm3 = vcmask (!%p337_p2), 220160   ;;  %v1174_v12 = vld [vmem:[%s1470_s3 + $0x18] sm:$0xff] (!%p337_p2)   ;;  %v1175_v13 = vld [vmem:[%s1470_s3 + $0x20] sm:$0xff] (!%p337_p2)   ;;  %vm910_vm4 = vcmask (!%p337_p2), 523264  }
   0x8   : > { %1070 = vmatprep.subr.bf16.mxu0 (!%p337_p2), %v1219_v1  ;;  %v414_v6 = vsel (!%p337_p2), %vm412_vm1, %v413_v5, 0  ;;  %1077 = vmatpush3.bf16.msra.mxu1 (!%p337_p2), %v1171_v3  ;;  %v1176_v14 = vld [vmem:[%s1470_s3 + $0x28] sm:$0xff] (!%p337_p2)   ;;  %v1177_v15 = vld [vmem:[%s1470_s3 + $0x30] sm:$0xff] (!%p337_p2)   ;;  %v1178_v16 = vld [vmem:[%s1470_s3 + $0x38] sm:$0xff] (!%p337_p2)  }
   0x9   : > { %1092 = vmatprep.mubr.msk.bf16.mxu1 (!%p337_p2), %vm1221_vm2, %v1219_v1  ;;  %v416_v7 = vand.u32 (!%p337_p2), %v1170_v2, %v414_v6  ;;  %1078 = vmatprep.subr.bf16.mxu1 (!%p337_p2), %v1219_v1  ;;  %v1179_v17 = vld [vmem:[%s1472_s5] sm:$0xff] (!%p337_p2)   ;;  %v1180_v18 = vld [vmem:[%s1472_s5 + $0x8] sm:$0xff] (!%p337_p2)   ;;  %v1181_v19 = vld [vmem:[%s1472_s5 + $0x10] sm:$0xff] (!%p337_p2)  }
   0xa   : > { %v1182_v20 = vld [vmem:[%s1472_s5 + $0x18] sm:$0xff] (!%p337_p2)   ;;  %v987_v21 = vld [vmem:[%s1469_s2] ss:$0 sm:$0xff] (!%p337_p2)  ;;  %v1184_v30 = vld [vmem:[%s1472_s5 + $0x28] sm:$0xff] (!%p337_p2)  }
   0xb   : > { %1071 = vmatpush3.bf16.msra.mxu0 (!%p337_p2), %v416_v7  ;;  %v1183_v29 = vld [vmem:[%s1472_s5 + $0x20] sm:$0xff] (!%p337_p2)   ;;  %v1185_v31 = vld [vmem:[%s1472_s5 + $0x30] sm:$0xff] (!%p337_p2)   ;;  %v1186_v32 = vld [vmem:[%s1472_s5 + $0x38] sm:$0xff] (!%p337_p2)  }
   0xc   : > { %1079 = vmatpush3.bf16.msra.mxu1 (!%p337_p2), %v1172_v8  ;;  %1096 = vmatprep.subr.bf16.mxu0 (!%p337_p2), %v1219_v1  ;;  %v1187_v33 = vld [vmem:[%s1474_s7] sm:$0xff] (!%p337_p2)   ;;  %v1188_v34 = vld [vmem:[%s1474_s7 + $0x8] sm:$0xff] (!%p337_p2)   ;;  %v1189_v35 = vld [vmem:[%s1474_s7 + $0x10] sm:$0xff] (!%p337_p2)  }
   0xd   : > { %s1480_s18 = smov (!%p374_p3, %s980_s18), 1  ;;  %1080 = vmatprep.subr.bf16.mxu1 %v1219_v1  ;;  %v1190_v36 = vld [vmem:[%s1474_s7 + $0x18] sm:$0xff]   ;;  %v991_v37 = vld [vmem:[%s1471_s4] ss:$0 sm:$0xff]  ;;  %v1192_v46 = vld [vmem:[%s1474_s7 + $0x28] sm:$0xff]  }
   0xe   : > { %s985_s27 = sshll.u32 %s1480_s18, 3  ;;  %v1191_v45 = vld [vmem:[%s1474_s7 + $0x20] sm:$0xff]   ;;  %v1193_v47 = vld [vmem:[%s1474_s7 + $0x30] sm:$0xff]   ;;  %v1194_v48 = vld [vmem:[%s1474_s7 + $0x38] sm:$0xff]  }
   0xf   : > { %s377_s30 = scalar_lea.vmem %s1467_s0, %s985_s27  ;;  %v1195_v49 = vld [vmem:[%s1476_s9] sm:$0xff]   ;;  %v1196_v50 = vld [vmem:[%s1476_s9 + $0x8] sm:$0xff]   ;;  %v1197_v51 = vld [vmem:[%s1476_s9 + $0x10] sm:$0xff]   ;;  %s381_s24 = scalar_lea.vmem %s1478_s11, %s985_s27 }
  0x10   : > { %v383_v10 = vld [vmem:[%s377_s30] sm:$0xff]  ;;  %1081 = vmatpush3.bf16.msra.mxu1 %v1173_v9  ;;  %v1198_v52 = vld [vmem:[%s1476_s9 + $0x18] sm:$0xff]   ;;  %v1200_v62 = vld [vmem:[%s1476_s9 + $0x28] sm:$0xff]  }
  0x11   : > { %v384_v11 = vpack.c.bf16 %v383_v10, %v383_v10  ;;  %1082 = vmatprep.subr.bf16.mxu1 %v1219_v1  ;;  %v1000_v53 = vld [vmem:[%s1473_s6] ss:$0 sm:$0xff]  ;;  %v1201_v63 = vld [vmem:[%s1476_s9 + $0x30] sm:$0xff]   ;;  %v1202_v0 = vld [vmem:[%s1476_s9 + $0x38] sm:$0xff]  }
  0x12   : > { %v1199_v61 = vld [vmem:[%s1476_s9 + $0x20] sm:$0xff]  }
  0x13   : > { %1073 = vmatmul.mubr.msk.bf16.vlgmr.msra.gmra.mrb[0].mxu0 %vm407_vm3, %v384_v11  ;;  %v1009_v2 = vld [vmem:[%s1475_s8] ss:$0 sm:$0xff] }
  0x14   : > { %1112 = vmatprep.mubr.msk.bf16.mxu0 %vm1221_vm2, %v1219_v1  ;;  %1083 = vmatpush3.bf16.msra.mxu1 %v1174_v12 }
  0x15   : > { %1084 = vmatprep.subr.bf16.mxu1 %v1219_v1  ;;  %1097 = vmatpush3.bf16.msra.mxu0 %v1179_v17 }
  0x16   : > { %1098 = vmatprep.subr.bf16.mxu0 %v1219_v1 }
  0x18   : > { %1085 = vmatpush3.bf16.msra.mxu1 %v1175_v13 }
  0x19   : > { %1086 = vmatprep.subr.bf16.mxu1 %v1219_v1  ;;  %1099 = vmatpush3.bf16.msra.mxu0 %v1180_v18 }
  0x1a   : > { %1100 = vmatprep.subr.bf16.mxu0 %v1219_v1 }
  0x1c   : > { %1087 = vmatpush3.bf16.msra.mxu1 %v1176_v14 }
  0x1d   : > { %1088 = vmatprep.subr.bf16.mxu1 %v1219_v1  ;;  %1101 = vmatpush3.bf16.msra.mxu0 %v1181_v19 }
  0x1e   : > { %1102 = vmatprep.subr.bf16.mxu0 %v1219_v1 }
  0x20   : > { %1089 = vmatpush3.bf16.msra.mxu1 %v1177_v15 }
  0x21   : > { %1090 = vmatprep.subr.bf16.mxu1 %v1219_v1  ;;  %1103 = vmatpush3.bf16.msra.mxu0 %v1182_v20 }
  0x22   : > { %1104 = vmatprep.subr.bf16.mxu0 %v1219_v1 }
  0x24   : > { %1091 = vmatpush3.bf16.msra.mxu1 %v1178_v16 }
  0x25   : > { %1116 = vmatprep.subr.bf16.mxu1 %v1219_v1  ;;  %1105 = vmatpush3.bf16.msra.mxu0 %v1183_v29 }
  0x26   : > { %1106 = vmatprep.subr.bf16.mxu0 %v1219_v1 }
  0x29   : > { %1107 = vmatpush3.bf16.msra.mxu0 %v1184_v30 }
  0x2a   : > { %1108 = vmatprep.subr.bf16.mxu0 %v1219_v1 }
  0x2d   : > { %1109 = vmatpush3.bf16.msra.mxu0 %v1185_v31 }
  0x2e   : > { %1110 = vmatprep.subr.bf16.mxu0 %v1219_v1 }
  0x31   : > { %1111 = vmatpush3.bf16.msra.mxu0 %v1186_v32 }
  0x32   : > { %1136 = vmatprep.subr.bf16.mxu0 %v1219_v1 }
  0xe6   : > { %v452_v22 = vpop.f32.mrb[0].mxu0 }
  0xe7   : > { %v453_v23 = vadd.f32 %v987_v21, %v452_v22  ;;  %v1074_v24 = vpop.f32.mrb[1].mxu0 }
  0xe8   : > { %v455_v25 = vpop.f32.mrb[2].mxu0 }
  0xe9   : > { %1203 = vtanh.f32 %v453_v23  ;;  %v1075_v26 = vpop.f32.mrb[3].mxu0 }
  0xf3   : > { %v1204_v27 = vpop.eup %1203 }
  0xf4   : > { %v459_v28 = vpack.c.bf16 %v1204_v27, %v1204_v27 }
  0xf6   : > { %1093 = vmatmul.mubr.bf16.vlgmr.msra.gmra.mrb[0].mxu1 %v459_v28 }
  0xf7   : > { %1132 = vmatprep.mubr.msk.bf16.mxu1 %vm1221_vm2, %v1219_v1  ;;  %1117 = vmatpush3.bf16.msra.mxu1 %v1187_v33 }
  0xf8   : > { %1118 = vmatprep.subr.bf16.mxu1 %v1219_v1 }
  0xfb   : > { %1119 = vmatpush3.bf16.msra.mxu1 %v1188_v34 }
  0xfc   : > { %1120 = vmatprep.subr.bf16.mxu1 %v1219_v1 }
  0xff   : > { %1121 = vmatpush3.bf16.msra.mxu1 %v1189_v35 }
 0x100   : > { %1122 = vmatprep.subr.bf16.mxu1 %v1219_v1 }
 0x103   : > { %1123 = vmatpush3.bf16.msra.mxu1 %v1190_v36 }
 0x104   : > { %1124 = vmatprep.subr.bf16.mxu1 %v1219_v1 }
 0x107   : > { %1125 = vmatpush3.bf16.msra.mxu1 %v1191_v45 }
 0x108   : > { %1126 = vmatprep.subr.bf16.mxu1 %v1219_v1 }
 0x10b   : > { %1127 = vmatpush3.bf16.msra.mxu1 %v1192_v46 }
 0x10c   : > { %1128 = vmatprep.subr.bf16.mxu1 %v1219_v1 }
 0x10f   : > { %1129 = vmatpush3.bf16.msra.mxu1 %v1193_v47 }
 0x110   : > { %1130 = vmatprep.subr.bf16.mxu1 %v1219_v1 }
 0x113   : > { %1131 = vmatpush3.bf16.msra.mxu1 %v1194_v48 }
 0x1c9   : > { %v565_v38 = vpop.f32.mrb[0].mxu1 }
 0x1ca   : > { %v566_v39 = vadd.f32 %v991_v37, %v565_v38  ;;  %v1094_v40 = vpop.f32.mrb[1].mxu1 }
 0x1cb   : > { %v568_v41 = vpop.f32.mrb[2].mxu1 }
 0x1cc   : > { %1205 = vtanh.f32 %v566_v39  ;;  %v1095_v42 = vpop.f32.mrb[3].mxu1 }
 0x1d6   : > { %v1206_v43 = vpop.eup %1205 }
 0x1d7   : > { %v572_v44 = vpack.c.bf16 %v1206_v43, %v1206_v43 }
 0x1d9   : > { %1113 = vmatmul.mubr.bf16.vlgmr.msra.gmra.mrb[4].mxu0 %v572_v44 }
 0x1da   : > { %1152 = vmatprep.mubr.msk.bf16.mxu0 %vm1221_vm2, %v1219_v1  ;;  %1137 = vmatpush3.bf16.msra.mxu0 %v1195_v49 }
 0x1db   : > { %1138 = vmatprep.subr.bf16.mxu0 %v1219_v1 }
 0x1de   : > { %1139 = vmatpush3.bf16.msra.mxu0 %v1196_v50 }
 0x1df   : > { %1140 = vmatprep.subr.bf16.mxu0 %v1219_v1 }
 0x1e2   : > { %1141 = vmatpush3.bf16.msra.mxu0 %v1197_v51 }
 0x1e3   : > { %1142 = vmatprep.subr.bf16.mxu0 %v1219_v1 }
 0x1e6   : > { %1143 = vmatpush3.bf16.msra.mxu0 %v1198_v52 }
 0x1e7   : > { %1144 = vmatprep.subr.bf16.mxu0 %v1219_v1 }
 0x1ea   : > { %1145 = vmatpush3.bf16.msra.mxu0 %v1199_v61 }
 0x1eb   : > { %1146 = vmatprep.subr.bf16.mxu0 %v1219_v1 }
 0x1ee   : > { %1147 = vmatpush3.bf16.msra.mxu0 %v1200_v62 }
 0x1ef   : > { %1148 = vmatprep.subr.bf16.mxu0 %v1219_v1 }
 0x1f2   : > { %1149 = vmatpush3.bf16.msra.mxu0 %v1201_v63 }
 0x1f3   : > { %1150 = vmatprep.subr.bf16.mxu0 %v1219_v1  ;;  %v1018_v1 = vld [vmem:[%s1477_s10] ss:$0 sm:$0xff] }
 0x1f6   : > { %1151 = vmatpush3.bf16.msra.mxu0 %v1202_v0 }
 0x2ac   : > { %v678_v54 = vpop.f32.mrb[4].mxu0 }
 0x2ad   : > { %v679_v55 = vadd.f32 %v1000_v53, %v678_v54  ;;  %v1114_v56 = vpop.f32.mrb[5].mxu0 }
 0x2ae   : > { %v681_v57 = vpop.f32.mrb[6].mxu0 }
 0x2af   : > { %1207 = vtanh.f32 %v679_v55  ;;  %v1115_v58 = vpop.f32.mrb[7].mxu0 }
 0x2b9   : > { %v1208_v59 = vpop.eup %1207 }
 0x2ba   : > { %v685_v60 = vpack.c.bf16 %v1208_v59, %v1208_v59 }
 0x2bc   : > { %1133 = vmatmul.mubr.bf16.vlgmr.msra.gmra.mrb[4].mxu1 %v685_v60 }
 0x38f   : > { %v791_v3 = vpop.f32.mrb[4].mxu1 }
 0x390   : > { %v792_v4 = vadd.f32 %v1009_v2, %v791_v3  ;;  %v1134_v5 = vpop.f32.mrb[5].mxu1 }
 0x391   : > { %v794_v6 = vpop.f32.mrb[6].mxu1 }
 0x392   : > { %1209 = vtanh.f32 %v792_v4  ;;  %v1135_v7 = vpop.f32.mrb[7].mxu1 }
 0x39c   : > { %v1210_v8 = vpop.eup %1209 }
 0x39d   : > { %v798_v9 = vpack.c.bf16 %v1210_v8, %v1210_v8 }
 0x39f   : > { %1153 = vmatmul.mubr.bf16.vlgmr.msra.gmra.mrb[8].mxu0 %v798_v9 }
 0x472   : > { %v904_v10 = vpop.f32.mrb[8].mxu0 }
 0x473   : > { %v905_v11 = vadd.f32 %v1018_v1, %v904_v10  ;;  %v1154_v12 = vpop.f32.mrb[9].mxu0 }
 0x474   : > { %v907_v13 = vpop.f32.mrb[10].mxu0 }
 0x475   : > { %v1155_v14 = vpop.f32.mrb[11].mxu0  ;;  %v911_v15 = vsel %vm910_vm4, %v905_v11, 0.0 }
 0x476   : > { %912 = vadd.xlane.f32.xlu0 %v911_v15 }
 0x503   : > { %v913_v16 = vpop.xlane.xlu0 %912 }
 0x504   : > { %v914_v17 = vrot.slane %v913_v16, 4 }
 0x506   : > { %v915_v18 = vadd.f32 %v914_v17, %v913_v16 }
 0x508   : > { %v916_v19 = vrot.slane %v915_v18, 2 }
 0x50a   : > { %v917_v20 = vadd.f32 %v916_v19, %v915_v18 }
 0x50c   : > { %v918_v21 = vrot.slane %v917_v20, 1 }
 0x50e   : > { %v919_v22 = vadd.f32 %v918_v21, %v917_v20 }
 0x510   : > { %1156 = vpush %v919_v22 }
 0x541   : > { %s1157_s20 = spop %1156 }
 0x542   : > { %s923_s21 = smul.f32 0.001953125, %s1157_s20 }
 0x544   : > { %v924_v23 = vstv %s923_s21 }
 0x545   : > { %v925_v24 = vsub.f32 %v905_v11, %v924_v23 }
 0x547   : > { %926 = vst [vmem:[%s381_s24] sm:$0xff] %v925_v24 }
 0x548 PF: > { %s21_s17 = sadd.s32 1, %s1217_s17  }
 0x549   : > { %p18_p4 = scmp.ge.s32.totalorder %s21_s17, 4  }
 0x54b   :  { %20 = sbr.rel (!%p18_p4) target bundleno = 1 (0x1), region = 94 }

// kernel: lattice_md_forward.3
= control target key start
LH: loop header
LB: loop body
LE: loop exit
PB: predicated region body
PF: predicated region fallthrough
CT: control target
= control target key end

     0   :  { %10 = vsyncpa [#allocation3], 0  ;;  %s3742_s0 = inlined_call_operand.vmem [shape: f32[8,512], index: 0, kind: input, shape index: {}]   ;;  %s3743_s1 = inlined_call_operand.hbm [shape: bf16[512,1024], index: 1, kind: input, shape index: {}]   ;;  %s3744_s2 = inlined_call_operand.vmem [shape: f32[1,1024], index: 2, kind: input, shape index: {}]   ;;  %s3745_s3 = inlined_call_operand.hbm [shape: bf16[1024,256], index: 3, kind: input, shape index: {}]   ;;  %s3746_s4 = inlined_call_operand.vmem [shape: f32[1,256], index: 4, kind: input, shape index: {}]   ;;  %s3747_s5 = inlined_call_operand.vmem [shape: f32[8,256], index: 5, kind: output, shape index: {}]  }
   0x1   :  { %11 = vsyncpa [#allocation5], 0  ;;  %s3600_s18 = smov [#allocation2]   ;;  %s3552_s22 = scalar_lea.hbm %s3743_s1, 32768 }
   0x2   :  { %s19_s19 = sshll.u32 %s3600_s18, 4  ;;  %p3553_p0 = scmp.ne.s32.totalorder %s3743_s1, %s3552_s22  ;;  %s20_s19 = int_to_ptr.vmem [resolvable:$true] %s19_s19 }
   0x3   :  { %p3556_p1 = scmp.lt.u32.totalorder %s3552_s22, %s3743_s1 }
   0x5   :  { %p3558_p2 = pnand %p3556_p1, %p3553_p0 }
   0x7   :  { %3561 = shalt.err (!%p3558_p2)
}
   0x8   :  { %s3562_s27 = scalar_lea.vmem %s20_s19, 32768  ;;  %p3567_p4 = scmp.lt.s32.totalorder %s20_s19, %s20_s19 }
   0x9   :  { %p3563_p3 = scmp.ne.s32.totalorder %s20_s19, %s3562_s27  ;;  %p3568_p5 = scmp.lt.s32.totalorder %s3562_s27, %s3562_s27 }
   0xb   :  { %p3569_p6 = por %p3568_p5, %p3567_p4 }
   0xd   :  { %p3570_p7 = pnand %p3569_p6, %p3563_p3 }
   0xf   :  { %3573 = shalt.err (!%p3570_p7)
}
  0x10   :  { %s3601_s28 = smov 512   ;;  %s3602_s29 = smov 32  }
  0x11   :  { %25 = dma.hbm_to_vmem [thread:$0]  %s3743_s1, 32768, %s20_s19, [#allocation3], %s3601_s28, %s3601_s28, %s3602_s29  }
  0x12   :  { %s3603_s7 = smov [#allocation4]   ;;  %s3574_s11 = scalar_lea.hbm %s3745_s3, 16384 }
  0x13   :  { %s33_s8 = sshll.u32 %s3603_s7, 4  ;;  %p3575_p8 = scmp.ne.s32.totalorder %s3745_s3, %s3574_s11  ;;  %s34_s8 = int_to_ptr.vmem [resolvable:$true] %s33_s8 }
  0x14   :  { %p3578_p9 = scmp.lt.u32.totalorder %s3574_s11, %s3745_s3 }
  0x16   :  { %p3580_p10 = pnand %p3578_p9, %p3575_p8 }
  0x18   :  { %3583 = shalt.err (!%p3580_p10)
}
  0x19   :  { %s3584_s16 = scalar_lea.vmem %s34_s8, 16384  ;;  %p3589_p12 = scmp.lt.s32.totalorder %s34_s8, %s34_s8 }
  0x1a   :  { %p3585_p11 = scmp.ne.s32.totalorder %s34_s8, %s3584_s16  ;;  %p3590_p13 = scmp.lt.s32.totalorder %s3584_s16, %s3584_s16 }
  0x1c   :  { %p3591_p0 = por %p3590_p13, %p3589_p12 }
  0x1e   :  { %p3592_p1 = pnand %p3591_p0, %p3585_p11 }
  0x20   :  { %3595 = shalt.err (!%p3592_p1)
}
  0x21   :  { %s3604_s1 = smov 128   ;;  %s3605_s17 = smov 8  }
  0x22   :  { %39 = dma.hbm_to_vmem [thread:$0]  %s3745_s3, 16384, %s34_s8, [#allocation5], %s3604_s1, %s3604_s1, %s3605_s17  }
  0x23   :  { %3596 = dma.done.wait [#allocation3], 32768  }
  0x24   :  { %3597 = vsyncadd [#allocation3], 4294934528 }
  0x25   :  { %3598 = dma.done.wait [#allocation5], 16384  }
  0x26   :  { %3599 = vsyncadd [#allocation5], 4294950912  ;;  %v56_v0 = vld [vmem:[#allocation2] sm:$0xff]  ;;  %v49_v17 = vld [vmem:[%s3742_s0 + $0x8] sm:$0xff] }
  0x27   :  { %v60_v1 = vld [vmem:[#allocation2 + $0x20] sm:$0xff]  ;;  %v3663_v18 = vpack.c.bf16 %v49_v17, %v49_v17  ;;  %v58_v31 = vld [vmem:[#allocation2 + $0x10] sm:$0xff] }
  0x28   :  { %v64_v2 = vld [vmem:[#allocation2 + $0x40] sm:$0xff]  ;;  %v2933_v3 = vcombine.high %v56_v0, %v60_v1  ;;  %v2932_v4 = vcombine.low %v56_v0, %v60_v1  ;;  %v62_v32 = vld [vmem:[#allocation2 + $0x30] sm:$0xff] }
  0x29   :  { %v68_v5 = vld [vmem:[#allocation2 + $0x60] sm:$0xff]  ;;  %1666 = vmatprep.mubr.bf16.mxu1 %v3663_v18  ;;  %1830 = vmatprep.mubr.bf16.mxu0 %v3663_v18  ;;  %v2937_v33 = vcombine.high %v58_v31, %v62_v32  ;;  %v2936_v34 = vcombine.low %v58_v31, %v62_v32  ;;  %v66_v36 = vld [vmem:[#allocation2 + $0x50] sm:$0xff] }
  0x2a   :  { %v2941_v6 = vcombine.high %v64_v2, %v68_v5  ;;  %v72_v7 = vld [vmem:[#allocation2 + $0x80] sm:$0xff]  ;;  %1634 = vmatprep.subr.bf16.mxu1 %v2933_v3  ;;  %v2940_v9 = vcombine.low %v64_v2, %v68_v5  ;;  %v70_v37 = vld [vmem:[#allocation2 + $0x70] sm:$0xff] }
  0x2b   :  { %v76_v8 = vld [vmem:[#allocation2 + $0xa0] sm:$0xff]  ;;  %1635 = vmatpush1.bf16.msra.mxu1 %v2932_v4  ;;  %1798 = vmatprep.subr.bf16.mxu0 %v2937_v33  ;;  %v2945_v39 = vcombine.high %v66_v36, %v70_v37  ;;  %v74_v40 = vld [vmem:[#allocation2 + $0x90] sm:$0xff]  ;;  %v2944_v44 = vcombine.low %v66_v36, %v70_v37 }
  0x2c   :  { %1636 = vmatprep.subr.bf16.mxu1 %v2941_v6  ;;  %v2949_v10 = vcombine.high %v72_v7, %v76_v8  ;;  %v80_v11 = vld [vmem:[#allocation2 + $0xc0] sm:$0xff]  ;;  %v2948_v13 = vcombine.low %v72_v7, %v76_v8  ;;  %v78_v41 = vld [vmem:[#allocation2 + $0xb0] sm:$0xff]  ;;  %1799 = vmatpush1.bf16.msra.mxu0 %v2936_v34 }
  0x2d   :  { %v84_v12 = vld [vmem:[#allocation2 + $0xe0] sm:$0xff]  ;;  %1800 = vmatprep.subr.bf16.mxu0 %v2945_v39  ;;  %v2953_v45 = vcombine.high %v74_v40, %v78_v41  ;;  %v82_v47 = vld [vmem:[#allocation2 + $0xd0] sm:$0xff]  ;;  %v2952_v52 = vcombine.low %v74_v40, %v78_v41 }
  0x2e   :  { %v2957_v14 = vcombine.high %v80_v11, %v84_v12  ;;  %v88_v15 = vld [vmem:[#allocation2 + $0x100] sm:$0xff]  ;;  %v2956_v19 = vcombine.low %v80_v11, %v84_v12  ;;  %v86_v48 = vld [vmem:[#allocation2 + $0xf0] sm:$0xff] }
  0x2f   :  { %1637 = vmatpush1.bf16.msra.mxu1 %v2940_v9  ;;  %v92_v16 = vld [vmem:[#allocation2 + $0x120] sm:$0xff]  ;;  %v2961_v53 = vcombine.high %v82_v47, %v86_v48  ;;  %v90_v55 = vld [vmem:[#allocation2 + $0x110] sm:$0xff]  ;;  %v2960_v60 = vcombine.low %v82_v47, %v86_v48  ;;  %v51_v47 = vld [vmem:[%s3742_s0 + $0x18] sm:$0xff] }
  0x30   :  { %1638 = vmatprep.subr.bf16.mxu1 %v2949_v10  ;;  %v2965_v20 = vcombine.high %v88_v15, %v92_v16  ;;  %v96_v21 = vld [vmem:[#allocation2 + $0x140] sm:$0xff]  ;;  %v2964_v23 = vcombine.low %v88_v15, %v92_v16  ;;  %1801 = vmatpush1.bf16.msra.mxu0 %v2944_v44  ;;  %v94_v56 = vld [vmem:[#allocation2 + $0x130] sm:$0xff] }
  0x31   :  { %v100_v22 = vld [vmem:[#allocation2 + $0x160] sm:$0xff]  ;;  %1802 = vmatprep.subr.bf16.mxu0 %v2953_v45  ;;  %v2969_v61 = vcombine.high %v90_v55, %v94_v56  ;;  %v98_v1 = vld [vmem:[#allocation2 + $0x150] sm:$0xff]  ;;  %v2968_v4 = vcombine.low %v90_v55, %v94_v56 }
  0x32   :  { %v2973_v24 = vcombine.high %v96_v21, %v100_v22  ;;  %v104_v25 = vld [vmem:[#allocation2 + $0x180] sm:$0xff]  ;;  %v2972_v27 = vcombine.low %v96_v21, %v100_v22  ;;  %v102_v2 = vld [vmem:[#allocation2 + $0x170] sm:$0xff] }
  0x33   :  { %1639 = vmatpush1.bf16.msra.mxu1 %v2948_v13  ;;  %v108_v26 = vld [vmem:[#allocation2 + $0x1a0] sm:$0xff]  ;;  %v2977_v5 = vcombine.high %v98_v1, %v102_v2  ;;  %v106_v9 = vld [vmem:[#allocation2 + $0x190] sm:$0xff]  ;;  %v2976_v12 = vcombine.low %v98_v1, %v102_v2 }
  0x34   :  { %1640 = vmatprep.subr.bf16.mxu1 %v2957_v14  ;;  %v2981_v28 = vcombine.high %v104_v25, %v108_v26  ;;  %v112_v29 = vld [vmem:[#allocation2 + $0x1c0] sm:$0xff]  ;;  %v2980_v35 = vcombine.low %v104_v25, %v108_v26  ;;  %1803 = vmatpush1.bf16.msra.mxu0 %v2952_v52  ;;  %v110_v10 = vld [vmem:[#allocation2 + $0x1b0] sm:$0xff] }
  0x35   :  { %v116_v30 = vld [vmem:[#allocation2 + $0x1e0] sm:$0xff]  ;;  %1804 = vmatprep.subr.bf16.mxu0 %v2961_v53  ;;  %v2985_v13 = vcombine.high %v106_v9, %v110_v10  ;;  %v114_v17 = vld [vmem:[#allocation2 + $0x1d0] sm:$0xff]  ;;  %v2984_v21 = vcombine.low %v106_v9, %v110_v10 }
  0x36   :  { %v2989_v38 = vcombine.high %v112_v29, %v116_v30  ;;  %v120_v42 = vld [vmem:[#allocation2 + $0x200] sm:$0xff]  ;;  %v2988_v46 = vcombine.low %v112_v29, %v116_v30  ;;  %v122_v26 = vld [vmem:[#allocation2 + $0x210] sm:$0xff] }
  0x37   :  { %1641 = vmatpush1.bf16.msra.mxu1 %v2956_v19  ;;  %v124_v43 = vld [vmem:[#allocation2 + $0x220] sm:$0xff]  ;;  %v118_v19 = vld [vmem:[#allocation2 + $0x1f0] sm:$0xff] }
  0x38   :  { %1642 = vmatprep.subr.bf16.mxu1 %v2965_v20  ;;  %v2997_v49 = vcombine.high %v120_v42, %v124_v43  ;;  %v128_v50 = vld [vmem:[#allocation2 + $0x240] sm:$0xff]  ;;  %v2996_v54 = vcombine.low %v120_v42, %v124_v43  ;;  %1805 = vmatpush1.bf16.msra.mxu0 %v2960_v60  ;;  %v2993_v22 = vcombine.high %v114_v17, %v118_v19  ;;  %v130_v34 = vld [vmem:[#allocation2 + $0x250] sm:$0xff] }
  0x39   :  { %v132_v51 = vld [vmem:[#allocation2 + $0x260] sm:$0xff]  ;;  %1806 = vmatprep.subr.bf16.mxu0 %v2969_v61  ;;  %v2992_v29 = vcombine.low %v114_v17, %v118_v19  ;;  %v138_v42 = vld [vmem:[#allocation2 + $0x290] sm:$0xff]  ;;  %v3675_v61 = vpack.c.bf16 %v51_v47, %v51_v47 }
  0x3a   :  { %v3005_v57 = vcombine.high %v128_v50, %v132_v51  ;;  %v136_v58 = vld [vmem:[#allocation2 + $0x280] sm:$0xff]  ;;  %v3004_v62 = vcombine.low %v128_v50, %v132_v51  ;;  %v142_v43 = vld [vmem:[#allocation2 + $0x2b0] sm:$0xff] }
  0x3b   :  { %1643 = vmatpush1.bf16.msra.mxu1 %v2964_v23  ;;  %v140_v59 = vld [vmem:[#allocation2 + $0x2a0] sm:$0xff]  ;;  %v3017_v48 = vcombine.high %v138_v42, %v142_v43  ;;  %v146_v52 = vld [vmem:[#allocation2 + $0x2d0] sm:$0xff]  ;;  %v3016_v55 = vcombine.low %v138_v42, %v142_v43 }
  0x3c   :  { %1644 = vmatprep.subr.bf16.mxu1 %v2973_v24  ;;  %v144_v63 = vld [vmem:[#allocation2 + $0x2c0] sm:$0xff]  ;;  %v3013_v3 = vcombine.high %v136_v58, %v140_v59  ;;  %v3012_v6 = vcombine.low %v136_v58, %v140_v59  ;;  %1807 = vmatpush1.bf16.msra.mxu0 %v2968_v4  ;;  %v150_v53 = vld [vmem:[#allocation2 + $0x2f0] sm:$0xff] }
  0x3d   :  { %v148_v0 = vld [vmem:[#allocation2 + $0x2e0] sm:$0xff]  ;;  %1808 = vmatprep.subr.bf16.mxu0 %v2977_v5  ;;  %v3024_v1 = vcombine.low %v146_v52, %v150_v53  ;;  %v202_v47 = vld [vmem:[#allocation2 + $0x490] sm:$0xff] }
  0x3e   :  { %v152_v7 = vld [vmem:[#allocation2 + $0x300] sm:$0xff]  ;;  %v3021_v11 = vcombine.high %v144_v63, %v148_v0  ;;  %v3020_v14 = vcombine.low %v144_v63, %v148_v0  ;;  %v158_v63 = vld [vmem:[#allocation2 + $0x330] sm:$0xff] }
  0x3f   :  { %1645 = vmatpush1.bf16.msra.mxu1 %v2972_v27  ;;  %v156_v8 = vld [vmem:[#allocation2 + $0x320] sm:$0xff]  ;;  %v126_v27 = vld [vmem:[#allocation2 + $0x230] sm:$0xff] }
  0x40   :  { %1646 = vmatprep.subr.bf16.mxu1 %v2981_v28  ;;  %v160_v15 = vld [vmem:[#allocation2 + $0x340] sm:$0xff]  ;;  %v3029_v20 = vcombine.high %v152_v7, %v156_v8  ;;  %1809 = vmatpush1.bf16.msra.mxu0 %v2976_v12  ;;  %v3028_v23 = vcombine.low %v152_v7, %v156_v8  ;;  %v3001_v30 = vcombine.high %v122_v26, %v126_v27  ;;  %v166_v7 = vld [vmem:[#allocation2 + $0x370] sm:$0xff] }
  0x41   :  { %v164_v16 = vld [vmem:[#allocation2 + $0x360] sm:$0xff]  ;;  %1810 = vmatprep.subr.bf16.mxu0 %v2985_v13  ;;  %v3000_v37 = vcombine.low %v122_v26, %v126_v27 }
  0x42   :  { %v168_v24 = vld [vmem:[#allocation2 + $0x380] sm:$0xff]  ;;  %v3037_v28 = vcombine.high %v160_v15, %v164_v16  ;;  %v3036_v31 = vcombine.low %v160_v15, %v164_v16  ;;  %v174_v15 = vld [vmem:[#allocation2 + $0x3b0] sm:$0xff] }
  0x43   :  { %1647 = vmatpush1.bf16.msra.mxu1 %v2980_v35  ;;  %v172_v25 = vld [vmem:[#allocation2 + $0x3a0] sm:$0xff]  ;;  %v134_v35 = vld [vmem:[#allocation2 + $0x270] sm:$0xff] }
  0x44   :  { %1648 = vmatprep.subr.bf16.mxu1 %v2989_v38  ;;  %1811 = vmatpush1.bf16.msra.mxu0 %v2984_v21  ;;  %v176_v32 = vld [vmem:[#allocation2 + $0x3c0] sm:$0xff]  ;;  %v3045_v36 = vcombine.high %v168_v24, %v172_v25  ;;  %v3009_v38 = vcombine.high %v130_v34, %v134_v35  ;;  %v3044_v39 = vcombine.low %v168_v24, %v172_v25  ;;  %v182_v24 = vld [vmem:[#allocation2 + $0x3f0] sm:$0xff] }
  0x45   :  { %1812 = vmatprep.subr.bf16.mxu0 %v2993_v22  ;;  %v180_v33 = vld [vmem:[#allocation2 + $0x3e0] sm:$0xff]  ;;  %v3008_v45 = vcombine.low %v130_v34, %v134_v35 }
  0x46   :  { %v184_v40 = vld [vmem:[#allocation2 + $0x400] sm:$0xff]  ;;  %v3053_v44 = vcombine.high %v176_v32, %v180_v33 }
  0x47   :  { %1649 = vmatpush1.bf16.msra.mxu1 %v2988_v46  ;;  %v188_v41 = vld [vmem:[#allocation2 + $0x420] sm:$0xff] }
  0x48   :  { %1650 = vmatprep.subr.bf16.mxu1 %v2997_v49  ;;  %1813 = vmatpush1.bf16.msra.mxu0 %v2992_v29  ;;  %v48_v46 = vld [vmem:[%s3742_s0] sm:$0xff]  ;;  %v3052_v49 = vcombine.low %v176_v32, %v180_v33  ;;  %v3060_v58 = vcombine.low %v184_v40, %v188_v41  ;;  %v190_v32 = vld [vmem:[#allocation2 + $0x430] sm:$0xff] }
  0x49   :  { %1814 = vmatprep.subr.bf16.mxu0 %v3001_v30  ;;  %v192_v50 = vld [vmem:[#allocation2 + $0x440] sm:$0xff]  ;;  %v3673_v56 = vpack.c.bf16 %v48_v46, %v48_v46 }
  0x4a   :  { %v196_v51 = vld [vmem:[#allocation2 + $0x460] sm:$0xff] }
  0x4b   :  { %1651 = vmatpush1.bf16.msra.mxu1 %v2996_v54  ;;  %v3061_v54 = vcombine.high %v184_v40, %v188_v41  ;;  %v200_v59 = vld [vmem:[#allocation2 + $0x480] sm:$0xff]  ;;  %v3069_v0 = vcombine.high %v192_v50, %v196_v51  ;;  %v198_v40 = vld [vmem:[#allocation2 + $0x470] sm:$0xff] }
  0x4c   :  { %1652 = vmatprep.subr.bf16.mxu1 %v3005_v57  ;;  %1815 = vmatpush1.bf16.msra.mxu0 %v3000_v37  ;;  %v3025_v57 = vcombine.high %v146_v52, %v150_v53  ;;  %v204_v60 = vld [vmem:[#allocation2 + $0x4a0] sm:$0xff] }
  0x4d   :  { %1816 = vmatprep.subr.bf16.mxu0 %v3009_v38  ;;  %v208_v4 = vld [vmem:[#allocation2 + $0x4c0] sm:$0xff]  ;;  %v3077_v8 = vcombine.high %v200_v59, %v204_v60 }
  0x4e   :  { %v212_v5 = vld [vmem:[#allocation2 + $0x4e0] sm:$0xff] }
  0x4f   :  { %1653 = vmatpush1.bf16.msra.mxu1 %v3004_v62  ;;  %v154_v62 = vld [vmem:[#allocation2 + $0x310] sm:$0xff]  ;;  %v216_v12 = vld [vmem:[#allocation2 + $0x500] sm:$0xff]  ;;  %v3085_v16 = vcombine.high %v208_v4, %v212_v5 }
  0x50   :  { %1654 = vmatprep.subr.bf16.mxu1 %v3013_v3  ;;  %1817 = vmatpush1.bf16.msra.mxu0 %v3008_v45  ;;  %v3033_v2 = vcombine.high %v154_v62, %v158_v63  ;;  %v3068_v3 = vcombine.low %v192_v50, %v196_v51  ;;  %v3032_v9 = vcombine.low %v154_v62, %v158_v63  ;;  %v220_v13 = vld [vmem:[#allocation2 + $0x520] sm:$0xff] }
  0x51   :  { %1818 = vmatprep.subr.bf16.mxu0 %v3017_v48  ;;  %v224_v21 = vld [vmem:[#allocation2 + $0x540] sm:$0xff]  ;;  %v3093_v25 = vcombine.high %v216_v12, %v220_v13  ;;  %v206_v48 = vld [vmem:[#allocation2 + $0x4b0] sm:$0xff] }
  0x52   :  { %v228_v22 = vld [vmem:[#allocation2 + $0x560] sm:$0xff]  ;;  %v3081_v51 = vcombine.high %v202_v47, %v206_v48 }
  0x53   :  { %1655 = vmatpush1.bf16.msra.mxu1 %v3012_v6  ;;  %v162_v6 = vld [vmem:[#allocation2 + $0x350] sm:$0xff]  ;;  %v232_v29 = vld [vmem:[#allocation2 + $0x580] sm:$0xff]  ;;  %v3101_v33 = vcombine.high %v224_v21, %v228_v22 }
  0x54   :  { %1656 = vmatprep.subr.bf16.mxu1 %v3021_v11  ;;  %1819 = vmatpush1.bf16.msra.mxu0 %v3016_v55  ;;  %v3041_v10 = vcombine.high %v162_v6, %v166_v7  ;;  %v3076_v11 = vcombine.low %v200_v59, %v204_v60  ;;  %v3040_v17 = vcombine.low %v162_v6, %v166_v7  ;;  %v236_v30 = vld [vmem:[#allocation2 + $0x5a0] sm:$0xff]  ;;  %v210_v55 = vld [vmem:[#allocation2 + $0x4d0] sm:$0xff] }
  0x55   :  { %1820 = vmatprep.subr.bf16.mxu0 %v3025_v57  ;;  %v240_v37 = vld [vmem:[#allocation2 + $0x5c0] sm:$0xff]  ;;  %v3109_v41 = vcombine.high %v232_v29, %v236_v30  ;;  %v214_v57 = vld [vmem:[#allocation2 + $0x4f0] sm:$0xff]  ;;  %v3080_v59 = vcombine.low %v202_v47, %v206_v48 }
  0x56   :  { %v244_v38 = vld [vmem:[#allocation2 + $0x5e0] sm:$0xff]  ;;  %v3089_v60 = vcombine.high %v210_v55, %v214_v57  ;;  %v226_v7 = vld [vmem:[#allocation2 + $0x550] sm:$0xff] }
  0x57   :  { %1657 = vmatpush1.bf16.msra.mxu1 %v3020_v14  ;;  %v170_v14 = vld [vmem:[#allocation2 + $0x390] sm:$0xff]  ;;  %v248_v45 = vld [vmem:[#allocation2 + $0x600] sm:$0xff]  ;;  %v3116_v52 = vcombine.low %v240_v37, %v244_v38 }
  0x58   :  { %1658 = vmatprep.subr.bf16.mxu1 %v3029_v20  ;;  %1821 = vmatpush1.bf16.msra.mxu0 %v3024_v1  ;;  %v3049_v19 = vcombine.high %v170_v14, %v174_v15  ;;  %v3084_v20 = vcombine.low %v208_v4, %v212_v5  ;;  %v3048_v26 = vcombine.low %v170_v14, %v174_v15  ;;  %v252_v46 = vld [vmem:[#allocation2 + $0x620] sm:$0xff]  ;;  %v222_v1 = vld [vmem:[#allocation2 + $0x530] sm:$0xff] }
  0x59   :  { %1822 = vmatprep.subr.bf16.mxu0 %v3033_v2  ;;  %v256_v53 = vld [vmem:[#allocation2 + $0x640] sm:$0xff]  ;;  %v3124_v62 = vcombine.low %v248_v45, %v252_v46  ;;  %v3088_v4 = vcombine.low %v210_v55, %v214_v57  ;;  %v234_v15 = vld [vmem:[#allocation2 + $0x590] sm:$0xff] }
  0x5a   :  { %v264_v63 = vld [vmem:[#allocation2 + $0x680] sm:$0xff]  ;;  %v266_v48 = vld [vmem:[#allocation2 + $0x690] sm:$0xff] }
  0x5b   :  { %1659 = vmatpush1.bf16.msra.mxu1 %v3028_v23  ;;  %v178_v23 = vld [vmem:[#allocation2 + $0x3d0] sm:$0xff] }
  0x5c   :  { %1660 = vmatprep.subr.bf16.mxu1 %v3037_v28  ;;  %1823 = vmatpush1.bf16.msra.mxu0 %v3032_v9  ;;  %v3057_v27 = vcombine.high %v178_v23, %v182_v24  ;;  %v3092_v28 = vcombine.low %v216_v12, %v220_v13  ;;  %v3056_v34 = vcombine.low %v178_v23, %v182_v24  ;;  %v242_v24 = vld [vmem:[#allocation2 + $0x5d0] sm:$0xff] }
  0x5d   :  { %1824 = vmatprep.subr.bf16.mxu0 %v3041_v10  ;;  %v272_v10 = vld [vmem:[#allocation2 + $0x6c0] sm:$0xff]  ;;  %v50_v57 = vld [vmem:[%s3742_s0 + $0x10] sm:$0xff] }
  0x5f   :  { %1661 = vmatpush1.bf16.msra.mxu1 %v3036_v31  ;;  %v186_v31 = vld [vmem:[#allocation2 + $0x410] sm:$0xff] }
  0x60   :  { %1662 = vmatprep.subr.bf16.mxu1 %v3045_v36  ;;  %1825 = vmatpush1.bf16.msra.mxu0 %v3040_v17  ;;  %v3065_v35 = vcombine.high %v186_v31, %v190_v32  ;;  %v3100_v36 = vcombine.low %v224_v21, %v228_v22  ;;  %v3064_v42 = vcombine.low %v186_v31, %v190_v32  ;;  %v250_v32 = vld [vmem:[#allocation2 + $0x610] sm:$0xff] }
  0x61   :  { %1826 = vmatprep.subr.bf16.mxu0 %v3049_v19  ;;  %v280_v19 = vld [vmem:[#allocation2 + $0x700] sm:$0xff] }
  0x63   :  { %1663 = vmatpush1.bf16.msra.mxu1 %v3044_v39  ;;  %v194_v39 = vld [vmem:[#allocation2 + $0x450] sm:$0xff] }
  0x64   :  { %1664 = vmatprep.subr.bf16.mxu1 %v3053_v44  ;;  %1827 = vmatpush1.bf16.msra.mxu0 %v3048_v26  ;;  %v3073_v43 = vcombine.high %v194_v39, %v198_v40  ;;  %v3108_v44 = vcombine.low %v232_v29, %v236_v30  ;;  %v3072_v50 = vcombine.low %v194_v39, %v198_v40  ;;  %v258_v40 = vld [vmem:[#allocation2 + $0x650] sm:$0xff] }
  0x65   :  { %1828 = vmatprep.subr.bf16.mxu0 %v3057_v27  ;;  %v288_v27 = vld [vmem:[#allocation2 + $0x740] sm:$0xff] }
  0x67   :  { %1665 = vmatpush1.bf16.msra.mxu1 %v3052_v49  ;;  %v3117_v49 = vcombine.high %v240_v37, %v244_v38 }
  0x68   :  { %1675 = vmatprep.subr.bf16.mxu1 %v3061_v54  ;;  %1829 = vmatpush1.bf16.msra.mxu0 %v3056_v34  ;;  %v260_v54 = vld [vmem:[#allocation2 + $0x660] sm:$0xff] }
  0x69   :  { %1839 = vmatprep.subr.bf16.mxu0 %v3065_v35  ;;  %v3133_v2 = vcombine.high %v256_v53, %v260_v54  ;;  %v3132_v6 = vcombine.low %v256_v53, %v260_v54  ;;  %v296_v35 = vld [vmem:[#allocation2 + $0x780] sm:$0xff] }
  0x6a   :  { %1667 = vmatmul.mubr.bf16.vlgmr.msra.gmra.mrb[0].mxu1 %v3673_v56 }
  0x6b   :  { %1676 = vmatpush1.bf16.msra.mxu1 %v3060_v58  ;;  %1707 = vmatprep.mubr.bf16.mxu1 %v3675_v61  ;;  %v3125_v58 = vcombine.high %v248_v45, %v252_v46 }
  0x6c   :  { %1677 = vmatprep.subr.bf16.mxu1 %v3069_v0  ;;  %1831 = vmatmul.mubr.bf16.vlgmr.msra.gmra.mrb[0].mxu0 %v3673_v56  ;;  %v218_v0 = vld [vmem:[#allocation2 + $0x510] sm:$0xff] }
  0x6d   :  { %1840 = vmatpush1.bf16.msra.mxu0 %v3064_v42  ;;  %1871 = vmatprep.mubr.bf16.mxu0 %v3675_v61  ;;  %v3097_v5 = vcombine.high %v218_v0, %v222_v1  ;;  %v3096_v12 = vcombine.low %v218_v0, %v222_v1  ;;  %v3684_v1 = vpack.c.bf16 %v50_v57, %v50_v57 }
  0x6e   :  { %1841 = vmatprep.subr.bf16.mxu0 %v3073_v43  ;;  %v304_v43 = vld [vmem:[#allocation2 + $0x7c0] sm:$0xff] }
  0x6f   :  { %1678 = vmatpush1.bf16.msra.mxu1 %v3068_v3  ;;  %v268_v3 = vld [vmem:[#allocation2 + $0x6a0] sm:$0xff] }
  0x70   :  { %1679 = vmatprep.subr.bf16.mxu1 %v3077_v8  ;;  %v230_v8 = vld [vmem:[#allocation2 + $0x570] sm:$0xff]  ;;  %v3141_v9 = vcombine.high %v264_v63, %v268_v3  ;;  %v3140_v14 = vcombine.low %v264_v63, %v268_v3  ;;  %v69_v63 = vld [vmem:[#allocation2 + $0x68] sm:$0xff] }
  0x71   :  { %1842 = vmatpush1.bf16.msra.mxu0 %v3072_v50  ;;  %v3105_v13 = vcombine.high %v226_v7, %v230_v8  ;;  %v3104_v21 = vcombine.low %v226_v7, %v230_v8  ;;  %v73_v7 = vld [vmem:[#allocation2 + $0x88] sm:$0xff] }
  0x72   :  { %1843 = vmatprep.subr.bf16.mxu0 %v3081_v51  ;;  %v57_v51 = vld [vmem:[#allocation2 + $0x8] sm:$0xff] }
  0x73   :  { %1680 = vmatpush1.bf16.msra.mxu1 %v3076_v11  ;;  %v276_v11 = vld [vmem:[#allocation2 + $0x6e0] sm:$0xff]  ;;  %v77_v8 = vld [vmem:[#allocation2 + $0xa8] sm:$0xff] }
  0x74   :  { %1681 = vmatprep.subr.bf16.mxu1 %v3085_v16  ;;  %v238_v16 = vld [vmem:[#allocation2 + $0x5b0] sm:$0xff]  ;;  %v3149_v17 = vcombine.high %v272_v10, %v276_v11  ;;  %v3148_v23 = vcombine.low %v272_v10, %v276_v11 }
  0x75   :  { %1844 = vmatpush1.bf16.msra.mxu0 %v3080_v59  ;;  %v3113_v22 = vcombine.high %v234_v15, %v238_v16  ;;  %v3112_v29 = vcombine.low %v234_v15, %v238_v16  ;;  %v278_v59 = vld [vmem:[#allocation2 + $0x6f0] sm:$0xff]  ;;  %v81_v15 = vld [vmem:[#allocation2 + $0xc8] sm:$0xff] }
  0x76   :  { %1845 = vmatprep.subr.bf16.mxu0 %v3089_v60  ;;  %v85_v16 = vld [vmem:[#allocation2 + $0xe8] sm:$0xff] }
  0x77   :  { %1682 = vmatpush1.bf16.msra.mxu1 %v3084_v20  ;;  %v284_v20 = vld [vmem:[#allocation2 + $0x720] sm:$0xff] }
  0x78   :  { %1683 = vmatprep.subr.bf16.mxu1 %v3093_v25  ;;  %v246_v25 = vld [vmem:[#allocation2 + $0x5f0] sm:$0xff]  ;;  %v3157_v26 = vcombine.high %v280_v19, %v284_v20  ;;  %v3156_v31 = vcombine.low %v280_v19, %v284_v20  ;;  %v2950_v20 = vcombine.low %v73_v7, %v77_v8 }
  0x79   :  { %1846 = vmatpush1.bf16.msra.mxu0 %v3088_v4  ;;  %v3121_v30 = vcombine.high %v242_v24, %v246_v25  ;;  %v3120_v37 = vcombine.low %v242_v24, %v246_v25  ;;  %v282_v4 = vld [vmem:[#allocation2 + $0x710] sm:$0xff]  ;;  %v89_v24 = vld [vmem:[#allocation2 + $0x108] sm:$0xff] }
  0x7a   :  { %1847 = vmatprep.subr.bf16.mxu0 %v3097_v5  ;;  %v286_v5 = vld [vmem:[#allocation2 + $0x730] sm:$0xff]  ;;  %v93_v25 = vld [vmem:[#allocation2 + $0x128] sm:$0xff] }
  0x7b   :  { %1684 = vmatpush1.bf16.msra.mxu1 %v3092_v28  ;;  %v292_v28 = vld [vmem:[#allocation2 + $0x760] sm:$0xff]  ;;  %v3161_v10 = vcombine.high %v282_v4, %v286_v5 }
  0x7c   :  { %1685 = vmatprep.subr.bf16.mxu1 %v3101_v33  ;;  %v254_v33 = vld [vmem:[#allocation2 + $0x630] sm:$0xff]  ;;  %v3165_v34 = vcombine.high %v288_v27, %v292_v28  ;;  %v3164_v39 = vcombine.low %v288_v27, %v292_v28  ;;  %v2958_v28 = vcombine.low %v81_v15, %v85_v16 }
  0x7d   :  { %1848 = vmatpush1.bf16.msra.mxu0 %v3096_v12  ;;  %v3129_v38 = vcombine.high %v250_v32, %v254_v33  ;;  %v3128_v45 = vcombine.low %v250_v32, %v254_v33  ;;  %v290_v12 = vld [vmem:[#allocation2 + $0x750] sm:$0xff]  ;;  %v97_v32 = vld [vmem:[#allocation2 + $0x148] sm:$0xff] }
  0x7e   :  { %1849 = vmatprep.subr.bf16.mxu0 %v3105_v13  ;;  %v294_v13 = vld [vmem:[#allocation2 + $0x770] sm:$0xff]  ;;  %v101_v33 = vld [vmem:[#allocation2 + $0x168] sm:$0xff] }
  0x7f   :  { %1686 = vmatpush1.bf16.msra.mxu1 %v3100_v36  ;;  %v300_v36 = vld [vmem:[#allocation2 + $0x7a0] sm:$0xff]  ;;  %v3169_v19 = vcombine.high %v290_v12, %v294_v13 }
  0x80   :  { %1687 = vmatprep.subr.bf16.mxu1 %v3109_v41  ;;  %v262_v41 = vld [vmem:[#allocation2 + $0x670] sm:$0xff]  ;;  %v3173_v42 = vcombine.high %v296_v35, %v300_v36  ;;  %v3172_v47 = vcombine.low %v296_v35, %v300_v36  ;;  %v2966_v36 = vcombine.low %v89_v24, %v93_v25 }
  0x81   :  { %1850 = vmatpush1.bf16.msra.mxu0 %v3104_v21  ;;  %v3137_v46 = vcombine.high %v258_v40, %v262_v41  ;;  %v3136_v53 = vcombine.low %v258_v40, %v262_v41  ;;  %v298_v21 = vld [vmem:[#allocation2 + $0x790] sm:$0xff]  ;;  %v2974_v41 = vcombine.low %v97_v32, %v101_v33 }
  0x82   :  { %1851 = vmatprep.subr.bf16.mxu0 %v3113_v22  ;;  %v302_v22 = vld [vmem:[#allocation2 + $0x7b0] sm:$0xff] }
  0x83   :  { %1688 = vmatpush1.bf16.msra.mxu1 %v3108_v44  ;;  %v308_v44 = vld [vmem:[#allocation2 + $0x7e0] sm:$0xff]  ;;  %v3177_v27 = vcombine.high %v298_v21, %v302_v22 }
  0x84   :  { %1689 = vmatprep.subr.bf16.mxu1 %v3117_v49  ;;  %v270_v49 = vld [vmem:[#allocation2 + $0x6b0] sm:$0xff]  ;;  %v3181_v50 = vcombine.high %v304_v43, %v308_v44  ;;  %v3180_v55 = vcombine.low %v304_v43, %v308_v44  ;;  %v113_v43 = vld [vmem:[#allocation2 + $0x1c8] sm:$0xff] }
  0x85   :  { %1852 = vmatpush1.bf16.msra.mxu0 %v3112_v29  ;;  %v3145_v54 = vcombine.high %v266_v48, %v270_v49  ;;  %v3144_v0 = vcombine.low %v266_v48, %v270_v49  ;;  %v306_v29 = vld [vmem:[#allocation2 + $0x7d0] sm:$0xff]  ;;  %v117_v44 = vld [vmem:[#allocation2 + $0x1e8] sm:$0xff] }
  0x86   :  { %1853 = vmatprep.subr.bf16.mxu0 %v3121_v30  ;;  %v310_v30 = vld [vmem:[#allocation2 + $0x7f0] sm:$0xff]  ;;  %v125_v48 = vld [vmem:[#allocation2 + $0x228] sm:$0xff]  ;;  %v2990_v49 = vcombine.low %v113_v43, %v117_v44 }
  0x87   :  { %1690 = vmatpush1.bf16.msra.mxu1 %v3116_v52  ;;  %v61_v52 = vld [vmem:[#allocation2 + $0x28] sm:$0xff]  ;;  %v3185_v35 = vcombine.high %v306_v29, %v310_v30  ;;  %v3184_v40 = vcombine.low %v306_v29, %v310_v30 }
  0x88   :  { %1691 = vmatprep.subr.bf16.mxu1 %v3125_v58  ;;  %v274_v58 = vld [vmem:[#allocation2 + $0x6d0] sm:$0xff]  ;;  %v2935_v60 = vcombine.high %v57_v51, %v61_v52  ;;  %v2934_v3 = vcombine.low %v57_v51, %v61_v52  ;;  %v3360_v51 = vld [vmem:[#allocation4] ss:$8 sps:$4 sm:$0xff]   ;;  %v3362_v52 = vld [vmem:[#allocation4 + $0x4] ss:$8 sps:$4 sm:$0xff]  }
  0x89   :  { %1854 = vmatpush1.bf16.msra.mxu0 %v3120_v37  ;;  %v2975_v37 = vcombine.high %v97_v32, %v101_v33  ;;  %v177_v29 = vld [vmem:[#allocation2 + $0x3c8] sm:$0xff]  ;;  %v3381_v33 = vld [vmem:[#allocation4 + $0x70] ss:$8 sps:$4 sm:$0xff]  }
  0x8a   :  { %1855 = vmatprep.subr.bf16.mxu0 %v3129_v38  ;;  %v105_v38 = vld [vmem:[#allocation2 + $0x188] sm:$0xff] }
  0x8b   :  { %1692 = vmatpush1.bf16.msra.mxu1 %v3124_v62  ;;  %v65_v62 = vld [vmem:[#allocation2 + $0x48] sm:$0xff] }
  0x8c   :  { %1693 = vmatprep.subr.bf16.mxu1 %v3133_v2  ;;  %v3153_v2 = vcombine.high %v274_v58, %v278_v59  ;;  %v2942_v11 = vcombine.low %v65_v62, %v69_v63  ;;  %v181_v30 = vld [vmem:[#allocation2 + $0x3e8] sm:$0xff] }
  0x8d   :  { %1856 = vmatpush1.bf16.msra.mxu0 %v3128_v45  ;;  %v3055_v32 = vcombine.high %v177_v29, %v181_v30 }
  0x8e   :  { %1857 = vmatprep.subr.bf16.mxu0 %v3137_v46  ;;  %v2991_v46 = vcombine.high %v113_v43, %v117_v44 }
  0x8f   :  { %1694 = vmatpush1.bf16.msra.mxu1 %v3132_v6  ;;  %v2943_v6 = vcombine.high %v65_v62, %v69_v63  ;;  %v141_v62 = vld [vmem:[#allocation2 + $0x2a8] sm:$0xff] }
  0x90   :  { %1695 = vmatprep.subr.bf16.mxu1 %v3141_v9  ;;  %v3152_v9 = vcombine.low %v274_v58, %v278_v59  ;;  %v3363_v58 = vld [vmem:[#allocation4 + $0x10] ss:$8 sps:$4 sm:$0xff]   ;;  %v3365_v59 = vld [vmem:[#allocation4 + $0x14] ss:$8 sps:$4 sm:$0xff]  }
  0x91   :  { %1858 = vmatpush1.bf16.msra.mxu0 %v3136_v53  ;;  %v129_v53 = vld [vmem:[#allocation2 + $0x248] sm:$0xff] }
  0x92   :  { %1859 = vmatprep.subr.bf16.mxu0 %v3145_v54  ;;  %v133_v54 = vld [vmem:[#allocation2 + $0x268] sm:$0xff] }
  0x93   :  { %1696 = vmatpush1.bf16.msra.mxu1 %v3140_v14  ;;  %v2951_v14 = vcombine.high %v73_v7, %v77_v8  ;;  %v3007_v57 = vcombine.high %v129_v53, %v133_v54  ;;  %v3006_v63 = vcombine.low %v129_v53, %v133_v54  ;;  %v3369_v8 = vld [vmem:[#allocation4 + $0x30] ss:$8 sps:$4 sm:$0xff]   ;;  %v209_v53 = vld [vmem:[#allocation2 + $0x4c8] sm:$0xff] }
  0x94   :  { %1697 = vmatprep.subr.bf16.mxu1 %v3149_v17  ;;  %v3160_v17 = vcombine.low %v282_v4, %v286_v5  ;;  %v145_v4 = vld [vmem:[#allocation2 + $0x2c8] sm:$0xff] }
  0x95   :  { %1860 = vmatpush1.bf16.msra.mxu0 %v3144_v0  ;;  %v149_v5 = vld [vmem:[#allocation2 + $0x2e8] sm:$0xff] }
  0x96   :  { %1861 = vmatprep.subr.bf16.mxu0 %v3153_v2  ;;  %v3366_v2 = vld [vmem:[#allocation4 + $0x20] ss:$8 sps:$4 sm:$0xff]   ;;  %v3023_v7 = vcombine.high %v145_v4, %v149_v5 }
  0x97   :  { %1698 = vmatpush1.bf16.msra.mxu1 %v3148_v23  ;;  %v2959_v23 = vcombine.high %v81_v15, %v85_v16  ;;  %v3374_v15 = vld [vmem:[#allocation4 + $0x44] ss:$8 sps:$4 sm:$0xff]  }
  0x98   :  { %1699 = vmatprep.subr.bf16.mxu1 %v3157_v26  ;;  %v3168_v26 = vcombine.low %v290_v12, %v294_v13  ;;  %v3022_v12 = vcombine.low %v145_v4, %v149_v5  ;;  %v161_v16 = vld [vmem:[#allocation2 + $0x348] sm:$0xff] }
  0x99   :  { %1862 = vmatpush1.bf16.msra.mxu0 %v3152_v9  ;;  %v3371_v9 = vld [vmem:[#allocation4 + $0x34] ss:$8 sps:$4 sm:$0xff]   ;;  %v213_v54 = vld [vmem:[#allocation2 + $0x4e8] sm:$0xff] }
  0x9a   :  { %1863 = vmatprep.subr.bf16.mxu0 %v3161_v10  ;;  %v153_v10 = vld [vmem:[#allocation2 + $0x308] sm:$0xff] }
  0x9b   :  { %1700 = vmatpush1.bf16.msra.mxu1 %v3156_v31  ;;  %v2967_v31 = vcombine.high %v89_v24, %v93_v25  ;;  %v173_v24 = vld [vmem:[#allocation2 + $0x3a8] sm:$0xff] }
  0x9c   :  { %1701 = vmatprep.subr.bf16.mxu1 %v3165_v34  ;;  %v3176_v34 = vcombine.low %v298_v21, %v302_v22  ;;  %v3375_v21 = vld [vmem:[#allocation4 + $0x50] ss:$8 sps:$4 sm:$0xff]   ;;  %v3377_v22 = vld [vmem:[#allocation4 + $0x54] ss:$8 sps:$4 sm:$0xff]   ;;  %v225_v4 = vld [vmem:[#allocation2 + $0x548] sm:$0xff] }
  0x9d   :  { %1864 = vmatpush1.bf16.msra.mxu0 %v3160_v17  ;;  %v165_v17 = vld [vmem:[#allocation2 + $0x368] sm:$0xff] }
  0x9e   :  { %1865 = vmatprep.subr.bf16.mxu0 %v3169_v19  ;;  %v3038_v25 = vcombine.low %v161_v16, %v165_v17  ;;  %v229_v5 = vld [vmem:[#allocation2 + $0x568] sm:$0xff] }
  0x9f   :  { %1702 = vmatpush1.bf16.msra.mxu1 %v3164_v39  ;;  %v109_v39 = vld [vmem:[#allocation2 + $0x1a8] sm:$0xff] }
  0xa0   :  { %1703 = vmatprep.subr.bf16.mxu1 %v3173_v42  ;;  %v2983_v42 = vcombine.high %v105_v38, %v109_v39  ;;  %v2982_v45 = vcombine.low %v105_v38, %v109_v39  ;;  %v3384_v39 = vld [vmem:[#allocation4 + $0x80] ss:$8 sps:$4 sm:$0xff]  }
  0xa1   :  { %1866 = vmatpush1.bf16.msra.mxu0 %v3168_v26 }
  0xa2   :  { %1867 = vmatprep.subr.bf16.mxu0 %v3177_v27  ;;  %v3378_v27 = vld [vmem:[#allocation4 + $0x60] ss:$8 sps:$4 sm:$0xff]  }
  0xa3   :  { %1704 = vmatpush1.bf16.msra.mxu1 %v3172_v47  ;;  %v121_v47 = vld [vmem:[#allocation2 + $0x208] sm:$0xff] }
  0xa4   :  { %1705 = vmatprep.subr.bf16.mxu1 %v3181_v50  ;;  %v2999_v50 = vcombine.high %v121_v47, %v125_v48 }
  0xa5   :  { %1868 = vmatpush1.bf16.msra.mxu0 %v3176_v34  ;;  %v3383_v34 = vld [vmem:[#allocation4 + $0x74] ss:$8 sps:$4 sm:$0xff]  }
  0xa6   :  { %1869 = vmatprep.subr.bf16.mxu0 %v3185_v35  ;;  %v185_v35 = vld [vmem:[#allocation2 + $0x408] sm:$0xff] }
  0xa7   :  { %1706 = vmatpush1.bf16.msra.mxu1 %v3180_v55  ;;  %v2998_v55 = vcombine.low %v121_v47, %v125_v48  ;;  %v201_v47 = vld [vmem:[#allocation2 + $0x488] sm:$0xff] }
  0xa8   :  { %1716 = vmatprep.subr.bf16.mxu1 %v2935_v60  ;;  %v137_v60 = vld [vmem:[#allocation2 + $0x288] sm:$0xff] }
  0xa9   :  { %1870 = vmatpush1.bf16.msra.mxu0 %v3184_v40  ;;  %v3015_v0 = vcombine.high %v137_v60, %v141_v62  ;;  %v3386_v40 = vld [vmem:[#allocation4 + $0x84] ss:$8 sps:$4 sm:$0xff]  }
  0xaa   :  { %1708 = vmatmul.mubr.bf16.vlgmr.msra.gmra.mrb[0].mxu1 %v3684_v1  ;;  %2758 = vmatprep.subr.bf16.mxu0 %v3362_v52  ;;  %v205_v48 = vld [vmem:[#allocation2 + $0x4a8] sm:$0xff] }
  0xab   :  { %1717 = vmatpush1.bf16.msra.mxu1 %v2934_v3  ;;  %1748 = vmatprep.mubr.bf16.mxu1 %v3663_v18  ;;  %v3368_v3 = vld [vmem:[#allocation4 + $0x24] ss:$8 sps:$4 sm:$0xff]  }
  0xac   :  { %1718 = vmatprep.subr.bf16.mxu1 %v2943_v6  ;;  %1872 = vmatmul.mubr.bf16.vlgmr.msra.gmra.mrb[0].mxu0 %v3684_v1  ;;  %v3014_v6 = vcombine.low %v137_v60, %v141_v62  ;;  %v3392_v52 = vld [vmem:[#allocation4 + $0xa4] ss:$8 sps:$4 sm:$0xff]  }
  0xad   :  { %2759 = vmatpush1.bf16.msra.mxu0 %v3360_v51  ;;  %v3390_v51 = vld [vmem:[#allocation4 + $0xa0] ss:$8 sps:$4 sm:$0xff]  }
  0xae   :  { %2760 = vmatprep.subr.bf16.mxu0 %v3365_v59  ;;  %v3395_v59 = vld [vmem:[#allocation4 + $0xb4] ss:$8 sps:$4 sm:$0xff]   ;;  %v217_v60 = vld [vmem:[#allocation2 + $0x508] sm:$0xff] }
  0xaf   :  { %1719 = vmatpush1.bf16.msra.mxu1 %v2942_v11  ;;  %v157_v11 = vld [vmem:[#allocation2 + $0x328] sm:$0xff] }
  0xb0   :  { %1720 = vmatprep.subr.bf16.mxu1 %v2951_v14  ;;  %v3031_v13 = vcombine.high %v153_v10, %v157_v11  ;;  %v3372_v14 = vld [vmem:[#allocation4 + $0x40] ss:$8 sps:$4 sm:$0xff]   ;;  %v3030_v19 = vcombine.low %v153_v10, %v157_v11 }
  0xb1   :  { %2761 = vmatpush1.bf16.msra.mxu0 %v3363_v58  ;;  %v3393_v58 = vld [vmem:[#allocation4 + $0xb0] ss:$8 sps:$4 sm:$0xff]   ;;  %v221_v62 = vld [vmem:[#allocation2 + $0x528] sm:$0xff] }
  0xb2   :  { %2762 = vmatprep.subr.bf16.mxu0 %v3368_v3  ;;  %v3398_v3 = vld [vmem:[#allocation4 + $0xc4] ss:$8 sps:$4 sm:$0xff]  }
  0xb3   :  { %1721 = vmatpush1.bf16.msra.mxu1 %v2950_v20  ;;  %v3039_v20 = vcombine.high %v161_v16, %v165_v17  ;;  %v233_v10 = vld [vmem:[#allocation2 + $0x588] sm:$0xff] }
  0xb4   :  { %1722 = vmatprep.subr.bf16.mxu1 %v2959_v23  ;;  %v169_v23 = vld [vmem:[#allocation2 + $0x388] sm:$0xff] }
  0xb5   :  { %2763 = vmatpush1.bf16.msra.mxu0 %v3366_v2  ;;  %v3047_v26 = vcombine.high %v169_v23, %v173_v24  ;;  %v3396_v2 = vld [vmem:[#allocation4 + $0xc0] ss:$8 sps:$4 sm:$0xff]  }
  0xb6   :  { %2764 = vmatprep.subr.bf16.mxu0 %v3371_v9  ;;  %v3401_v9 = vld [vmem:[#allocation4 + $0xd4] ss:$8 sps:$4 sm:$0xff]   ;;  %v237_v11 = vld [vmem:[#allocation2 + $0x5a8] sm:$0xff] }
  0xb7   :  { %1723 = vmatpush1.bf16.msra.mxu1 %v2958_v28  ;;  %v3380_v28 = vld [vmem:[#allocation4 + $0x64] ss:$8 sps:$4 sm:$0xff]   ;;  %v3402_v17 = vld [vmem:[#allocation4 + $0xe0] ss:$8 sps:$4 sm:$0xff]  }
  0xb8   :  { %1724 = vmatprep.subr.bf16.mxu1 %v2967_v31  ;;  %v3046_v31 = vcombine.low %v169_v23, %v173_v24  ;;  %v245_v16 = vld [vmem:[#allocation2 + $0x5e8] sm:$0xff]  ;;  %v3405_v24 = vld [vmem:[#allocation4 + $0xf0] ss:$8 sps:$4 sm:$0xff]  }
  0xb9   :  { %2765 = vmatpush1.bf16.msra.mxu0 %v3369_v8  ;;  %v3399_v8 = vld [vmem:[#allocation4 + $0xd0] ss:$8 sps:$4 sm:$0xff]   ;;  %v253_v23 = vld [vmem:[#allocation2 + $0x628] sm:$0xff] }
  0xba   :  { %2766 = vmatprep.subr.bf16.mxu0 %v3374_v15  ;;  %v241_v15 = vld [vmem:[#allocation2 + $0x5c8] sm:$0xff] }
  0xbb   :  { %1725 = vmatpush1.bf16.msra.mxu1 %v2966_v36  ;;  %v189_v36 = vld [vmem:[#allocation2 + $0x428] sm:$0xff] }
  0xbc   :  { %1726 = vmatprep.subr.bf16.mxu1 %v2975_v37  ;;  %v3054_v37 = vcombine.low %v177_v29, %v181_v30  ;;  %v3063_v38 = vcombine.high %v185_v35, %v189_v36  ;;  %v3062_v43 = vcombine.low %v185_v35, %v189_v36  ;;  %v273_v35 = vld [vmem:[#allocation2 + $0x6c8] sm:$0xff] }
  0xbd   :  { %2767 = vmatpush1.bf16.msra.mxu0 %v3372_v14  ;;  %v3404_v14 = vld [vmem:[#allocation4 + $0xe4] ss:$8 sps:$4 sm:$0xff]  }
  0xbe   :  { %2768 = vmatprep.subr.bf16.mxu0 %v3377_v22  ;;  %v249_v22 = vld [vmem:[#allocation2 + $0x608] sm:$0xff] }
  0xbf   :  { %1727 = vmatpush1.bf16.msra.mxu1 %v2974_v41  ;;  %v193_v41 = vld [vmem:[#allocation2 + $0x448] sm:$0xff]  ;;  %v3126_v29 = vcombine.low %v249_v22, %v253_v23 }
  0xc0   :  { %1728 = vmatprep.subr.bf16.mxu1 %v2983_v42  ;;  %v197_v42 = vld [vmem:[#allocation2 + $0x468] sm:$0xff] }
  0xc1   :  { %2769 = vmatpush1.bf16.msra.mxu0 %v3375_v21  ;;  %v3071_v44 = vcombine.high %v193_v41, %v197_v42  ;;  %v3407_v21 = vld [vmem:[#allocation4 + $0xf4] ss:$8 sps:$4 sm:$0xff]   ;;  %v277_v36 = vld [vmem:[#allocation2 + $0x6e8] sm:$0xff] }
  0xc2   :  { %2770 = vmatprep.subr.bf16.mxu0 %v3380_v28  ;;  %v261_v28 = vld [vmem:[#allocation2 + $0x668] sm:$0xff] }
  0xc3   :  { %1729 = vmatpush1.bf16.msra.mxu1 %v2982_v45  ;;  %v3387_v45 = vld [vmem:[#allocation4 + $0x90] ss:$8 sps:$4 sm:$0xff]  }
  0xc4   :  { %1730 = vmatprep.subr.bf16.mxu1 %v2991_v46  ;;  %v3389_v46 = vld [vmem:[#allocation4 + $0x94] ss:$8 sps:$4 sm:$0xff]  }
  0xc5   :  { %2771 = vmatpush1.bf16.msra.mxu0 %v3378_v27  ;;  %v257_v27 = vld [vmem:[#allocation2 + $0x648] sm:$0xff] }
  0xc6   :  { %2772 = vmatprep.subr.bf16.mxu0 %v3383_v34  ;;  %v3135_v30 = vcombine.high %v257_v27, %v261_v28 }
  0xc7   :  { %1731 = vmatpush1.bf16.msra.mxu1 %v2990_v49  ;;  %v3070_v49 = vcombine.low %v193_v41, %v197_v42  ;;  %v3150_v41 = vcombine.low %v273_v35, %v277_v36 }
  0xc8   :  { %1732 = vmatprep.subr.bf16.mxu1 %v2999_v50  ;;  %v3079_v50 = vcombine.high %v201_v47, %v205_v48 }
  0xc9   :  { %2773 = vmatpush1.bf16.msra.mxu0 %v3381_v33  ;;  %v3134_v33 = vcombine.low %v257_v27, %v261_v28  ;;  %v123_v27 = vld [vmem:[#allocation2 + $0x218] sm:$0xff] }
  0xca   :  { %2774 = vmatprep.subr.bf16.mxu0 %v3386_v40  ;;  %v285_v40 = vld [vmem:[#allocation2 + $0x728] sm:$0xff]  ;;  %v127_v28 = vld [vmem:[#allocation2 + $0x238] sm:$0xff] }
  0xcb   :  { %1733 = vmatpush1.bf16.msra.mxu1 %v2998_v55  ;;  %v3078_v55 = vcombine.low %v201_v47, %v205_v48  ;;  %v297_v47 = vld [vmem:[#allocation2 + $0x788] sm:$0xff] }
  0xcc   :  { %1734 = vmatprep.subr.bf16.mxu1 %v3007_v57  ;;  %v3087_v57 = vcombine.high %v209_v53, %v213_v54  ;;  %v301_v48 = vld [vmem:[#allocation2 + $0x7a8] sm:$0xff] }
  0xcd   :  { %2775 = vmatpush1.bf16.msra.mxu0 %v3384_v39  ;;  %v281_v39 = vld [vmem:[#allocation2 + $0x708] sm:$0xff] }
  0xce   :  { %2776 = vmatprep.subr.bf16.mxu0 %v3389_v46  ;;  %v3159_v42 = vcombine.high %v281_v39, %v285_v40 }
  0xcf   :  { %1735 = vmatpush1.bf16.msra.mxu1 %v3006_v63  ;;  %v3086_v63 = vcombine.low %v209_v53, %v213_v54  ;;  %v3174_v53 = vcombine.low %v297_v47, %v301_v48 }
  0xd0   :  { %1736 = vmatprep.subr.bf16.mxu1 %v3015_v0  ;;  %v3095_v0 = vcombine.high %v217_v60, %v221_v62 }
  0xd1   :  { %2777 = vmatpush1.bf16.msra.mxu0 %v3387_v45  ;;  %v3158_v45 = vcombine.low %v281_v39, %v285_v40  ;;  %v147_v39 = vld [vmem:[#allocation2 + $0x2d8] sm:$0xff] }
  0xd2   :  { %2778 = vmatprep.subr.bf16.mxu0 %v3392_v52  ;;  %v309_v52 = vld [vmem:[#allocation2 + $0x7e8] sm:$0xff]  ;;  %v151_v40 = vld [vmem:[#allocation2 + $0x2f8] sm:$0xff] }
  0xd3   :  { %1737 = vmatpush1.bf16.msra.mxu1 %v3014_v6  ;;  %v3094_v6 = vcombine.low %v217_v60, %v221_v62  ;;  %v67_v60 = vld [vmem:[#allocation2 + $0x58] sm:$0xff] }
  0xd4   :  { %1738 = vmatprep.subr.bf16.mxu1 %v3023_v7  ;;  %v3103_v7 = vcombine.high %v225_v4, %v229_v5  ;;  %v71_v62 = vld [vmem:[#allocation2 + $0x78] sm:$0xff] }
  0xd5   :  { %2779 = vmatpush1.bf16.msra.mxu0 %v3390_v51  ;;  %v305_v51 = vld [vmem:[#allocation2 + $0x7c8] sm:$0xff] }
  0xd6   :  { %2780 = vmatprep.subr.bf16.mxu0 %v3395_v59  ;;  %v3183_v54 = vcombine.high %v305_v51, %v309_v52 }
  0xd7   :  { %1739 = vmatpush1.bf16.msra.mxu1 %v3022_v12  ;;  %v3102_v12 = vcombine.low %v225_v4, %v229_v5  ;;  %v3410_v4 = vld [vmem:[#allocation4 + $0x104] ss:$8 sps:$4 sm:$0xff]   ;;  %v2946_v5 = vcombine.low %v67_v60, %v71_v62 }
  0xd8   :  { %1740 = vmatprep.subr.bf16.mxu1 %v3031_v13  ;;  %v3111_v13 = vcombine.high %v233_v10, %v237_v11 }
  0xd9   :  { %2781 = vmatpush1.bf16.msra.mxu0 %v3393_v58  ;;  %v3182_v58 = vcombine.low %v305_v51, %v309_v52  ;;  %v171_v51 = vld [vmem:[#allocation2 + $0x398] sm:$0xff] }
  0xda   :  { %2782 = vmatprep.subr.bf16.mxu0 %v3398_v3  ;;  %v79_v3 = vld [vmem:[#allocation2 + $0xb8] sm:$0xff] }
  0xdb   :  { %1741 = vmatpush1.bf16.msra.mxu1 %v3030_v19  ;;  %v3110_v19 = vcombine.low %v233_v10, %v237_v11  ;;  %v91_v11 = vld [vmem:[#allocation2 + $0x118] sm:$0xff] }
  0xdc   :  { %1742 = vmatprep.subr.bf16.mxu1 %v3039_v20  ;;  %v3119_v20 = vcombine.high %v241_v15, %v245_v16  ;;  %v175_v52 = vld [vmem:[#allocation2 + $0x3b8] sm:$0xff] }
  0xdd   :  { %2783 = vmatpush1.bf16.msra.mxu0 %v3396_v2  ;;  %v75_v2 = vld [vmem:[#allocation2 + $0x98] sm:$0xff] }
  0xde   :  { %2784 = vmatprep.subr.bf16.mxu0 %v3401_v9  ;;  %v2954_v9 = vcombine.low %v75_v2, %v79_v3 }
  0xdf   :  { %1743 = vmatpush1.bf16.msra.mxu1 %v3038_v25  ;;  %v3118_v25 = vcombine.low %v241_v15, %v245_v16  ;;  %v99_v15 = vld [vmem:[#allocation2 + $0x158] sm:$0xff] }
  0xe0   :  { %1744 = vmatprep.subr.bf16.mxu1 %v3047_v26  ;;  %v3127_v26 = vcombine.high %v249_v22, %v253_v23  ;;  %v103_v16 = vld [vmem:[#allocation2 + $0x178] sm:$0xff] }
  0xe1   :  { %2785 = vmatpush1.bf16.msra.mxu0 %v3399_v8  ;;  %v87_v8 = vld [vmem:[#allocation2 + $0xf8] sm:$0xff] }
  0xe2   :  { %2786 = vmatprep.subr.bf16.mxu0 %v3404_v14  ;;  %v115_v23 = vld [vmem:[#allocation2 + $0x1d8] sm:$0xff] }
  0xe3   :  { %1745 = vmatpush1.bf16.msra.mxu1 %v3046_v31  ;;  %v265_v31 = vld [vmem:[#allocation2 + $0x688] sm:$0xff] }
  0xe4   :  { %1746 = vmatprep.subr.bf16.mxu1 %v3055_v32  ;;  %v269_v32 = vld [vmem:[#allocation2 + $0x6a8] sm:$0xff] }
  0xe5   :  { %2787 = vmatpush1.bf16.msra.mxu0 %v3402_v17  ;;  %v3143_v34 = vcombine.high %v265_v31, %v269_v32 }
  0xe6   :  { %2788 = vmatprep.subr.bf16.mxu0 %v3407_v21  ;;  %v2978_v21 = vcombine.low %v99_v15, %v103_v16 }
  0xe7   :  { %1747 = vmatpush1.bf16.msra.mxu1 %v3054_v37  ;;  %v3142_v37 = vcombine.low %v265_v31, %v269_v32  ;;  %v131_v31 = vld [vmem:[#allocation2 + $0x258] sm:$0xff] }
  0xe8   :  { %1757 = vmatprep.subr.bf16.mxu1 %v3063_v38  ;;  %v3151_v38 = vcombine.high %v273_v35, %v277_v36  ;;  %v135_v32 = vld [vmem:[#allocation2 + $0x278] sm:$0xff] }
  0xe9   :  { %2789 = vmatpush1.bf16.msra.mxu0 %v3405_v24  ;;  %v119_v24 = vld [vmem:[#allocation2 + $0x1f8] sm:$0xff] }
  0xea   :  { %1749 = vmatmul.mubr.bf16.vlgmr.msra.gmra.mrb[4].mxu1 %v3673_v56  ;;  %2799 = vmatprep.subr.bf16.mxu0 %v3410_v4  ;;  %v139_v35 = vld [vmem:[#allocation2 + $0x298] sm:$0xff] }
  0xeb   :  { %1758 = vmatpush1.bf16.msra.mxu1 %v3062_v43  ;;  %1789 = vmatprep.mubr.bf16.mxu1 %v3675_v61  ;;  %v289_v43 = vld [vmem:[#allocation2 + $0x748] sm:$0xff]  ;;  %v143_v36 = vld [vmem:[#allocation2 + $0x2b8] sm:$0xff] }
  0xec   :  { %1759 = vmatprep.subr.bf16.mxu1 %v3071_v44  ;;  %v293_v44 = vld [vmem:[#allocation2 + $0x768] sm:$0xff] }
  0xed   :  { %v3167_v46 = vcombine.high %v289_v43, %v293_v44 }
  0xef   :  { %1760 = vmatpush1.bf16.msra.mxu1 %v3070_v49  ;;  %v3166_v49 = vcombine.low %v289_v43, %v293_v44  ;;  %v155_v43 = vld [vmem:[#allocation2 + $0x318] sm:$0xff] }
  0xf0   :  { %1761 = vmatprep.subr.bf16.mxu1 %v3079_v50  ;;  %v3175_v50 = vcombine.high %v297_v47, %v301_v48  ;;  %v159_v44 = vld [vmem:[#allocation2 + $0x338] sm:$0xff] }
  0xf1   :  { %v163_v47 = vld [vmem:[#allocation2 + $0x358] sm:$0xff] }
  0xf2   :  { %v167_v48 = vld [vmem:[#allocation2 + $0x378] sm:$0xff] }
  0xf3   :  { %1762 = vmatpush1.bf16.msra.mxu1 %v3078_v55  ;;  %v59_v55 = vld [vmem:[#allocation2 + $0x18] sm:$0xff] }
  0xf4   :  { %1763 = vmatprep.subr.bf16.mxu1 %v3087_v57  ;;  %v63_v57 = vld [vmem:[#allocation2 + $0x38] sm:$0xff] }
  0xf5   :  { %v2939_v59 = vcombine.high %v59_v55, %v63_v57 }
  0xf7   :  { %1764 = vmatpush1.bf16.msra.mxu1 %v3086_v63  ;;  %v2938_v63 = vcombine.low %v59_v55, %v63_v57  ;;  %v179_v55 = vld [vmem:[#allocation2 + $0x3d8] sm:$0xff] }
  0xf8   :  { %1765 = vmatprep.subr.bf16.mxu1 %v3095_v0  ;;  %v2947_v0 = vcombine.high %v67_v60, %v71_v62  ;;  %v183_v57 = vld [vmem:[#allocation2 + $0x3f8] sm:$0xff] }
  0xf9   :  { %v187_v60 = vld [vmem:[#allocation2 + $0x418] sm:$0xff] }
  0xfa   :  { %v191_v62 = vld [vmem:[#allocation2 + $0x438] sm:$0xff] }
  0xfb   :  { %1766 = vmatpush1.bf16.msra.mxu1 %v3094_v6  ;;  %v2955_v6 = vcombine.high %v75_v2, %v79_v3  ;;  %v195_v2 = vld [vmem:[#allocation2 + $0x458] sm:$0xff]  ;;  %v3066_v4 = vcombine.low %v187_v60, %v191_v62 }
  0xfc   :  { %1767 = vmatprep.subr.bf16.mxu1 %v3103_v7  ;;  %v83_v7 = vld [vmem:[#allocation2 + $0xd8] sm:$0xff] }
  0xfd   :  { %v2963_v10 = vcombine.high %v83_v7, %v87_v8  ;;  %v199_v3 = vld [vmem:[#allocation2 + $0x478] sm:$0xff] }
  0xff   :  { %1768 = vmatpush1.bf16.msra.mxu1 %v3102_v12  ;;  %v95_v12 = vld [vmem:[#allocation2 + $0x138] sm:$0xff] }
 0x100   :  { %1769 = vmatprep.subr.bf16.mxu1 %v3111_v13  ;;  %v2962_v13 = vcombine.low %v83_v7, %v87_v8  ;;  %v2971_v14 = vcombine.high %v91_v11, %v95_v12  ;;  %v2970_v17 = vcombine.low %v91_v11, %v95_v12  ;;  %v207_v7 = vld [vmem:[#allocation2 + $0x4b8] sm:$0xff]  ;;  %v3074_v8 = vcombine.low %v195_v2, %v199_v3 }
 0x101   :  { %v215_v11 = vld [vmem:[#allocation2 + $0x4f8] sm:$0xff]  ;;  %v314_v12 = vlaneseq }
 0x103   :  { %1770 = vmatpush1.bf16.msra.mxu1 %v3110_v19  ;;  %v107_v19 = vld [vmem:[#allocation2 + $0x198] sm:$0xff] }
 0x104   :  { %1771 = vmatprep.subr.bf16.mxu1 %v3119_v20  ;;  %v111_v20 = vld [vmem:[#allocation2 + $0x1b8] sm:$0xff] }
 0x105   :  { %v2987_v22 = vcombine.high %v107_v19, %v111_v20 }
 0x107   :  { %1772 = vmatpush1.bf16.msra.mxu1 %v3118_v25  ;;  %v2986_v25 = vcombine.low %v107_v19, %v111_v20  ;;  %v227_v19 = vld [vmem:[#allocation2 + $0x558] sm:$0xff] }
 0x108   :  { %1773 = vmatprep.subr.bf16.mxu1 %v3127_v26  ;;  %v2995_v26 = vcombine.high %v115_v23, %v119_v24  ;;  %v231_v20 = vld [vmem:[#allocation2 + $0x578] sm:$0xff] }
 0x10b   :  { %1774 = vmatpush1.bf16.msra.mxu1 %v3126_v29  ;;  %v2994_v29 = vcombine.low %v115_v23, %v119_v24  ;;  %v3107_v24 = vcombine.high %v227_v19, %v231_v20 }
 0x10c   :  { %1775 = vmatprep.subr.bf16.mxu1 %v3135_v30  ;;  %v3003_v30 = vcombine.high %v123_v27, %v127_v28 }
 0x10f   :  { %1776 = vmatpush1.bf16.msra.mxu1 %v3134_v33  ;;  %v3002_v33 = vcombine.low %v123_v27, %v127_v28 }
 0x110   :  { %1777 = vmatprep.subr.bf16.mxu1 %v3143_v34  ;;  %v3011_v34 = vcombine.high %v131_v31, %v135_v32 }
 0x113   :  { %1778 = vmatpush1.bf16.msra.mxu1 %v3142_v37  ;;  %v3010_v37 = vcombine.low %v131_v31, %v135_v32  ;;  %v243_v32 = vld [vmem:[#allocation2 + $0x5d8] sm:$0xff] }
 0x114   :  { %1779 = vmatprep.subr.bf16.mxu1 %v3151_v38  ;;  %v3019_v38 = vcombine.high %v139_v35, %v143_v36 }
 0x117   :  { %1780 = vmatpush1.bf16.msra.mxu1 %v3150_v41  ;;  %v3018_v41 = vcombine.low %v139_v35, %v143_v36 }
 0x118   :  { %1781 = vmatprep.subr.bf16.mxu1 %v3159_v42  ;;  %v3027_v42 = vcombine.high %v147_v39, %v151_v40 }
 0x11b   :  { %1782 = vmatpush1.bf16.msra.mxu1 %v3158_v45  ;;  %v3026_v45 = vcombine.low %v147_v39, %v151_v40 }
 0x11c   :  { %1783 = vmatprep.subr.bf16.mxu1 %v3167_v46  ;;  %v3035_v46 = vcombine.high %v155_v43, %v159_v44 }
 0x11f   :  { %1784 = vmatpush1.bf16.msra.mxu1 %v3166_v49  ;;  %v3034_v49 = vcombine.low %v155_v43, %v159_v44  ;;  %v251_v43 = vld [vmem:[#allocation2 + $0x618] sm:$0xff] }
 0x120   :  { %1785 = vmatprep.subr.bf16.mxu1 %v3175_v50  ;;  %v3043_v50 = vcombine.high %v163_v47, %v167_v48  ;;  %v255_v44 = vld [vmem:[#allocation2 + $0x638] sm:$0xff] }
 0x123   :  { %1786 = vmatpush1.bf16.msra.mxu1 %v3174_v53  ;;  %v3042_v53 = vcombine.low %v163_v47, %v167_v48  ;;  %v3408_v47 = vld [vmem:[#allocation4 + $0x100] ss:$8 sps:$4 sm:$0xff]  }
 0x124   :  { %1787 = vmatprep.subr.bf16.mxu1 %v3183_v54  ;;  %v3051_v54 = vcombine.high %v171_v51, %v175_v52 }
 0x127   :  { %1788 = vmatpush1.bf16.msra.mxu1 %v3182_v58  ;;  %v3050_v58 = vcombine.low %v171_v51, %v175_v52  ;;  %v259_v51 = vld [vmem:[#allocation2 + $0x658] sm:$0xff] }
 0x128   :  { %1880 = vmatprep.subr.bf16.mxu1 %v2939_v59  ;;  %v3059_v59 = vcombine.high %v179_v55, %v183_v57  ;;  %v263_v52 = vld [vmem:[#allocation2 + $0x678] sm:$0xff] }
 0x12a   :  { %1790 = vmatmul.mubr.bf16.vlgmr.msra.gmra.mrb[4].mxu1 %v3684_v1 }
 0x12b   :  { %1881 = vmatpush1.bf16.msra.mxu1 %v2938_v63  ;;  %1912 = vmatprep.mubr.bf16.mxu1 %v3663_v18  ;;  %v2979_v18 = vcombine.high %v99_v15, %v103_v16  ;;  %v3058_v63 = vcombine.low %v179_v55, %v183_v57  ;;  %v219_v15 = vld [vmem:[#allocation2 + $0x518] sm:$0xff]  ;;  %v3139_v55 = vcombine.high %v259_v51, %v263_v52  ;;  %v3416_v57 = vld [vmem:[#allocation4 + $0x124] ss:$8 sps:$4 sm:$0xff]  }
 0x12c   :  { %1882 = vmatprep.subr.bf16.mxu1 %v2947_v0  ;;  %v3067_v0 = vcombine.high %v187_v60, %v191_v62  ;;  %v223_v16 = vld [vmem:[#allocation2 + $0x538] sm:$0xff]  ;;  %v3138_v60 = vcombine.low %v259_v51, %v263_v52  ;;  %v3414_v62 = vld [vmem:[#allocation4 + $0x120] ss:$8 sps:$4 sm:$0xff]  }
 0x12d   :  { %v3450_v51 = vld [vmem:[#allocation4 + $0x1e0] ss:$8 sps:$4 sm:$0xff]   ;;  %v3453_v52 = vld [vmem:[#allocation4 + $0x1f0] ss:$8 sps:$4 sm:$0xff]  }
 0x12f   :  { %1883 = vmatpush1.bf16.msra.mxu1 %v2946_v5  ;;  %v3075_v5 = vcombine.high %v195_v2, %v199_v3  ;;  %v275_v2 = vld [vmem:[#allocation2 + $0x6d8] sm:$0xff] }
 0x130   :  { %1884 = vmatprep.subr.bf16.mxu1 %v2955_v6  ;;  %v203_v6 = vld [vmem:[#allocation2 + $0x498] sm:$0xff] }
 0x131   :  { %v279_v3 = vld [vmem:[#allocation2 + $0x6f8] sm:$0xff] }
 0x133   :  { %1885 = vmatpush1.bf16.msra.mxu1 %v2954_v9  ;;  %v3083_v9 = vcombine.high %v203_v6, %v207_v7 }
 0x134   :  { %1886 = vmatprep.subr.bf16.mxu1 %v2963_v10  ;;  %v211_v10 = vld [vmem:[#allocation2 + $0x4d8] sm:$0xff] }
 0x137   :  { %1887 = vmatpush1.bf16.msra.mxu1 %v2962_v13  ;;  %v3082_v13 = vcombine.low %v203_v6, %v207_v7  ;;  %v3155_v6 = vcombine.high %v275_v2, %v279_v3  ;;  %v3422_v7 = vld [vmem:[#allocation4 + $0x144] ss:$8 sps:$4 sm:$0xff]  }
 0x138   :  { %1888 = vmatprep.subr.bf16.mxu1 %v2971_v14  ;;  %v3091_v14 = vcombine.high %v211_v10, %v215_v11 }
 0x13b   :  { %1889 = vmatpush1.bf16.msra.mxu1 %v2970_v17  ;;  %v3695_v17 = vshrl.u32 %v314_v12, 7 }
 0x13c   :  { %1890 = vmatprep.subr.bf16.mxu1 %v2979_v18  ;;  %v3090_v18 = vcombine.low %v211_v10, %v215_v11  ;;  %v3154_v10 = vcombine.low %v275_v2, %v279_v3  ;;  %v3420_v11 = vld [vmem:[#allocation4 + $0x140] ss:$8 sps:$4 sm:$0xff]  }
 0x13d   :  { %v320_v23 = vsub.s32 1, %v3695_v17 }
 0x13f   :  { %1891 = vmatpush1.bf16.msra.mxu1 %v2978_v21  ;;  %v3098_v21 = vcombine.low %v219_v15, %v223_v16 }
 0x140   :  { %1892 = vmatprep.subr.bf16.mxu1 %v2987_v22  ;;  %v3701_v22 = vld [vmem:[%s3744_s2] sm:$0xff] }
 0x141   :  { %v321_v28 = vrot.slane %v3701_v22, %v320_v23 }
 0x143   :  { %1893 = vmatpush1.bf16.msra.mxu1 %v2986_v25  ;;  %v235_v25 = vld [vmem:[#allocation2 + $0x598] sm:$0xff] }
 0x144   :  { %1894 = vmatprep.subr.bf16.mxu1 %v2995_v26  ;;  %v239_v26 = vld [vmem:[#allocation2 + $0x5b8] sm:$0xff] }
 0x147   :  { %1895 = vmatpush1.bf16.msra.mxu1 %v2994_v29  ;;  %v3106_v29 = vcombine.low %v227_v19, %v231_v20 }
 0x148   :  { %1896 = vmatprep.subr.bf16.mxu1 %v3003_v30  ;;  %v3115_v30 = vcombine.high %v235_v25, %v239_v26 }
 0x14b   :  { %1897 = vmatpush1.bf16.msra.mxu1 %v3002_v33  ;;  %v247_v33 = vld [vmem:[#allocation2 + $0x5f8] sm:$0xff] }
 0x14c   :  { %1898 = vmatprep.subr.bf16.mxu1 %v3011_v34 }
 0x14f   :  { %1899 = vmatpush1.bf16.msra.mxu1 %v3010_v37 }
 0x150   :  { %1900 = vmatprep.subr.bf16.mxu1 %v3019_v38  ;;  %v3114_v38 = vcombine.low %v235_v25, %v239_v26  ;;  %v3428_v25 = vld [vmem:[#allocation4 + $0x164] ss:$8 sps:$4 sm:$0xff]   ;;  %v299_v26 = vld [vmem:[#allocation2 + $0x798] sm:$0xff] }
 0x153   :  { %1901 = vmatpush1.bf16.msra.mxu1 %v3018_v41  ;;  %v3123_v41 = vcombine.high %v243_v32, %v247_v33 }
 0x154   :  { %1902 = vmatprep.subr.bf16.mxu1 %v3027_v42 }
 0x157   :  { %1903 = vmatpush1.bf16.msra.mxu1 %v3026_v45 }
 0x158   :  { %1904 = vmatprep.subr.bf16.mxu1 %v3035_v46  ;;  %v3122_v46 = vcombine.low %v243_v32, %v247_v33  ;;  %v307_v32 = vld [vmem:[#allocation2 + $0x7d8] sm:$0xff] }
 0x159   :  { %v311_v33 = vld [vmem:[#allocation2 + $0x7f8] sm:$0xff] }
 0x15b   :  { %1905 = vmatpush1.bf16.msra.mxu1 %v3034_v49  ;;  %v3131_v49 = vcombine.high %v251_v43, %v255_v44 }
 0x15c   :  { %1906 = vmatprep.subr.bf16.mxu1 %v3043_v50  ;;  %v3413_v50 = vld [vmem:[#allocation4 + $0x114] ss:$8 sps:$4 sm:$0xff]  }
 0x15f   :  { %1907 = vmatpush1.bf16.msra.mxu1 %v3042_v53  ;;  %v3130_v53 = vcombine.low %v251_v43, %v255_v44  ;;  %v3438_v43 = vld [vmem:[#allocation4 + $0x1a0] ss:$8 sps:$4 sm:$0xff]   ;;  %v3443_v44 = vld [vmem:[#allocation4 + $0x1b4] ss:$8 sps:$4 sm:$0xff]  }
 0x160   :  { %1908 = vmatprep.subr.bf16.mxu1 %v3051_v54  ;;  %v3411_v54 = vld [vmem:[#allocation4 + $0x110] ss:$8 sps:$4 sm:$0xff]  }
 0x163   :  { %1909 = vmatpush1.bf16.msra.mxu1 %v3050_v58  ;;  %v267_v58 = vld [vmem:[#allocation2 + $0x698] sm:$0xff] }
 0x164   :  { %1910 = vmatprep.subr.bf16.mxu1 %v3059_v59  ;;  %v271_v59 = vld [vmem:[#allocation2 + $0x6b8] sm:$0xff] }
 0x167   :  { %1911 = vmatpush1.bf16.msra.mxu1 %v3058_v63  ;;  %v3147_v63 = vcombine.high %v267_v58, %v271_v59 }
 0x168   :  { %1921 = vmatprep.subr.bf16.mxu1 %v3067_v0  ;;  %v3419_v0 = vld [vmem:[#allocation4 + $0x134] ss:$8 sps:$4 sm:$0xff]  }
 0x16a   :  { %1913 = vmatmul.mubr.bf16.vlgmr.msra.gmra.mrb[8].mxu1 %v3673_v56  ;;  %v3099_v56 = vcombine.high %v219_v15, %v223_v16  ;;  %v291_v16 = vld [vmem:[#allocation2 + $0x758] sm:$0xff] }
 0x16b   :  { %1922 = vmatpush1.bf16.msra.mxu1 %v3066_v4  ;;  %1953 = vmatprep.mubr.bf16.mxu1 %v3675_v61  ;;  %v316_v61 = vsub.s32 0, %v3695_v17  ;;  %v3146_v4 = vcombine.low %v267_v58, %v271_v59  ;;  %v328_v58 = vsub.s32 3, %v3695_v17 }
 0x16c   :  { %1923 = vmatprep.subr.bf16.mxu1 %v3075_v5  ;;  %v3417_v5 = vld [vmem:[#allocation4 + $0x130] ss:$8 sps:$4 sm:$0xff]  }
 0x16d   :  { %v317_v27 = vrot.slane %v3701_v22, %v316_v61 }
 0x16f   :  { %1924 = vmatpush1.bf16.msra.mxu1 %v3074_v8  ;;  %v283_v8 = vld [vmem:[#allocation2 + $0x718] sm:$0xff] }
 0x170   :  { %1925 = vmatprep.subr.bf16.mxu1 %v3083_v9  ;;  %v287_v9 = vld [vmem:[#allocation2 + $0x738] sm:$0xff] }
 0x171   :  { %v3162_v20 = vcombine.low %v283_v8, %v287_v9 }
 0x173   :  { %1926 = vmatpush1.bf16.msra.mxu1 %v3082_v13  ;;  %v3163_v13 = vcombine.high %v283_v8, %v287_v9 }
 0x174   :  { %1927 = vmatprep.subr.bf16.mxu1 %v3091_v14  ;;  %v3425_v14 = vld [vmem:[#allocation4 + $0x154] ss:$8 sps:$4 sm:$0xff]  }
 0x177   :  { %1928 = vmatpush1.bf16.msra.mxu1 %v3090_v18  ;;  %v295_v18 = vld [vmem:[#allocation2 + $0x778] sm:$0xff] }
 0x178   :  { %1929 = vmatprep.subr.bf16.mxu1 %v3099_v56 }
 0x17b   :  { %1930 = vmatpush1.bf16.msra.mxu1 %v3098_v21  ;;  %v3423_v21 = vld [vmem:[#allocation4 + $0x150] ss:$8 sps:$4 sm:$0xff]  }
 0x17c   :  { %1931 = vmatprep.subr.bf16.mxu1 %v3107_v24  ;;  %v3171_v24 = vcombine.high %v291_v16, %v295_v18 }
 0x17d   :  { %v1709_v31 = vpop.f32.mrb[0].mxu1 }
 0x17e   :  { %v3316_v34 = vadd.f32 %v1709_v31, %v317_v27  ;;  %v1711_v35 = vpop.f32.mrb[1].mxu1  ;;  %v303_v27 = vld [vmem:[#allocation2 + $0x7b8] sm:$0xff] }
 0x17f   :  { %v3317_v36 = vadd.f32 %v1711_v35, %v321_v28  ;;  %v1713_v37 = vpop.f32.mrb[2].mxu1  ;;  %1932 = vmatpush1.bf16.msra.mxu1 %v3106_v29  ;;  %v3710_v12 = vpop.f32.mrb[0].mxu0  ;;  %v3170_v28 = vcombine.low %v291_v16, %v295_v18  ;;  %v3426_v29 = vld [vmem:[#allocation4 + $0x160] ss:$8 sps:$4 sm:$0xff]   ;;  %v3431_v31 = vld [vmem:[#allocation4 + $0x174] ss:$8 sps:$4 sm:$0xff]  }
 0x180   :  { %v1962_v39 = vmax.f32 %v3316_v34, 0.0  ;;  %v1714_v40 = vpop.f32.mrb[3].mxu1  ;;  %1933 = vmatprep.subr.bf16.mxu1 %v3115_v30  ;;  %v3712_v15 = vpop.f32.mrb[1].mxu0  ;;  %v3179_v30 = vcombine.high %v299_v26, %v303_v27  ;;  %v3178_v34 = vcombine.low %v299_v26, %v303_v27  ;;  %v3429_v35 = vld [vmem:[#allocation4 + $0x170] ss:$8 sps:$4 sm:$0xff]  }
 0x181   :  { %v1963_v42 = vmax.f32 %v3317_v36, 0.0  ;;  %v1877_v56 = vpop.f32.mrb[2].mxu0  ;;  %v3187_v36 = vcombine.high %v307_v32, %v311_v33  ;;  %v3434_v37 = vld [vmem:[#allocation4 + $0x184] ss:$8 sps:$4 sm:$0xff]   ;;  %v3437_v40 = vld [vmem:[#allocation4 + $0x194] ss:$8 sps:$4 sm:$0xff]  }
 0x182   :  { %v1970_v48 = vpack.c.bf16 %v1962_v39, %v1962_v39  ;;  %v1878_v19 = vpop.f32.mrb[3].mxu0  ;;  %v3432_v39 = vld [vmem:[#allocation4 + $0x180] ss:$8 sps:$4 sm:$0xff]   ;;  %v3464_v16 = vld [vmem:[#allocation4 + $0x224] ss:$8 sps:$4 sm:$0xff]  }
 0x183   :  { %v1971_v45 = vpack.c.bf16 %v1963_v42, %v1963_v42  ;;  %1934 = vmatpush1.bf16.msra.mxu1 %v3114_v38  ;;  %v3186_v38 = vcombine.low %v307_v32, %v311_v33  ;;  %v3440_v42 = vld [vmem:[#allocation4 + $0x1a4] ss:$8 sps:$4 sm:$0xff]   ;;  %v3462_v18 = vld [vmem:[#allocation4 + $0x220] ss:$8 sps:$4 sm:$0xff]   ;;  %v3467_v56 = vld [vmem:[#allocation4 + $0x234] ss:$8 sps:$4 sm:$0xff]  }
 0x184   :  { %1935 = vmatprep.subr.bf16.mxu1 %v3123_v41  ;;  %v3435_v41 = vld [vmem:[#allocation4 + $0x190] ss:$8 sps:$4 sm:$0xff]   ;;  %v3476_v26 = vld [vmem:[#allocation4 + $0x264] ss:$8 sps:$4 sm:$0xff]   ;;  %v3474_v27 = vld [vmem:[#allocation4 + $0x260] ss:$8 sps:$4 sm:$0xff]  }
 0x185   :  { %2790 = vmatprep.mubr.bf16.mxu0 %v1971_v45  ;;  %v3441_v45 = vld [vmem:[#allocation4 + $0x1b0] ss:$8 sps:$4 sm:$0xff]   ;;  %v3485_v32 = vld [vmem:[#allocation4 + $0x294] ss:$8 sps:$4 sm:$0xff]  }
 0x186   :  { %2791 = vmatmul.mubr.bf16.vlgmr.msra.gmra.mrb[4].mxu0 %v1970_v48  ;;  %v3449_v48 = vld [vmem:[#allocation4 + $0x1d4] ss:$8 sps:$4 sm:$0xff]   ;;  %v3465_v19 = vld [vmem:[#allocation4 + $0x230] ss:$8 sps:$4 sm:$0xff]  }
 0x187   :  { %1936 = vmatpush1.bf16.msra.mxu1 %v3122_v46  ;;  %2800 = vmatpush1.bf16.msra.mxu0 %v3408_v47  ;;  %v3446_v46 = vld [vmem:[#allocation4 + $0x1c4] ss:$8 sps:$4 sm:$0xff]   ;;  %v3444_v47 = vld [vmem:[#allocation4 + $0x1c0] ss:$8 sps:$4 sm:$0xff]   ;;  %v3483_v33 = vld [vmem:[#allocation4 + $0x290] ss:$8 sps:$4 sm:$0xff]  }
 0x188   :  { %1937 = vmatprep.subr.bf16.mxu1 %v3131_v49  ;;  %2801 = vmatprep.subr.bf16.mxu0 %v3413_v50  ;;  %v3447_v49 = vld [vmem:[#allocation4 + $0x1d0] ss:$8 sps:$4 sm:$0xff]   ;;  %v3452_v50 = vld [vmem:[#allocation4 + $0x1e4] ss:$8 sps:$4 sm:$0xff]  }
 0x18b   :  { %1938 = vmatpush1.bf16.msra.mxu1 %v3130_v53  ;;  %2802 = vmatpush1.bf16.msra.mxu0 %v3411_v54  ;;  %v3458_v53 = vld [vmem:[#allocation4 + $0x204] ss:$8 sps:$4 sm:$0xff]   ;;  %v336_v54 = vsub.s32 5, %v3695_v17 }
 0x18c   :  { %1939 = vmatprep.subr.bf16.mxu1 %v3139_v55  ;;  %2803 = vmatprep.subr.bf16.mxu0 %v3416_v57  ;;  %v324_v55 = vsub.s32 2, %v3695_v17 }
 0x18d   :  { %v337_v57 = vrot.slane %v3701_v22, %v336_v54  ;;  %v3512_v54 = vld [vmem:[#allocation4 + $0x324] ss:$8 sps:$4 sm:$0xff]  }
 0x18e   :  { %v325_v59 = vrot.slane %v3701_v22, %v324_v55  ;;  %v3510_v55 = vld [vmem:[#allocation4 + $0x320] ss:$8 sps:$4 sm:$0xff]  }
 0x18f   :  { %1940 = vmatpush1.bf16.msra.mxu1 %v3138_v60  ;;  %2804 = vmatpush1.bf16.msra.mxu0 %v3414_v62  ;;  %v3321_v60 = vadd.f32 %v3712_v15, %v337_v57  ;;  %v329_v62 = vrot.slane %v3701_v22, %v328_v58  ;;  %v3459_v15 = vld [vmem:[#allocation4 + $0x210] ss:$8 sps:$4 sm:$0xff]   ;;  %v3518_v58 = vld [vmem:[#allocation4 + $0x344] ss:$8 sps:$4 sm:$0xff]  }
 0x190   :  { %1941 = vmatprep.subr.bf16.mxu1 %v3147_v63  ;;  %2805 = vmatprep.subr.bf16.mxu0 %v3419_v0  ;;  %v3513_v57 = vld [vmem:[#allocation4 + $0x330] ss:$8 sps:$4 sm:$0xff]  }
 0x191   :  { %v1967_v3 = vmax.f32 %v3321_v60, 0.0  ;;  %v3521_v60 = vld [vmem:[#allocation4 + $0x354] ss:$8 sps:$4 sm:$0xff]  }
 0x193   :  { %1942 = vmatpush1.bf16.msra.mxu1 %v3146_v4  ;;  %2806 = vmatpush1.bf16.msra.mxu0 %v3417_v5  ;;  %v1975_v9 = vpack.c.bf16 %v1967_v3, %v1967_v3  ;;  %v3525_v3 = vld [vmem:[#allocation4 + $0x370] ss:$8 sps:$4 sm:$0xff]  }
 0x194   :  { %1943 = vmatprep.subr.bf16.mxu1 %v3155_v6  ;;  %2807 = vmatprep.subr.bf16.mxu0 %v3422_v7 }
 0x197   :  { %1944 = vmatpush1.bf16.msra.mxu1 %v3154_v10  ;;  %2808 = vmatpush1.bf16.msra.mxu0 %v3420_v11  ;;  %v3456_v11 = vld [vmem:[#allocation4 + $0x200] ss:$8 sps:$4 sm:$0xff]  }
 0x198   :  { %1945 = vmatprep.subr.bf16.mxu1 %v3163_v13  ;;  %2809 = vmatprep.subr.bf16.mxu0 %v3425_v14  ;;  %v3461_v14 = vld [vmem:[#allocation4 + $0x214] ss:$8 sps:$4 sm:$0xff]  }
 0x19b   :  { %1946 = vmatpush1.bf16.msra.mxu1 %v3162_v20  ;;  %2810 = vmatpush1.bf16.msra.mxu0 %v3423_v21  ;;  %v3470_v20 = vld [vmem:[#allocation4 + $0x244] ss:$8 sps:$4 sm:$0xff]   ;;  %v3468_v21 = vld [vmem:[#allocation4 + $0x240] ss:$8 sps:$4 sm:$0xff]  }
 0x19c   :  { %1947 = vmatprep.subr.bf16.mxu1 %v3171_v24  ;;  %2811 = vmatprep.subr.bf16.mxu0 %v3428_v25  ;;  %v3473_v24 = vld [vmem:[#allocation4 + $0x254] ss:$8 sps:$4 sm:$0xff]   ;;  %v3471_v25 = vld [vmem:[#allocation4 + $0x250] ss:$8 sps:$4 sm:$0xff]  }
 0x19f   :  { %1948 = vmatpush1.bf16.msra.mxu1 %v3170_v28  ;;  %2812 = vmatpush1.bf16.msra.mxu0 %v3426_v29  ;;  %v3479_v28 = vld [vmem:[#allocation4 + $0x274] ss:$8 sps:$4 sm:$0xff]   ;;  %v3477_v29 = vld [vmem:[#allocation4 + $0x270] ss:$8 sps:$4 sm:$0xff]  }
 0x1a0   :  { %1949 = vmatprep.subr.bf16.mxu1 %v3179_v30  ;;  %2813 = vmatprep.subr.bf16.mxu0 %v3431_v31  ;;  %v3482_v30 = vld [vmem:[#allocation4 + $0x284] ss:$8 sps:$4 sm:$0xff]   ;;  %v3480_v31 = vld [vmem:[#allocation4 + $0x280] ss:$8 sps:$4 sm:$0xff]  }
 0x1a3   :  { %1950 = vmatpush1.bf16.msra.mxu1 %v3178_v34  ;;  %2814 = vmatpush1.bf16.msra.mxu0 %v3429_v35  ;;  %v3488_v34 = vld [vmem:[#allocation4 + $0x2a4] ss:$8 sps:$4 sm:$0xff]   ;;  %v3486_v35 = vld [vmem:[#allocation4 + $0x2a0] ss:$8 sps:$4 sm:$0xff]  }
 0x1a4   :  { %1951 = vmatprep.subr.bf16.mxu1 %v3187_v36  ;;  %2815 = vmatprep.subr.bf16.mxu0 %v3434_v37  ;;  %v3491_v36 = vld [vmem:[#allocation4 + $0x2b4] ss:$8 sps:$4 sm:$0xff]   ;;  %v3489_v37 = vld [vmem:[#allocation4 + $0x2b0] ss:$8 sps:$4 sm:$0xff]  }
 0x1a7   :  { %1952 = vmatpush1.bf16.msra.mxu1 %v3186_v38  ;;  %2816 = vmatpush1.bf16.msra.mxu0 %v3432_v39  ;;  %v3494_v38 = vld [vmem:[#allocation4 + $0x2c4] ss:$8 sps:$4 sm:$0xff]   ;;  %v3492_v39 = vld [vmem:[#allocation4 + $0x2c0] ss:$8 sps:$4 sm:$0xff]  }
 0x1a8   :  { %2817 = vmatprep.subr.bf16.mxu0 %v3437_v40  ;;  %v332_v40 = vsub.s32 4, %v3695_v17 }
 0x1aa   :  { %1954 = vmatmul.mubr.bf16.vlgmr.msra.gmra.mrb[8].mxu1 %v3684_v1  ;;  %v3455_v1 = vld [vmem:[#allocation4 + $0x1f4] ss:$8 sps:$4 sm:$0xff]  }
 0x1ab   :  { %2818 = vmatpush1.bf16.msra.mxu0 %v3435_v41  ;;  %v3497_v41 = vld [vmem:[#allocation4 + $0x2d4] ss:$8 sps:$4 sm:$0xff]  }
 0x1ac   :  { %2819 = vmatprep.subr.bf16.mxu0 %v3440_v42  ;;  %v3495_v42 = vld [vmem:[#allocation4 + $0x2d0] ss:$8 sps:$4 sm:$0xff]  }
 0x1af   :  { %2820 = vmatpush1.bf16.msra.mxu0 %v3438_v43  ;;  %v333_v43 = vrot.slane %v3701_v22, %v332_v40 }
 0x1b0   :  { %2821 = vmatprep.subr.bf16.mxu0 %v3443_v44  ;;  %v3500_v44 = vld [vmem:[#allocation4 + $0x2e4] ss:$8 sps:$4 sm:$0xff]  }
 0x1b3   :  { %2822 = vmatpush1.bf16.msra.mxu0 %v3441_v45  ;;  %v3498_v45 = vld [vmem:[#allocation4 + $0x2e0] ss:$8 sps:$4 sm:$0xff]  }
 0x1b4   :  { %2823 = vmatprep.subr.bf16.mxu0 %v3446_v46  ;;  %v3320_v46 = vadd.f32 %v3710_v12, %v333_v43  ;;  %v3515_v12 = vld [vmem:[#allocation4 + $0x334] ss:$8 sps:$4 sm:$0xff]  }
 0x1b7   :  { %2824 = vmatpush1.bf16.msra.mxu0 %v3444_v47  ;;  %v3503_v47 = vld [vmem:[#allocation4 + $0x2f4] ss:$8 sps:$4 sm:$0xff]  }
 0x1b8   :  { %2825 = vmatprep.subr.bf16.mxu0 %v3449_v48  ;;  %v3501_v48 = vld [vmem:[#allocation4 + $0x2f0] ss:$8 sps:$4 sm:$0xff]  }
 0x1bb   :  { %2826 = vmatpush1.bf16.msra.mxu0 %v3447_v49  ;;  %v1966_v49 = vmax.f32 %v3320_v46, 0.0 }
 0x1bc   :  { %2827 = vmatprep.subr.bf16.mxu0 %v3452_v50  ;;  %v3506_v50 = vld [vmem:[#allocation4 + $0x304] ss:$8 sps:$4 sm:$0xff]  }
 0x1bf   :  { %2828 = vmatpush1.bf16.msra.mxu0 %v3450_v51  ;;  %v3504_v51 = vld [vmem:[#allocation4 + $0x300] ss:$8 sps:$4 sm:$0xff]  }
 0x1c0   :  { %2829 = vmatprep.subr.bf16.mxu0 %v3455_v1  ;;  %v1974_v1 = vpack.c.bf16 %v1966_v49, %v1966_v49 }
 0x1c3   :  { %2830 = vmatpush1.bf16.msra.mxu0 %v3453_v52  ;;  %v3509_v52 = vld [vmem:[#allocation4 + $0x314] ss:$8 sps:$4 sm:$0xff]  }
 0x1c4   :  { %2840 = vmatprep.subr.bf16.mxu0 %v3458_v53  ;;  %v3507_v53 = vld [vmem:[#allocation4 + $0x310] ss:$8 sps:$4 sm:$0xff]  }
 0x1fd   :  { %v1791_v63 = vpop.f32.mrb[4].mxu1 }
 0x1fe   :  { %v3318_v0 = vadd.f32 %v1791_v63, %v325_v59  ;;  %v1793_v2 = vpop.f32.mrb[5].mxu1  ;;  %v3516_v59 = vld [vmem:[#allocation4 + $0x340] ss:$8 sps:$4 sm:$0xff]   ;;  %v3524_v63 = vld [vmem:[#allocation4 + $0x364] ss:$8 sps:$4 sm:$0xff]  }
 0x1ff   :  { %v3319_v4 = vadd.f32 %v1793_v2, %v329_v62  ;;  %v1795_v5 = vpop.f32.mrb[6].mxu1  ;;  %v3519_v62 = vld [vmem:[#allocation4 + $0x350] ss:$8 sps:$4 sm:$0xff]   ;;  %v3527_v2 = vld [vmem:[#allocation4 + $0x374] ss:$8 sps:$4 sm:$0xff]  }
 0x200   :  { %v1964_v6 = vmax.f32 %v3318_v0, 0.0  ;;  %v1796_v7 = vpop.f32.mrb[7].mxu1  ;;  %v3522_v0 = vld [vmem:[#allocation4 + $0x360] ss:$8 sps:$4 sm:$0xff]  }
 0x201   :  { %v1965_v8 = vmax.f32 %v3319_v4, 0.0  ;;  %v3530_v4 = vld [vmem:[#allocation4 + $0x384] ss:$8 sps:$4 sm:$0xff]   ;;  %v3528_v5 = vld [vmem:[#allocation4 + $0x380] ss:$8 sps:$4 sm:$0xff]  }
 0x202   :  { %v1972_v13 = vpack.c.bf16 %v1964_v6, %v1964_v6  ;;  %v3533_v6 = vld [vmem:[#allocation4 + $0x394] ss:$8 sps:$4 sm:$0xff]   ;;  %v3531_v7 = vld [vmem:[#allocation4 + $0x390] ss:$8 sps:$4 sm:$0xff]  }
 0x203   :  { %v1973_v10 = vpack.c.bf16 %v1965_v8, %v1965_v8  ;;  %v3536_v8 = vld [vmem:[#allocation4 + $0x3a4] ss:$8 sps:$4 sm:$0xff]  }
 0x205   :  { %2831 = vmatprep.mubr.bf16.mxu0 %v1973_v10  ;;  %v3539_v10 = vld [vmem:[#allocation4 + $0x3b4] ss:$8 sps:$4 sm:$0xff]  }
 0x206   :  { %2832 = vmatmul.mubr.bf16.vlgmr.msra.gmra.mrb[4].mxu0 %v1972_v13  ;;  %v3542_v13 = vld [vmem:[#allocation4 + $0x3c4] ss:$8 sps:$4 sm:$0xff]  }
 0x207   :  { %2841 = vmatpush1.bf16.msra.mxu0 %v3456_v11  ;;  %2872 = vmatprep.mubr.bf16.mxu0 %v1975_v9  ;;  %v3534_v9 = vld [vmem:[#allocation4 + $0x3a0] ss:$8 sps:$4 sm:$0xff]   ;;  %v3537_v11 = vld [vmem:[#allocation4 + $0x3b0] ss:$8 sps:$4 sm:$0xff]  }
 0x208   :  { %2842 = vmatprep.subr.bf16.mxu0 %v3461_v14  ;;  %v3540_v14 = vld [vmem:[#allocation4 + $0x3c0] ss:$8 sps:$4 sm:$0xff]  }
 0x20b   :  { %2843 = vmatpush1.bf16.msra.mxu0 %v3459_v15  ;;  %v3545_v15 = vld [vmem:[#allocation4 + $0x3d4] ss:$8 sps:$4 sm:$0xff]  }
 0x20c   :  { %2844 = vmatprep.subr.bf16.mxu0 %v3464_v16  ;;  %v340_v16 = vsub.s32 6, %v3695_v17 }
 0x20f   :  { %2845 = vmatpush1.bf16.msra.mxu0 %v3462_v18  ;;  %v3543_v18 = vld [vmem:[#allocation4 + $0x3d0] ss:$8 sps:$4 sm:$0xff]  }
 0x210   :  { %2846 = vmatprep.subr.bf16.mxu0 %v3467_v56  ;;  %v344_v56 = vsub.s32 7, %v3695_v17 }
 0x213   :  { %2847 = vmatpush1.bf16.msra.mxu0 %v3465_v19  ;;  %v3548_v19 = vld [vmem:[#allocation4 + $0x3e4] ss:$8 sps:$4 sm:$0xff]  }
 0x214   :  { %2848 = vmatprep.subr.bf16.mxu0 %v3470_v20  ;;  %v341_v20 = vrot.slane %v3701_v22, %v340_v16 }
 0x217   :  { %2849 = vmatpush1.bf16.msra.mxu0 %v3468_v21  ;;  %v345_v21 = vrot.slane %v3701_v22, %v344_v56  ;;  %v2106_v22 = vld [vmem:[%s3746_s4] sm:$0x3] }
 0x218   :  { %2850 = vmatprep.subr.bf16.mxu0 %v3473_v24  ;;  %v3546_v24 = vld [vmem:[#allocation4 + $0x3e0] ss:$8 sps:$4 sm:$0xff]  }
 0x21b   :  { %2851 = vmatpush1.bf16.msra.mxu0 %v3471_v25  ;;  %v3551_v25 = vld [vmem:[#allocation4 + $0x3f4] ss:$8 sps:$4 sm:$0xff]  }
 0x21c   :  { %2852 = vmatprep.subr.bf16.mxu0 %v3476_v26 }
 0x21f   :  { %2853 = vmatpush1.bf16.msra.mxu0 %v3474_v27 }
 0x220   :  { %2854 = vmatprep.subr.bf16.mxu0 %v3479_v28 }
 0x223   :  { %2855 = vmatpush1.bf16.msra.mxu0 %v3477_v29 }
 0x224   :  { %2856 = vmatprep.subr.bf16.mxu0 %v3482_v30 }
 0x227   :  { %2857 = vmatpush1.bf16.msra.mxu0 %v3480_v31  ;;  %v3549_v31 = vld [vmem:[#allocation4 + $0x3f0] ss:$8 sps:$4 sm:$0xff]  }
 0x228   :  { %2858 = vmatprep.subr.bf16.mxu0 %v3485_v32 }
 0x22b   :  { %2859 = vmatpush1.bf16.msra.mxu0 %v3483_v33 }
 0x22c   :  { %2860 = vmatprep.subr.bf16.mxu0 %v3488_v34 }
 0x22f   :  { %2861 = vmatpush1.bf16.msra.mxu0 %v3486_v35 }
 0x230   :  { %2862 = vmatprep.subr.bf16.mxu0 %v3491_v36 }
 0x233   :  { %2863 = vmatpush1.bf16.msra.mxu0 %v3489_v37  ;;  %v2111_v37 = vrot.slane %v2106_v22, %v316_v61 }
 0x234   :  { %2864 = vmatprep.subr.bf16.mxu0 %v3494_v38  ;;  %v2115_v38 = vrot.slane %v2106_v22, %v320_v23 }
 0x237   :  { %2865 = vmatpush1.bf16.msra.mxu0 %v3492_v39 }
 0x238   :  { %2866 = vmatprep.subr.bf16.mxu0 %v3497_v41 }
 0x23b   :  { %2867 = vmatpush1.bf16.msra.mxu0 %v3495_v42 }
 0x23c   :  { %2868 = vmatprep.subr.bf16.mxu0 %v3500_v44 }
 0x23f   :  { %2869 = vmatpush1.bf16.msra.mxu0 %v3498_v45 }
 0x240   :  { %2870 = vmatprep.subr.bf16.mxu0 %v3503_v47 }
 0x243   :  { %2871 = vmatpush1.bf16.msra.mxu0 %v3501_v48 }
 0x244   :  { %2881 = vmatprep.subr.bf16.mxu0 %v3506_v50 }
 0x246   :  { %2873 = vmatmul.mubr.bf16.vlgmr.msra.gmra.mrb[4].mxu0 %v1974_v1 }
 0x247   :  { %2882 = vmatpush1.bf16.msra.mxu0 %v3504_v51 }
 0x248   :  { %2883 = vmatprep.subr.bf16.mxu0 %v3509_v52 }
 0x24b   :  { %2884 = vmatpush1.bf16.msra.mxu0 %v3507_v53 }
 0x24c   :  { %2885 = vmatprep.subr.bf16.mxu0 %v3512_v54 }
 0x24f   :  { %2886 = vmatpush1.bf16.msra.mxu0 %v3510_v55 }
 0x250   :  { %2887 = vmatprep.subr.bf16.mxu0 %v3515_v12 }
 0x253   :  { %2888 = vmatpush1.bf16.msra.mxu0 %v3513_v57 }
 0x254   :  { %2889 = vmatprep.subr.bf16.mxu0 %v3518_v58 }
 0x257   :  { %2890 = vmatpush1.bf16.msra.mxu0 %v3516_v59 }
 0x258   :  { %2891 = vmatprep.subr.bf16.mxu0 %v3521_v60 }
 0x25b   :  { %2892 = vmatpush1.bf16.msra.mxu0 %v3519_v62 }
 0x25c   :  { %2893 = vmatprep.subr.bf16.mxu0 %v3524_v63 }
 0x25f   :  { %2894 = vmatpush1.bf16.msra.mxu0 %v3522_v0 }
 0x260   :  { %2895 = vmatprep.subr.bf16.mxu0 %v3527_v2 }
 0x263   :  { %2896 = vmatpush1.bf16.msra.mxu0 %v3525_v3 }
 0x264   :  { %2897 = vmatprep.subr.bf16.mxu0 %v3530_v4 }
 0x267   :  { %2898 = vmatpush1.bf16.msra.mxu0 %v3528_v5 }
 0x268   :  { %2899 = vmatprep.subr.bf16.mxu0 %v3533_v6 }
 0x26b   :  { %2900 = vmatpush1.bf16.msra.mxu0 %v3531_v7 }
 0x26c   :  { %2901 = vmatprep.subr.bf16.mxu0 %v3536_v8 }
 0x26f   :  { %2902 = vmatpush1.bf16.msra.mxu0 %v3534_v9 }
 0x270   :  { %2903 = vmatprep.subr.bf16.mxu0 %v3539_v10 }
 0x273   :  { %2904 = vmatpush1.bf16.msra.mxu0 %v3537_v11 }
 0x274   :  { %2905 = vmatprep.subr.bf16.mxu0 %v3542_v13 }
 0x277   :  { %2906 = vmatpush1.bf16.msra.mxu0 %v3540_v14 }
 0x278   :  { %2907 = vmatprep.subr.bf16.mxu0 %v3545_v15 }
 0x27b   :  { %2908 = vmatpush1.bf16.msra.mxu0 %v3543_v18 }
 0x27c   :  { %2909 = vmatprep.subr.bf16.mxu0 %v3548_v19 }
 0x27d   :  { %v1955_v26 = vpop.f32.mrb[8].mxu1 }
 0x27e   :  { %v3322_v27 = vadd.f32 %v1955_v26, %v341_v20  ;;  %v1957_v28 = vpop.f32.mrb[9].mxu1 }
 0x27f   :  { %v3323_v29 = vadd.f32 %v1957_v28, %v345_v21  ;;  %v1959_v30 = vpop.f32.mrb[10].mxu1  ;;  %2910 = vmatpush1.bf16.msra.mxu0 %v3546_v24 }
 0x280   :  { %v1968_v32 = vmax.f32 %v3322_v27, 0.0  ;;  %v1960_v33 = vpop.f32.mrb[11].mxu1  ;;  %2911 = vmatprep.subr.bf16.mxu0 %v3551_v25 }
 0x281   :  { %v1969_v34 = vmax.f32 %v3323_v29, 0.0 }
 0x282   :  { %v1976_v36 = vpack.c.bf16 %v1968_v32, %v1968_v32 }
 0x283   :  { %v1977_v35 = vpack.c.bf16 %v1969_v34, %v1969_v34  ;;  %2912 = vmatpush1.bf16.msra.mxu0 %v3549_v31 }
 0x285   :  { %2913 = vmatprep.mubr.bf16.mxu0 %v1977_v35 }
 0x286   :  { %2914 = vmatmul.mubr.bf16.vlgmr.msra.gmra.mrb[4].mxu0 %v1976_v36 }
 0x359   :  { %v2915_v39 = vpop.f32.mrb[4].mxu0 }
 0x35a   :  { %v3324_v40 = vadd.f32 %v2915_v39, %v2111_v37  ;;  %v2917_v41 = vpop.f32.mrb[5].mxu0 }
 0x35b   :  { %v3325_v42 = vadd.f32 %v2917_v41, %v2115_v38  ;;  %v2919_v43 = vpop.f32.mrb[6].mxu0 }
 0x35c   :  { %v2922_v44 = vmax.f32 %v3324_v40, 0.0  ;;  %v2920_v45 = vpop.f32.mrb[7].mxu0 }
 0x35d   :  { %v2923_v46 = vmax.f32 %v3325_v42, 0.0 }
 0x35e   :  { %2924 = vst [vmem:[%s3747_s5] sm:$0xff] %v2922_v44 }
 0x35f   :  { %2925 = vst [vmem:[%s3747_s5 + $0x8] sm:$0xff] %v2923_v46 }
 0x360   :  { %2930 = vsyncpa [#allocation3], 1 }
 0x361   :  { %2931 = vsyncpa [#allocation5], 1 }

</bundles_post_ra>
